<compile_context>
chip_gen: v7x
topology: tpu7x:2x2x1
jax: 0.10.0
libtpu: 0.0.40
codegen_flags: <defaults>
</compile_context>

<pallas_src>
import functools
import math

import jax
import jax.numpy as jnp
from jax.experimental import pallas as pl
from jax.experimental.pallas import tpu as pltpu


LANE = 128           # TPU lane width; tiny channel/feature dims are padded to this.
CONV1_OUT = 10       # valid output channels of conv1 (remaining lanes are zero)
CONV2_OUT = 20       # valid output channels of conv2
FC2_OUT = 10         # valid logits

_COMPILER_PARAMS = pltpu.CompilerParams(
    dimension_semantics=("parallel",),        # M-grid is independent -> megacore on v7x
    vmem_limit_bytes=32 * 1024 * 1024,        # safe on v5e/v6e/v7x; usage is far below
)


def _lcm(a, b):
    return a * b // math.gcd(a, b)


def _round_up(a, b):
    return pl.cdiv(a, b) * b


def _tile_m(m, chunk, max_tile):
    """Pick a row tile (multiple of `chunk`) and the minimally padded M.

    Prefers an even grid of >= 2 steps (when m allows) so both v7x TensorCores get
    work under dimension_semantics=("parallel",); pads M only to a multiple of the
    chosen tile, not of max_tile.
    """
    n_t = pl.cdiv(m, max_tile)
    if m >= 2 * chunk:
        n_t = max(n_t, 2)
        if n_t % 2:
            n_t += 1
    tm = _round_up(pl.cdiv(m, n_t), chunk)
    n_t = pl.cdiv(m, tm)
    return tm, n_t * tm


# ----------------------------- Pallas kernels ------------------------------


def _conv_relu_pool_kernel(x_ref, w_ref, b_ref, o_ref, *, wo):
    # x: (tm, K) bf16 im2col patches; rows enumerate (n, ho, w) row-major and
    #    tm % (2*wo) == 0, so the tile holds whole 2-row image strips.
    # w: (K, 128) bf16 (output channels zero-padded), b: (1, 128) f32.
    acc = jnp.dot(x_ref[...], w_ref[...], preferred_element_type=jnp.float32)
    acc = jnp.maximum(acc + b_ref[...], 0.0)          # bias + relu (commutes with max-pool)
    tm = acc.shape[0]
    # Fused 2x2 max-pool: pool W (adjacent rows), then H (rows wo//2 apart).
    hw = acc.reshape(tm // 2, 2, LANE).max(axis=1)                    # (tm/2, 128)
    p = hw.reshape(tm // (2 * wo), 2, wo // 2, LANE).max(axis=1)      # (strips, wo/2, 128)
    o_ref[...] = p.reshape(tm // 4, LANE).astype(o_ref.dtype)         # bf16 store


def _mlp_head_kernel(x_ref, w1_ref, b1_ref, w2_ref, b2_ref, o_ref):
    # Fused fc1(relu) + fc2: both weight matrices resident in VMEM (< 600 KiB).
    h = jnp.dot(x_ref[...], w1_ref[...], preferred_element_type=jnp.float32)
    h = jnp.maximum(h + b1_ref[...], 0.0)
    # TODO(synk): F.dropout between fc1 and fc2 is identity in eval mode.
    o = jnp.dot(h.astype(w2_ref.dtype), w2_ref[...], preferred_element_type=jnp.float32)
    o_ref[...] = (o + b2_ref[...]).astype(o_ref.dtype)


# ------------------------------ wrappers ------------------------------------


def _im2col_nhwc(x, ksize):
    # x: (N, H, W, C) -> patches (N*Ho*Wo, K*K*C), flattened (kh, kw, c)-major.
    N, H, W, C = x.shape
    Ho, Wo = H - ksize + 1, W - ksize + 1
    cols = [x[:, kh:kh + Ho, kw:kw + Wo, :]
            for kh in range(ksize) for kw in range(ksize)]
    p = jnp.stack(cols, axis=3)                     # (N, Ho, Wo, K*K, C)
    return p.reshape(N * Ho * Wo, ksize * ksize * C), Ho, Wo


def conv_relu_pool(x, w_mat, b_pad, *, ksize, max_tile=2048):
    """relu(conv2d(x) + b) followed by 2x2 max-pool, fused in one Pallas kernel.

    x: NHWC bf16; w_mat: (K*K*C, 128) bf16 (prepared once); b_pad: (1, 128) f32.
    Returns (N, Ho//2, Wo//2, 128) bf16, padded channels exactly zero.
    """
    N = x.shape[0]
    patches, Ho, Wo = _im2col_nhwc(x, ksize)        # XLA glue, fused under jit
    assert Ho % 2 == 0 and Wo % 2 == 0, (Ho, Wo)
    M = N * Ho * Wo
    K = patches.shape[1]
    # Tile rows must hold whole 2-row strips (2*Wo) and give >=8-row (bf16: 16) out tiles.
    chunk = _lcm(2 * Wo, 64)
    tm, M_pad = _tile_m(M, chunk, max_tile)
    if M_pad != M:
        patches = jnp.pad(patches, ((0, M_pad - M), (0, 0)))
    out = pl.pallas_call(
        functools.partial(_conv_relu_pool_kernel, wo=Wo),
        out_shape=jax.ShapeDtypeStruct((M_pad // 4, LANE), jnp.bfloat16),
        grid=(M_pad // tm,),
        in_specs=[
            pl.BlockSpec((tm, K), lambda i: (i, 0)),
            pl.BlockSpec((K, LANE), lambda i: (0, 0)),
            pl.BlockSpec((1, LANE), lambda i: (0, 0)),
        ],
        out_specs=pl.BlockSpec((tm // 4, LANE), lambda i: (i, 0)),
        compiler_params=_COMPILER_PARAMS,
    )(patches, w_mat, b_pad)
    out = out[: M // 4]
    return out.reshape(N, Ho // 2, Wo // 2, LANE)


def mlp_head(x, w1, b1, w2, b2, max_tile=512):
    """relu(x @ w1 + b1) @ w2 + b2 in one pallas_call. x bf16 (M, 2048)."""
    M, K = x.shape
    tm, M_pad = _tile_m(M, 16, max_tile)
    if M_pad != M:
        x = jnp.pad(x, ((0, M_pad - M), (0, 0)))
    out = pl.pallas_call(
        _mlp_head_kernel,
        out_shape=jax.ShapeDtypeStruct((M_pad, LANE), jnp.float32),
        grid=(M_pad // tm,),
        in_specs=[
            pl.BlockSpec((tm, K), lambda i: (i, 0)),
            pl.BlockSpec((K, LANE), lambda i: (0, 0)),
            pl.BlockSpec((1, LANE), lambda i: (0, 0)),
            pl.BlockSpec((LANE, LANE), lambda i: (0, 0)),
            pl.BlockSpec((1, LANE), lambda i: (0, 0)),
        ],
        out_specs=pl.BlockSpec((tm, LANE), lambda i: (i, 0)),
        compiler_params=_COMPILER_PARAMS,
    )(x, w1, b1, w2, b2)
    return out[:M]


# ------------------------------ parameters ----------------------------------


def init_params(key):
    """Torch-layout (NCHW / (O, C, K, K)) float32 parameters, PyTorch-style init."""
    ks = jax.random.split(key, 8)

    def u(k, shape, fan_in):
        bound = 1.0 / jnp.sqrt(jnp.float32(fan_in))
        return jax.random.uniform(k, shape, jnp.float32, -bound, bound)

    return {
        "conv1_w": u(ks[0], (10, 1, 5, 5), 1 * 25),
        "conv1_b": u(ks[1], (10,), 1 * 25),
        "conv2_w": u(ks[2], (20, 10, 5, 5), 10 * 25),
        "conv2_b": u(ks[3], (20,), 10 * 25),
        "fc1_w":   u(ks[4], (50, 320), 320),
        "fc1_b":   u(ks[5], (50,), 320),
        "fc2_w":   u(ks[6], (10, 50), 50),
        "fc2_b":   u(ks[7], (10,), 50),
    }


def prepare_params(raw):
    """One-time: reshape/transpose/zero-pad weights into kernel-ready, lane-dense layouts.

    Zero padding of weight columns/rows + zero bias padding keeps all padded lanes
    exactly zero through the whole network (so slicing at the end is exact).
    """
    def conv_wmat(w):
        O, C, K, _ = w.shape
        # (O, C, K, K) -> (K*K*C, O), matching the (kh, kw, c) im2col flatten order.
        m = jnp.transpose(w, (2, 3, 1, 0)).reshape(K * K * C, O)
        return jnp.pad(m, ((0, 0), (0, LANE - O))).astype(jnp.bfloat16)

    def pad_bias(b):
        return jnp.pad(b, (0, LANE - b.shape[0])).reshape(1, LANE).astype(jnp.float32)

    # fc1: absorb torch's NCHW .view(-1, 320) permutation + the 128-lane channel
    # padding into the weight rows -> flatten becomes a plain NHWC reshape.
    # torch column j = (c, h, w) with c=j//16, h=(j//4)%4, w=j%4;
    # our row r = (h, w, c128) with h=r//512, w=(r//128)%4, c=r%128.
    fc1 = raw["fc1_w"].reshape(50, 20, 4, 4)               # (o, c, h, w)
    fc1 = jnp.transpose(fc1, (2, 3, 1, 0))                 # (h, w, c, o)
    fc1 = jnp.pad(fc1, ((0, 0), (0, 0), (0, LANE - 20), (0, LANE - 50)))
    fc1 = fc1.reshape(4 * 4 * LANE, LANE).astype(jnp.bfloat16)   # (2048, 128)

    fc2 = jnp.pad(raw["fc2_w"].T, ((0, LANE - 50), (0, LANE - 10))
                  ).astype(jnp.bfloat16)                   # (128, 128)

    return {
        "conv1_w": conv_wmat(raw["conv1_w"]),              # (25, 128)  bf16
        "conv1_b": pad_bias(raw["conv1_b"]),               # (1, 128)   f32
        "conv2_w": conv_wmat(raw["conv2_w"]),              # (250, 128) bf16
        "conv2_b": pad_bias(raw["conv2_b"]),
        "fc1_w": fc1,
        "fc1_b": pad_bias(raw["fc1_b"]),
        "fc2_w": fc2,
        "fc2_b": pad_bias(raw["fc2_b"]),
    }


# ------------------------------ model forward -------------------------------


def toy_mnist_forward(p, x):
    # x: (N, 1, 28, 28) float32, NCHW (torch convention at the boundary).
    N = x.shape[0]
    x = jnp.transpose(x, (0, 2, 3, 1)).astype(jnp.bfloat16)             # NHWC bf16
    # relu is applied inside the conv epilogue (relu commutes with max_pool2d).
    x = conv_relu_pool(x, p["conv1_w"], p["conv1_b"], ksize=5)          # (N,12,12,128) bf16
    # TODO(synk): Dropout2d after conv2 is identity in eval mode; training masks not implemented.
    x = conv_relu_pool(x[..., :CONV1_OUT], p["conv2_w"], p["conv2_b"],
                       ksize=5)                                          # (N, 4, 4,128) bf16
    # Flatten: the torch (c,h,w) order is baked into fc1_w, so this is a pure reshape.
    x = x.reshape(N, -1)                                                 # (N, 2048) bf16
    logits = mlp_head(x, p["fc1_w"], p["fc1_b"], p["fc2_w"], p["fc2_b"])  # (N, 128) f32
    return logits[:, :FC2_OUT]                                           # (N, 10)


if __name__ == "__main__":
    key = jax.random.PRNGKey(0)
    pkey, xkey = jax.random.split(key)
    params = prepare_params(init_params(pkey))
    x = jax.random.normal(xkey, (2, 1, 28, 28), dtype=jnp.float32)

    forward = jax.jit(toy_mnist_forward)
    logits = jax.block_until_ready(forward(params, x))
    assert logits.shape == (2, 10), logits.shape
    assert bool(jnp.all(jnp.isfinite(logits)))
    print("KERNEL_OK")
</pallas_src>

<mosaic_0001>
module attributes {stable_mosaic.version = 11 : i64} {
  func.func @_conv_relu_pool_kernel(%arg0: i32, %arg1: memref<576x25xbf16, #tpu.memory_space<vmem>>, %arg2: memref<25x128xbf16, #tpu.memory_space<vmem>>, %arg3: memref<1x128xf32, #tpu.memory_space<vmem>>, %arg4: memref<144x128xbf16, #tpu.memory_space<vmem>>) attributes {dimension_semantics = [#tpu.dimension_semantics<parallel>], iteration_bounds = array<i64: 2>, scalar_prefetch = 0 : i64, scratch_operands = 0 : i64, tpu.core_type = #tpu.core_type<tc>, window_params = [{transform_indices = @transform_0, window_bounds = array<i64: 576, 25>}, {pipeline_mode = #tpu.pipeline_mode<synchronous>, transform_indices = @transform_1, window_bounds = array<i64: 25, 128>}, {pipeline_mode = #tpu.pipeline_mode<synchronous>, transform_indices = @transform_2, window_bounds = array<i64: 1, 128>}, {transform_indices = @transform_3, window_bounds = array<i64: 144, 128>}]} {
    %c0 = arith.constant 0 : index
    %c0_0 = arith.constant 0 : index
    %0 = vector.load %arg1[%c0, %c0_0] : memref<576x25xbf16, #tpu.memory_space<vmem>>, vector<576x25xbf16>
    %c0_1 = arith.constant 0 : index
    %c0_2 = arith.constant 0 : index
    %1 = vector.load %arg2[%c0_1, %c0_2] : memref<25x128xbf16, #tpu.memory_space<vmem>>, vector<25x128xbf16>
    %cst = arith.constant dense<0.000000e+00> : vector<576x128xf32>
    %2 = tpu.matmul %0, %1, %cst {dimension_numbers = #tpu.dot_dimension_numbers<[1], [0], [0], [1], [0, 0, 1, 1], [], []>} : vector<576x25xbf16>, vector<25x128xbf16>, vector<576x128xf32> -> vector<576x128xf32>
    %c0_3 = arith.constant 0 : index
    %c0_4 = arith.constant 0 : index
    %3 = vector.load %arg3[%c0_3, %c0_4] : memref<1x128xf32, #tpu.memory_space<vmem>>, vector<1x128xf32>
    %4 = vector.broadcast %3 : vector<1x128xf32> to vector<576x128xf32>
    %5 = arith.addf %2, %4 : vector<576x128xf32>
    %cst_5 = arith.constant 0.000000e+00 : f32
    %6 = vector.broadcast %cst_5 : f32 to vector<576x128xf32>
    %7 = arith.maximumf %5, %6 : vector<576x128xf32>
    %8 = vector.shape_cast %7 : vector<576x128xf32> to vector<288x2x128xf32>
    %cst_6 = arith.constant dense<0xFF800000> : vector<288x128xf32>
    %9 = vector.multi_reduction <maximumf>, %8, %cst_6 [1] : vector<288x2x128xf32> to vector<288x128xf32>
    %10 = vector.shape_cast %9 : vector<288x128xf32> to vector<12x2x12x128xf32>
    %cst_7 = arith.constant dense<0xFF800000> : vector<12x12x128xf32>
    %11 = vector.multi_reduction <maximumf>, %10, %cst_7 [1] : vector<12x2x12x128xf32> to vector<12x12x128xf32>
    %12 = vector.shape_cast %11 : vector<12x12x128xf32> to vector<144x128xf32>
    %13 = arith.truncf %12 : vector<144x128xf32> to vector<144x128xbf16>
    %c0_8 = arith.constant 0 : index
    %c0_9 = arith.constant 0 : index
    %14 = vector.load %arg4[%c0_8, %c0_9] : memref<144x128xbf16, #tpu.memory_space<vmem>>, vector<144x128xbf16>
    tpu.vector_store %arg4[%c0_8, %c0_9], %13 {strides = array<i32>} : memref<144x128xbf16, #tpu.memory_space<vmem>>, vector<144x128xbf16>,
    return
  }
  func.func @transform_0(%arg0: i32) -> (i32, i32) {
    %c0_i32 = arith.constant 0 : i32
    %c0_i32_0 = arith.constant 0 : i32
    return %arg0, %c0_i32 : i32, i32
  }
  func.func @transform_1(%arg0: i32) -> (i32, i32) {
    %c0_i32 = arith.constant 0 : i32
    %c0_i32_0 = arith.constant 0 : i32
    %c0_i32_1 = arith.constant 0 : i32
    return %c0_i32, %c0_i32_0 : i32, i32
  }
  func.func @transform_2(%arg0: i32) -> (i32, i32) {
    %c0_i32 = arith.constant 0 : i32
    %c0_i32_0 = arith.constant 0 : i32
    %c0_i32_1 = arith.constant 0 : i32
    return %c0_i32, %c0_i32_0 : i32, i32
  }
  func.func @transform_3(%arg0: i32) -> (i32, i32) {
    %c0_i32 = arith.constant 0 : i32
    %c0_i32_0 = arith.constant 0 : i32
    return %arg0, %c0_i32 : i32, i32
  }
}

module attributes {stable_mosaic.version = 11 : i64} {
  func.func @_conv_relu_pool_kernel(%arg0: i32, %arg1: memref<64x250xbf16, #tpu.memory_space<vmem>>, %arg2: memref<250x128xbf16, #tpu.memory_space<vmem>>, %arg3: memref<1x128xf32, #tpu.memory_space<vmem>>, %arg4: memref<16x128xbf16, #tpu.memory_space<vmem>>) attributes {dimension_semantics = [#tpu.dimension_semantics<parallel>], iteration_bounds = array<i64: 2>, scalar_prefetch = 0 : i64, scratch_operands = 0 : i64, tpu.core_type = #tpu.core_type<tc>, window_params = [{transform_indices = @transform_0, window_bounds = array<i64: 64, 250>}, {pipeline_mode = #tpu.pipeline_mode<synchronous>, transform_indices = @transform_1, window_bounds = array<i64: 250, 128>}, {pipeline_mode = #tpu.pipeline_mode<synchronous>, transform_indices = @transform_2, window_bounds = array<i64: 1, 128>}, {transform_indices = @transform_3, window_bounds = array<i64: 16, 128>}]} {
    %c0 = arith.constant 0 : index
    %c0_0 = arith.constant 0 : index
    %0 = vector.load %arg1[%c0, %c0_0] : memref<64x250xbf16, #tpu.memory_space<vmem>>, vector<64x250xbf16>
    %c0_1 = arith.constant 0 : index
    %c0_2 = arith.constant 0 : index
    %1 = vector.load %arg2[%c0_1, %c0_2] : memref<250x128xbf16, #tpu.memory_space<vmem>>, vector<250x128xbf16>
    %cst = arith.constant dense<0.000000e+00> : vector<64x128xf32>
    %2 = tpu.matmul %0, %1, %cst {dimension_numbers = #tpu.dot_dimension_numbers<[1], [0], [0], [1], [0, 0, 1, 1], [], []>} : vector<64x250xbf16>, vector<250x128xbf16>, vector<64x128xf32> -> vector<64x128xf32>
    %c0_3 = arith.constant 0 : index
    %c0_4 = arith.constant 0 : index
    %3 = vector.load %arg3[%c0_3, %c0_4] : memref<1x128xf32, #tpu.memory_space<vmem>>, vector<1x128xf32>
    %4 = vector.broadcast %3 : vector<1x128xf32> to vector<64x128xf32>
    %5 = arith.addf %2, %4 : vector<64x128xf32>
    %cst_5 = arith.constant 0.000000e+00 : f32
    %6 = vector.broadcast %cst_5 : f32 to vector<64x128xf32>
    %7 = arith.maximumf %5, %6 : vector<64x128xf32>
    %8 = vector.shape_cast %7 : vector<64x128xf32> to vector<32x2x128xf32>
    %cst_6 = arith.constant dense<0xFF800000> : vector<32x128xf32>
    %9 = vector.multi_reduction <maximumf>, %8, %cst_6 [1] : vector<32x2x128xf32> to vector<32x128xf32>
    %10 = vector.shape_cast %9 : vector<32x128xf32> to vector<4x2x4x128xf32>
    %cst_7 = arith.constant dense<0xFF800000> : vector<4x4x128xf32>
    %11 = vector.multi_reduction <maximumf>, %10, %cst_7 [1] : vector<4x2x4x128xf32> to vector<4x4x128xf32>
    %12 = vector.shape_cast %11 : vector<4x4x128xf32> to vector<16x128xf32>
    %13 = arith.truncf %12 : vector<16x128xf32> to vector<16x128xbf16>
    %c0_8 = arith.constant 0 : index
    %c0_9 = arith.constant 0 : index
    %14 = vector.load %arg4[%c0_8, %c0_9] : memref<16x128xbf16, #tpu.memory_space<vmem>>, vector<16x128xbf16>
    tpu.vector_store %arg4[%c0_8, %c0_9], %13 {strides = array<i32>} : memref<16x128xbf16, #tpu.memory_space<vmem>>, vector<16x128xbf16>,
    return
  }
  func.func @transform_0(%arg0: i32) -> (i32, i32) {
    %c0_i32 = arith.constant 0 : i32
    %c0_i32_0 = arith.constant 0 : i32
    return %arg0, %c0_i32 : i32, i32
  }
  func.func @transform_1(%arg0: i32) -> (i32, i32) {
    %c0_i32 = arith.constant 0 : i32
    %c0_i32_0 = arith.constant 0 : i32
    %c0_i32_1 = arith.constant 0 : i32
    return %c0_i32, %c0_i32_0 : i32, i32
  }
  func.func @transform_2(%arg0: i32) -> (i32, i32) {
    %c0_i32 = arith.constant 0 : i32
    %c0_i32_0 = arith.constant 0 : i32
    %c0_i32_1 = arith.constant 0 : i32
    return %c0_i32, %c0_i32_0 : i32, i32
  }
  func.func @transform_3(%arg0: i32) -> (i32, i32) {
    %c0_i32 = arith.constant 0 : i32
    %c0_i32_0 = arith.constant 0 : i32
    return %arg0, %c0_i32 : i32, i32
  }
}

module attributes {stable_mosaic.version = 11 : i64} {
  func.func @_mlp_head_kernel(%arg0: i32, %arg1: memref<16x2048xbf16, #tpu.memory_space<vmem>>, %arg2: memref<2048x128xbf16, #tpu.memory_space<vmem>>, %arg3: memref<1x128xf32, #tpu.memory_space<vmem>>, %arg4: memref<128x128xbf16, #tpu.memory_space<vmem>>, %arg5: memref<1x128xf32, #tpu.memory_space<vmem>>, %arg6: memref<16x128xf32, #tpu.memory_space<vmem>>) attributes {dimension_semantics = [#tpu.dimension_semantics<parallel>], iteration_bounds = array<i64: 1>, scalar_prefetch = 0 : i64, scratch_operands = 0 : i64, tpu.core_type = #tpu.core_type<tc>, window_params = [{transform_indices = @transform_0, window_bounds = array<i64: 16, 2048>}, {pipeline_mode = #tpu.pipeline_mode<synchronous>, transform_indices = @transform_1, window_bounds = array<i64: 2048, 128>}, {pipeline_mode = #tpu.pipeline_mode<synchronous>, transform_indices = @transform_2, window_bounds = array<i64: 1, 128>}, {pipeline_mode = #tpu.pipeline_mode<synchronous>, transform_indices = @transform_3, window_bounds = array<i64: 128, 128>}, {pipeline_mode = #tpu.pipeline_mode<synchronous>, transform_indices = @transform_4, window_bounds = array<i64: 1, 128>}, {transform_indices = @transform_5, window_bounds = array<i64: 16, 128>}]} {
    %c0 = arith.constant 0 : index
    %c0_0 = arith.constant 0 : index
    %0 = vector.load %arg1[%c0, %c0_0] : memref<16x2048xbf16, #tpu.memory_space<vmem>>, vector<16x2048xbf16>
    %c0_1 = arith.constant 0 : index
    %c0_2 = arith.constant 0 : index
    %1 = vector.load %arg2[%c0_1, %c0_2] : memref<2048x128xbf16, #tpu.memory_space<vmem>>, vector<2048x128xbf16>
    %cst = arith.constant dense<0.000000e+00> : vector<16x128xf32>
    %2 = tpu.matmul %0, %1, %cst {dimension_numbers = #tpu.dot_dimension_numbers<[1], [0], [0], [1], [0, 0, 1, 1], [], []>} : vector<16x2048xbf16>, vector<2048x128xbf16>, vector<16x128xf32> -> vector<16x128xf32>
    %c0_3 = arith.constant 0 : index
    %c0_4 = arith.constant 0 : index
    %3 = vector.load %arg3[%c0_3, %c0_4] : memref<1x128xf32, #tpu.memory_space<vmem>>, vector<1x128xf32>
    %4 = vector.broadcast %3 : vector<1x128xf32> to vector<16x128xf32>
    %5 = arith.addf %2, %4 : vector<16x128xf32>
    %cst_5 = arith.constant 0.000000e+00 : f32
    %6 = vector.broadcast %cst_5 : f32 to vector<16x128xf32>
    %7 = arith.maximumf %5, %6 : vector<16x128xf32>
    %8 = arith.truncf %7 : vector<16x128xf32> to vector<16x128xbf16>
    %c0_6 = arith.constant 0 : index
    %c0_7 = arith.constant 0 : index
    %9 = vector.load %arg4[%c0_6, %c0_7] : memref<128x128xbf16, #tpu.memory_space<vmem>>, vector<128x128xbf16>
    %cst_8 = arith.constant dense<0.000000e+00> : vector<16x128xf32>
    %10 = tpu.matmul %8, %9, %cst_8 {dimension_numbers = #tpu.dot_dimension_numbers<[1], [0], [0], [1], [0, 0, 1, 1], [], []>} : vector<16x128xbf16>, vector<128x128xbf16>, vector<16x128xf32> -> vector<16x128xf32>
    %c0_9 = arith.constant 0 : index
    %c0_10 = arith.constant 0 : index
    %11 = vector.load %arg5[%c0_9, %c0_10] : memref<1x128xf32, #tpu.memory_space<vmem>>, vector<1x128xf32>
    %12 = vector.broadcast %11 : vector<1x128xf32> to vector<16x128xf32>
    %13 = arith.addf %10, %12 : vector<16x128xf32>
    %c0_11 = arith.constant 0 : index
    %c0_12 = arith.constant 0 : index
    %14 = vector.load %arg6[%c0_11, %c0_12] : memref<16x128xf32, #tpu.memory_space<vmem>>, vector<16x128xf32>
    tpu.vector_store %arg6[%c0_11, %c0_12], %13 {strides = array<i32>} : memref<16x128xf32, #tpu.memory_space<vmem>>, vector<16x128xf32>,
    return
  }
  func.func @transform_0(%arg0: i32) -> (i32, i32) {
    %c0_i32 = arith.constant 0 : i32
    %c0_i32_0 = arith.constant 0 : i32
    return %arg0, %c0_i32 : i32, i32
  }
  func.func @transform_1(%arg0: i32) -> (i32, i32) {
    %c0_i32 = arith.constant 0 : i32
    %c0_i32_0 = arith.constant 0 : i32
    %c0_i32_1 = arith.constant 0 : i32
    return %c0_i32, %c0_i32_0 : i32, i32
  }
  func.func @transform_2(%arg0: i32) -> (i32, i32) {
    %c0_i32 = arith.constant 0 : i32
    %c0_i32_0 = arith.constant 0 : i32
    %c0_i32_1 = arith.constant 0 : i32
    return %c0_i32, %c0_i32_0 : i32, i32
  }
  func.func @transform_3(%arg0: i32) -> (i32, i32) {
    %c0_i32 = arith.constant 0 : i32
    %c0_i32_0 = arith.constant 0 : i32
    %c0_i32_1 = arith.constant 0 : i32
    return %c0_i32, %c0_i32_0 : i32, i32
  }
  func.func @transform_4(%arg0: i32) -> (i32, i32) {
    %c0_i32 = arith.constant 0 : i32
    %c0_i32_0 = arith.constant 0 : i32
    %c0_i32_1 = arith.constant 0 : i32
    return %c0_i32, %c0_i32_0 : i32, i32
  }
  func.func @transform_5(%arg0: i32) -> (i32, i32) {
    %c0_i32 = arith.constant 0 : i32
    %c0_i32_0 = arith.constant 0 : i32
    return %arg0, %c0_i32 : i32, i32
  }
}

</mosaic_0001>

<bundles_post_ra>
// kernel: toy_mnist_forward.4
= control target key start
LH: loop header
LB: loop body
LE: loop exit
PB: predicated region body
PF: predicated region fallthrough
CT: control target
= control target key end

     0   :  { %s1224_s12 = smov 0   ;;  %s1497_s0 = inlined_call_operand.vmem [shape: bf16[128,250], index: 0, kind: input, shape index: {}]   ;;  %s1498_s1 = inlined_call_operand.vmem [shape: bf16[250,128], index: 1, kind: input, shape index: {}]   ;;  %s1499_s2 = inlined_call_operand.vmem [shape: f32[1,128], index: 2, kind: input, shape index: {}]   ;;  %s1500_s3 = inlined_call_operand.vmem [shape: bf16[32,128], index: 3, kind: output, shape index: {}]  }
   0x1 LB: > { %s1026_s13 = sadd.s32 4294967295, %s1201_s12   ;;  %p1030_p0 = scmp.ge.s32.totalorder %s1201_s12, 1  ;;  %s1201_s12 = sphi %s1224_s12, %s13_s12  }
   0x2   : > { %p139_p1 = scmp.lt.s32.totalorder %s1201_s12, 3 }
   0x4   : > { %p140_p2 = pnand %p1030_p0, %p139_p1 }
   0x5   : > { %v1167_v0 = vld [vmem:[%s1498_s1 + $0x40] sm:$0xff] (!%p140_p2)   ;;  %s1031_s18 = sshll.u32 (!%p140_p2), %s1026_s13, 3  ;;  %v1169_v2 = vld [vmem:[%s1498_s1 + $0x48] sm:$0xff] (!%p140_p2)   ;;  %v1171_v4 = vld [vmem:[%s1498_s1 + $0x50] sm:$0xff] (!%p140_p2)   ;;  %vm356_vm0 = vcmask (!%p140_p2), 998400   ;;  %vm369_vm1 = vcmask (!%p140_p2), 1044480   ;;  %v458_v26 = vlaneseq (!%p140_p2) }
   0x6   : > { %143 = sbr.rel (%p140_p2) target bundleno = 351 (0x15f), region = 32  ;;  %v1168_v1 = vld [vmem:[%s1498_s1] sm:$0xff] (!%p140_p2)   ;;  %1100 = vmatprep.subr.bf16.mxu0 (!%p140_p2), %v1167_v0  ;;  %1140 = vmatprep.subr.bf16.mxu1 (!%p140_p2), %v1167_v0  ;;  %v1170_v3 = vld [vmem:[%s1498_s1 + $0x8] sm:$0xff] (!%p140_p2)   ;;  %p165_p3 = scmp.lt.s32.totalorder (!%p140_p2), %s1031_s18, 15  ;;  %v1172_v5 = vld [vmem:[%s1498_s1 + $0x10] sm:$0xff] (!%p140_p2)   ;;  %vm622_vm2 = vcmask (!%p140_p2), 1041408  }
   0x7   : > { %1101 = vmatpush3.bf16.msra.mxu0 (!%p140_p2), %v1168_v1  ;;  %1148 = vmatpush3.bf16.msra.mxu1 (!%p140_p2), %v1168_v1  ;;  %v1173_v6 = vld [vmem:[%s1498_s1 + $0x58] sm:$0xff] (!%p140_p2)   ;;  %v1175_v8 = vld [vmem:[%s1498_s1 + $0x60] sm:$0xff] (!%p140_p2)   ;;  %v1177_v10 = vld [vmem:[%s1498_s1 + $0x68] sm:$0xff] (!%p140_p2)   ;;  %v1203_v24 = vmov (!%p140_p2), 1983009808   ;;  %v459_v28 = vshrl.u32 (!%p140_p2), %v458_v26, 7 }
   0x8   : > { %1102 = vmatprep.subr.bf16.mxu0 (!%p140_p2), %v1169_v2  ;;  %1141 = vmatprep.subr.bf16.mxu1 (!%p140_p2), %v1169_v2  ;;  %v1174_v7 = vld [vmem:[%s1498_s1 + $0x18] sm:$0xff] (!%p140_p2)   ;;  %v1176_v9 = vld [vmem:[%s1498_s1 + $0x20] sm:$0xff] (!%p140_p2)   ;;  %v1178_v13 = vld [vmem:[%s1498_s1 + $0x28] sm:$0xff] (!%p140_p2)   ;;  %v456_v25 = vunpack.c.l.s4 (!%p140_p2), %v1203_v24  ;;  %vm943_vm3 = vcmask (!%p140_p2), 1041409   ;;  %vm945_vm4 = vcmask (!%p140_p2), 1042434   ;;  %vm947_vm5 = vcmask (!%p140_p2), 1043459  }
   0x9   : > { %v1179_v14 = vld [vmem:[%s1498_s1 + $0x70] sm:$0xff] (!%p140_p2)   ;;  %v1181_v16 = vld [vmem:[%s1498_s1 + $0x78] sm:$0x1f] (!%p140_p2)   ;;  %v1302_v31 = vld [vmem:[%s1499_s2] ss:$0 sm:$0xff] (!%p140_p2)  ;;  %vm949_vm6 = vcmask (!%p140_p2), 1044484  }
   0xa   : > { %v1180_v15 = vld [vmem:[%s1498_s1 + $0x30] sm:$0xff] (!%p140_p2)   ;;  %v1182_v17 = vld [vmem:[%s1498_s1 + $0x38] sm:$0xff] (!%p140_p2)   ;;  %v457_v27 = vunpack.c.0.s8 (!%p140_p2), %v456_v25  ;;  %s1464_s28 = sshll.u32 (!%p140_p2), %s1026_s13, 1  ;;  %vm951_vm7 = vcmask (!%p140_p2), 1045509   ;;  %vm953_vm8 = vcmask (!%p140_p2), 1046534   ;;  %vm955_vm9 = vcmask (!%p140_p2), 1047559  }
   0xb   : > { %1103 = vmatpush3.bf16.msra.mxu0 (!%p140_p2), %v1170_v3  ;;  %1149 = vmatpush3.bf16.msra.mxu1 (!%p140_p2), %v1170_v3  ;;  %p172_p4 = scmp.lt.s32.totalorder (!%p140_p2), %s1464_s28, 3 }
   0xc   : > { %1104 = vmatprep.subr.bf16.mxu0 (!%p140_p2), %v1171_v4  ;;  %1142 = vmatprep.subr.bf16.mxu1 (!%p140_p2), %v1171_v4  ;;  %v1304_v38 = vsub.s32 (!%p140_p2), %v457_v27, %v459_v28 }
   0xd   : > { %s1502_s18 = smov (!%p165_p3, %s1031_s18), 15  ;;  %s1504_s28 = smov (!%p172_p4, %s1464_s28), 3 }
   0xe   : > { %s1083_s4 = sshll.u32 %s1502_s18, 3  ;;  %s1035_s13 = sshll.u32 %s1504_s28, 2 }
   0xf   : > { %1105 = vmatpush3.bf16.msra.mxu0 %v1172_v5  ;;  %1150 = vmatpush3.bf16.msra.mxu1 %v1172_v5  ;;  %s1264_s9 = scalar_lea.vmem %s1497_s0, %s1083_s4  ;;  %s175_s4 = scalar_lea.vmem %s1500_s3, %s1035_s13 }
  0x10   : > { %1106 = vmatprep.subr.bf16.mxu0 %v1173_v6  ;;  %1143 = vmatprep.subr.bf16.mxu1 %v1173_v6  ;;  %v1185_v11 = vld [vmem:[%s1264_s9 + $0x4] ss:$8 sps:$4 sm:$0xff]   ;;  %v1183_v18 = vld [vmem:[%s1264_s9] ss:$8 sps:$4 sm:$0xff]   ;;  %v1189_v20 = vld [vmem:[%s1264_s9 + $0x14] ss:$8 sps:$4 sm:$0xff]  }
  0x11   : > { %v1188_v12 = vld [vmem:[%s1264_s9 + $0x24] ss:$8 sps:$4 sm:$0xff]   ;;  %1061 = vmatprep.mubr.msk.bf16.mxu0 %vm356_vm0, %v1185_v11  ;;  %v1186_v19 = vld [vmem:[%s1264_s9 + $0x20] ss:$8 sps:$4 sm:$0xff]   ;;  %v1191_v21 = vld [vmem:[%s1264_s9 + $0x34] ss:$8 sps:$4 sm:$0xff]  }
  0x12   : > { %1063 = vmatprep.mubr.msk.bf16.mxu1 %vm356_vm0, %v1188_v12  ;;  %v1193_v22 = vld [vmem:[%s1264_s9 + $0x10] ss:$8 sps:$4 sm:$0xff]  }
  0x13   : > { %1107 = vmatpush3.bf16.msra.mxu0 %v1174_v7  ;;  %1151 = vmatpush3.bf16.msra.mxu1 %v1174_v7  ;;  %v1194_v23 = vld [vmem:[%s1264_s9 + $0x30] ss:$8 sps:$4 sm:$0xff]  }
  0x14   : > { %1108 = vmatprep.subr.bf16.mxu0 %v1175_v8  ;;  %1144 = vmatprep.subr.bf16.mxu1 %v1175_v8 }
  0x17   : > { %1109 = vmatpush3.bf16.msra.mxu0 %v1176_v9  ;;  %1152 = vmatpush3.bf16.msra.mxu1 %v1176_v9 }
  0x18   : > { %1110 = vmatprep.subr.bf16.mxu0 %v1177_v10  ;;  %1145 = vmatprep.subr.bf16.mxu1 %v1177_v10 }
  0x1b   : > { %1111 = vmatpush3.bf16.msra.mxu0 %v1178_v13  ;;  %1153 = vmatpush3.bf16.msra.mxu1 %v1178_v13 }
  0x1c   : > { %1112 = vmatprep.subr.bf16.mxu0 %v1179_v14  ;;  %1146 = vmatprep.subr.bf16.mxu1 %v1179_v14 }
  0x1f   : > { %1113 = vmatpush3.bf16.msra.mxu0 %v1180_v15  ;;  %1154 = vmatpush3.bf16.msra.mxu1 %v1180_v15 }
  0x20   : > { %1156 = vmatprep.subr.msk.bf16.mxu0 %vm369_vm1, %v1181_v16  ;;  %1157 = vmatprep.subr.msk.bf16.mxu1 %vm369_vm1, %v1181_v16 }
  0x23   : > { %1115 = vmatpush3.bf16.msra.mxu0 %v1182_v17  ;;  %1155 = vmatpush3.bf16.msra.mxu1 %v1182_v17 }
  0x26   : > { %406 = vmatmul.mubr.bf16.vlgmr.msra.gmra.mrb[0].mxu0 %v1183_v18  ;;  %422 = vmatmul.mubr.bf16.vlgmr.msra.gmra.mrb[0].mxu1 %v1186_v19 }
  0x27   : > { %1062 = vmatprep.mubr.msk.bf16.mxu0 %vm356_vm0, %v1189_v20  ;;  %1064 = vmatprep.mubr.msk.bf16.mxu1 %vm356_vm0, %v1191_v21 }
  0x2e   : > { %414 = vmatmul.mubr.bf16.gmra.mrb[4].mxu0 %v1193_v22  ;;  %430 = vmatmul.mubr.bf16.gmra.mrb[4].mxu1 %v1194_v23 }
  0xf9   : > { %v1116_v29 = vpop.f32.mrb[0].mxu0  ;;  %v1128_v30 = vpop.f32.mrb[0].mxu1 }
  0xfa   : > { %v1117_v32 = vpop.f32.mrb[1].mxu0  ;;  %v1129_v33 = vpop.f32.mrb[1].mxu1 }
  0xfb   : > { %v1118_v34 = vadd.f32 %v1117_v32, %v1116_v29  ;;  %v1130_v35 = vadd.f32 %v1129_v33, %v1128_v30  ;;  %v1119_v36 = vpop.f32.mrb[2].mxu0  ;;  %v1131_v37 = vpop.f32.mrb[2].mxu1 }
  0xfc   : > { %v1120_v39 = vpop.f32.mrb[3].mxu0  ;;  %v1132_v40 = vpop.f32.mrb[3].mxu1 }
  0xfd   : > { %v408_v41 = vadd.f32 %v1118_v34, %v1302_v31  ;;  %v424_v42 = vadd.f32 %v1130_v35, %v1302_v31  ;;  %v1121_v43 = vadd.f32 %v1120_v39, %v1119_v36  ;;  %v1133_v44 = vadd.f32 %v1132_v40, %v1131_v37 }
  0xff   : > { %v438_v45 = vmax.f32 %v408_v41, 0.0  ;;  %v442_v46 = vmax.f32 %v424_v42, 0.0  ;;  %v411_v47 = vadd.f32 %v1121_v43, %v1302_v31  ;;  %v427_v48 = vadd.f32 %v1133_v44, %v1302_v31 }
 0x101   : > { %v454_v49 = vcombine.high %v438_v45, %v438_v45  ;;  %v461_v50 = vrot.slane %v438_v45, %v1304_v38  ;;  %v522_v51 = vcombine.high %v442_v46, %v442_v46  ;;  %v529_v52 = vrot.slane %v442_v46, %v1304_v38  ;;  %v1312_v53 = vpop.f32.mrb[4].mxu0  ;;  %v1314_v54 = vpop.f32.mrb[4].mxu1 }
 0x102   : > { %v1316_v55 = vmax.f32 %v411_v47, 0.0  ;;  %v1318_v56 = vpop.f32.mrb[5].mxu0  ;;  %v1320_v57 = vpop.f32.mrb[5].mxu1  ;;  %v1330_v3 = vmax.f32 %v427_v48, 0.0 }
 0x103   : > { %v468_v58 = vrot.slane %v454_v49, %v1304_v38  ;;  %v469_v59 = vcombine.high %v461_v50, %v461_v50  ;;  %v623_v60 = vsel %vm622_vm2, %v461_v50, -inf  ;;  %v536_v61 = vrot.slane %v522_v51, %v1304_v38  ;;  %v1325_v62 = vpop.f32.mrb[6].mxu0  ;;  %v1327_v63 = vpop.f32.mrb[6].mxu1 }
 0x104   : > { %v624_v0 = vrot.slane %v623_v60, 4  ;;  %v537_v1 = vcombine.high %v529_v52, %v529_v52  ;;  %v735_v2 = vsel %vm622_vm2, %v529_v52, -inf  ;;  %v1332_v4 = vpop.f32.mrb[7].mxu0  ;;  %v1334_v5 = vpop.f32.mrb[7].mxu1  ;;  %v471_v47 = vcombine.high %v1316_v55, %v1316_v55 }
 0x105   : > { %v470_v6 = vcombine.high %v468_v58, %v468_v58  ;;  %v630_v7 = vsel %vm622_vm2, %v469_v59, -inf  ;;  %v637_v8 = vsel %vm622_vm2, %v468_v58, -inf  ;;  %v538_v9 = vcombine.high %v536_v61, %v536_v61 }
 0x106   : > { %v625_v10 = vmax.f32 %v623_v60, %v624_v0  ;;  %v631_v11 = vrot.slane %v630_v7, 4  ;;  %v638_v12 = vrot.slane %v637_v8, 4  ;;  %v736_v13 = vrot.slane %v735_v2, 4 }
 0x107   : > { %v644_v14 = vsel %vm622_vm2, %v470_v6, -inf  ;;  %v742_v15 = vsel %vm622_vm2, %v537_v1, -inf  ;;  %v749_v16 = vsel %vm622_vm2, %v536_v61, -inf  ;;  %v756_v17 = vsel %vm622_vm2, %v538_v9, -inf }
 0x108   : > { %v626_v18 = vrot.slane %v625_v10, 2  ;;  %v632_v19 = vmax.f32 %v630_v7, %v631_v11  ;;  %v639_v20 = vmax.f32 %v637_v8, %v638_v12  ;;  %v645_v21 = vrot.slane %v644_v14, 4 }
 0x109   : > { %v737_v22 = vmax.f32 %v735_v2, %v736_v13  ;;  %v743_v23 = vrot.slane %v742_v15, 4  ;;  %v750_v24 = vrot.slane %v749_v16, 4  ;;  %v757_v25 = vrot.slane %v756_v17, 4 }
 0x10a   : > { %v627_v26 = vmax.f32 %v625_v10, %v626_v18  ;;  %v633_v27 = vrot.slane %v632_v19, 2  ;;  %v640_v28 = vrot.slane %v639_v20, 2  ;;  %v646_v29 = vmax.f32 %v644_v14, %v645_v21 }
 0x10b   : > { %v738_v30 = vrot.slane %v737_v22, 2  ;;  %v744_v32 = vmax.f32 %v742_v15, %v743_v23  ;;  %v751_v33 = vmax.f32 %v749_v16, %v750_v24  ;;  %v758_v34 = vmax.f32 %v756_v17, %v757_v25 }
 0x10c   : > { %v628_v35 = vrot.slane %v627_v26, 1  ;;  %v634_v36 = vmax.f32 %v632_v19, %v633_v27  ;;  %v641_v37 = vmax.f32 %v639_v20, %v640_v28  ;;  %v647_v39 = vrot.slane %v646_v29, 2 }
 0x10d   : > { %v739_v40 = vmax.f32 %v737_v22, %v738_v30  ;;  %v745_v41 = vrot.slane %v744_v32, 2  ;;  %v752_v42 = vrot.slane %v751_v33, 2  ;;  %v759_v43 = vrot.slane %v758_v34, 2 }
 0x10e   : > { %v635_v44 = vrot.slane %v634_v36, 1  ;;  %v642_v45 = vrot.slane %v641_v37, 1  ;;  %v648_v46 = vmax.f32 %v646_v29, %v647_v39  ;;  %v1346_v52 = vmax.f32 %v627_v26, %v628_v35 }
 0x10f   : > { %v740_v48 = vrot.slane %v739_v40, 1  ;;  %v746_v49 = vmax.f32 %v744_v32, %v745_v41  ;;  %v753_v50 = vmax.f32 %v751_v33, %v752_v42  ;;  %v1344_v51 = vmax.f32 %v758_v34, %v759_v43 }
 0x110   : > { %v1348_v58 = vmax.f32 %v634_v36, %v635_v44  ;;  %v649_v59 = vrot.slane %v648_v46, 1  ;;  %v478_v60 = vrot.slane %v1316_v55, %v1304_v38  ;;  %v1352_v61 = vmax.f32 %v641_v37, %v642_v45 }
 0x111   : > { %v1354_v0 = vmax.f32 %v739_v40, %v740_v48  ;;  %v747_v1 = vrot.slane %v746_v49, 1  ;;  %v754_v2 = vrot.slane %v753_v50, 1  ;;  %v761_v6 = vrot.slane %v1344_v51, 1 }
 0x112   : > { %v485_v7 = vrot.slane %v471_v47, %v1304_v38  ;;  %v486_v8 = vcombine.high %v478_v60, %v478_v60  ;;  %v651_v9 = vsel %vm622_vm2, %v478_v60, -inf  ;;  %v1359_v10 = vmax.f32 %v648_v46, %v649_v59 }
 0x113   : > { %v1361_v11 = vmax.f32 %v746_v49, %v747_v1  ;;  %v1363_v12 = vmax.f32 %v753_v50, %v754_v2  ;;  %v652_v55 = vrot.slane %v651_v9, 4  ;;  %v539_v16 = vcombine.high %v1330_v3, %v1330_v3 }
 0x114   : > { %v487_v13 = vcombine.high %v485_v7, %v485_v7  ;;  %v658_v14 = vsel %vm622_vm2, %v486_v8, -inf  ;;  %v665_v15 = vsel %vm622_vm2, %v485_v7, -inf  ;;  %v546_v20 = vrot.slane %v1330_v3, %v1304_v38 }
 0x115   : > { %v653_v17 = vmax.f32 %v651_v9, %v652_v55  ;;  %v659_v18 = vrot.slane %v658_v14, 4  ;;  %v666_v19 = vrot.slane %v665_v15, 4  ;;  %v553_v22 = vrot.slane %v539_v16, %v1304_v38 }
 0x116   : > { %v672_v21 = vsel %vm622_vm2, %v487_v13, -inf  ;;  %v1375_v23 = vadd.f32 %v1318_v56, %v1312_v53  ;;  %v1379_v24 = vadd.f32 %v1320_v57, %v1314_v54  ;;  %v554_v29 = vcombine.high %v546_v20, %v546_v20 }
 0x117   : > { %v654_v25 = vrot.slane %v653_v17, 2  ;;  %v660_v26 = vmax.f32 %v658_v14, %v659_v18  ;;  %v667_v27 = vmax.f32 %v665_v15, %v666_v19  ;;  %v673_v28 = vrot.slane %v672_v21, 4 }
 0x118   : > { %v555_v30 = vcombine.high %v553_v22, %v553_v22  ;;  %v763_v3 = vsel %vm622_vm2, %v546_v20, -inf  ;;  %v777_v32 = vsel %vm622_vm2, %v553_v22, -inf  ;;  %v770_v56 = vsel %vm622_vm2, %v554_v29, -inf }
 0x119   : > { %v655_v33 = vmax.f32 %v653_v17, %v654_v25  ;;  %v661_v34 = vrot.slane %v660_v26, 2  ;;  %v668_v35 = vrot.slane %v667_v27, 2  ;;  %v674_v36 = vmax.f32 %v672_v21, %v673_v28 }
 0x11a   : > { %v764_v53 = vrot.slane %v763_v3, 4  ;;  %v778_v37 = vrot.slane %v777_v32, 4  ;;  %v784_v54 = vsel %vm622_vm2, %v555_v30, -inf  ;;  %v771_v43 = vrot.slane %v770_v56, 4 }
 0x11b   : > { %v656_v57 = vrot.slane %v655_v33, 1  ;;  %v662_v39 = vmax.f32 %v660_v26, %v661_v34  ;;  %v669_v40 = vmax.f32 %v667_v27, %v668_v35  ;;  %v675_v41 = vrot.slane %v674_v36, 2 }
 0x11c   : > { %v765_v42 = vmax.f32 %v763_v3, %v764_v53  ;;  %v779_v44 = vmax.f32 %v777_v32, %v778_v37  ;;  %v785_v45 = vrot.slane %v784_v54, 4  ;;  %v772_v59 = vmax.f32 %v770_v56, %v771_v43 }
 0x11d   : > { %v657_v46 = vmax.f32 %v655_v33, %v656_v57  ;;  %v663_v47 = vrot.slane %v662_v39, 1  ;;  %v670_v48 = vrot.slane %v669_v40, 1  ;;  %v676_v49 = vmax.f32 %v674_v36, %v675_v41 }
 0x11e   : > { %v766_v50 = vrot.slane %v765_v42, 2  ;;  %v780_v60 = vrot.slane %v779_v44, 2  ;;  %v786_v1 = vmax.f32 %v784_v54, %v785_v45  ;;  %v773_v13 = vrot.slane %v772_v59, 2 }
 0x11f   : > { %v664_v2 = vmax.f32 %v662_v39, %v663_v47  ;;  %v671_v7 = vmax.f32 %v669_v40, %v670_v48  ;;  %v677_v8 = vrot.slane %v676_v49, 1  ;;  %v847_v9 = vmax.f32 %v1346_v52, %v657_v46 }
 0x120   : > { %v767_v55 = vmax.f32 %v765_v42, %v766_v50  ;;  %v781_v14 = vmax.f32 %v779_v44, %v780_v60  ;;  %v787_v15 = vrot.slane %v786_v1, 2  ;;  %v774_v21 = vmax.f32 %v772_v59, %v773_v13 }
 0x121   : > { %v678_v16 = vmax.f32 %v676_v49, %v677_v8  ;;  %v848_v17 = vmax.f32 %v1348_v58, %v664_v2  ;;  %v849_v18 = vmax.f32 %v1352_v61, %v671_v7  ;;  %v1084_v19 = vpack.c.bf16 %v847_v9, %v847_v9 }
 0x122   : > { %v768_v20 = vrot.slane %v767_v55, 1  ;;  %v782_v22 = vrot.slane %v781_v14, 1  ;;  %v788_v25 = vmax.f32 %v786_v1, %v787_v15  ;;  %v762_v26 = vmax.f32 %v1344_v51, %v761_v6 }
 0x123   : > { %v1392_v52 = vmax.f32 %v1359_v10, %v678_v16  ;;  %v1085_v27 = vpack.c.bf16 %v848_v17, %v848_v17  ;;  %v1086_v28 = vpack.c.bf16 %v849_v18, %v849_v18  ;;  %v775_v30 = vrot.slane %v774_v21, 1 }
 0x124   : > { %v769_v29 = vmax.f32 %v767_v55, %v768_v20  ;;  %v783_v3 = vmax.f32 %v781_v14, %v782_v22  ;;  %v789_v58 = vrot.slane %v788_v25, 1  ;;  %v927_v32 = vunpack.c.l.b16 %v1084_v19 }
 0x125   : > { %v928_v61 = vunpack.c.l.b16 %v1085_v27  ;;  %v929_v33 = vunpack.c.l.b16 %v1086_v28  ;;  %v416_v34 = vadd.f32 %v1375_v23, %v1302_v31  ;;  %v776_v35 = vmax.f32 %v774_v21, %v775_v30 }
 0x126   : > { %v790_v36 = vmax.f32 %v788_v25, %v789_v58  ;;  %v855_v53 = vmax.f32 %v1354_v0, %v769_v29  ;;  %v857_v51 = vmax.f32 %v1363_v12, %v783_v3  ;;  %v432_v56 = vadd.f32 %v1379_v24, %v1302_v31 }
 0x127   : > { %v944_v6 = vsel %vm943_vm3, %v928_v61, %v927_v32  ;;  %v440_v10 = vmax.f32 %v416_v34, 0.0  ;;  %v856_v54 = vmax.f32 %v1361_v11, %v776_v35  ;;  %v1087_v12 = vpack.c.bf16 %v1392_v52, %v1392_v52 }
 0x128   : > { %v1402_v37 = vsel %vm945_vm4, %v929_v33, %v944_v6  ;;  %v858_v57 = vmax.f32 %v762_v26, %v790_v36  ;;  %v1092_v39 = vpack.c.bf16 %v855_v53, %v855_v53  ;;  %v1094_v23 = vpack.c.bf16 %v857_v51, %v857_v51 }
 0x129   : > { %v488_v40 = vcombine.high %v440_v10, %v440_v10  ;;  %v495_v41 = vrot.slane %v440_v10, %v1304_v38  ;;  %v444_v0 = vmax.f32 %v432_v56, 0.0  ;;  %v1093_v42 = vpack.c.bf16 %v856_v54, %v856_v54 }
 0x12a   : > { %v1127_v43 = vadd.f32 %v1332_v4, %v1325_v62  ;;  %v937_v24 = vunpack.c.l.b16 %v1094_v23  ;;  %v935_v46 = vunpack.c.l.b16 %v1092_v39  ;;  %v1095_v3 = vpack.c.bf16 %v858_v57, %v858_v57 }
 0x12b   : > { %v502_v44 = vrot.slane %v488_v40, %v1304_v38  ;;  %v503_v45 = vcombine.high %v495_v41, %v495_v41  ;;  %v679_v11 = vsel %vm622_vm2, %v495_v41, -inf  ;;  %v936_v47 = vunpack.c.l.b16 %v1093_v42 }
 0x12c   : > { %v680_v48 = vrot.slane %v679_v11, 4  ;;  %v556_v49 = vcombine.high %v444_v0, %v444_v0  ;;  %v563_v1 = vrot.slane %v444_v0, %v1304_v38  ;;  %v930_v53 = vunpack.c.l.b16 %v1087_v12 }
 0x12d   : > { %v504_v50 = vcombine.high %v502_v44, %v502_v44  ;;  %v686_v59 = vsel %vm622_vm2, %v503_v45, -inf  ;;  %v693_v60 = vsel %vm622_vm2, %v502_v44, -inf  ;;  %v957_v2 = vsel %vm943_vm3, %v936_v47, %v935_v46 }
 0x12e   : > { %v681_v62 = vmax.f32 %v679_v11, %v680_v48  ;;  %v687_v4 = vrot.slane %v686_v59, 4  ;;  %v694_v7 = vrot.slane %v693_v60, 4  ;;  %v958_v8 = vsel %vm945_vm4, %v937_v24, %v957_v2 }
 0x12f   : > { %v700_v9 = vsel %vm622_vm2, %v504_v50, -inf  ;;  %v570_v55 = vrot.slane %v556_v49, %v1304_v38  ;;  %v571_v13 = vcombine.high %v563_v1, %v563_v1  ;;  %v791_v19 = vsel %vm622_vm2, %v563_v1, -inf }
 0x130   : > { %v682_v14 = vrot.slane %v681_v62, 2  ;;  %v688_v15 = vmax.f32 %v686_v59, %v687_v4  ;;  %v695_v16 = vmax.f32 %v693_v60, %v694_v7  ;;  %v701_v17 = vrot.slane %v700_v9, 4 }
 0x131   : > { %v572_v18 = vcombine.high %v570_v55, %v570_v55  ;;  %v798_v20 = vsel %vm622_vm2, %v571_v13, -inf  ;;  %v805_v21 = vsel %vm622_vm2, %v570_v55, -inf  ;;  %v792_v27 = vrot.slane %v791_v19, 4 }
 0x132   : > { %v683_v22 = vmax.f32 %v681_v62, %v682_v14  ;;  %v689_v25 = vrot.slane %v688_v15, 2  ;;  %v696_v26 = vrot.slane %v695_v16, 2  ;;  %v702_v52 = vmax.f32 %v700_v9, %v701_v17 }
 0x133   : > { %v799_v28 = vrot.slane %v798_v20, 4  ;;  %v806_v29 = vrot.slane %v805_v21, 4  ;;  %v812_v30 = vsel %vm622_vm2, %v572_v18, -inf  ;;  %v793_v33 = vmax.f32 %v791_v19, %v792_v27 }
 0x134   : > { %v690_v58 = vmax.f32 %v688_v15, %v689_v25  ;;  %v697_v32 = vmax.f32 %v695_v16, %v696_v26  ;;  %v703_v61 = vrot.slane %v702_v52, 2  ;;  %v813_v36 = vrot.slane %v812_v30, 4 }
 0x135   : > { %v800_v34 = vmax.f32 %v798_v20, %v799_v28  ;;  %v807_v35 = vmax.f32 %v805_v21, %v806_v29  ;;  %v684_v51 = vrot.slane %v683_v22, 1  ;;  %v794_v10 = vrot.slane %v793_v33, 2 }
 0x136   : > { %v704_v6 = vmax.f32 %v702_v52, %v703_v61  ;;  %v814_v39 = vmax.f32 %v812_v30, %v813_v36  ;;  %v938_v23 = vunpack.c.l.b16 %v1095_v3  ;;  %v691_v40 = vrot.slane %v690_v58, 1 }
 0x137   : > { %v801_v56 = vrot.slane %v800_v34, 2  ;;  %v808_v54 = vrot.slane %v807_v35, 2  ;;  %v698_v41 = vrot.slane %v697_v32, 1  ;;  %v419_v57 = vadd.f32 %v1127_v43, %v1302_v31 }
 0x138   : > { %v795_v0 = vmax.f32 %v793_v33, %v794_v10  ;;  %v815_v44 = vrot.slane %v814_v39, 2  ;;  %v1424_v45 = vmax.f32 %v683_v22, %v684_v51  ;;  %v1428_v12 = vsel %vm947_vm5, %v930_v53, %v1402_v37 }
 0x139   : > { %v802_v42 = vmax.f32 %v800_v34, %v801_v56  ;;  %v809_v24 = vmax.f32 %v807_v35, %v808_v54  ;;  %v441_v11 = vmax.f32 %v419_v57, 0.0  ;;  %v1139_v46 = vadd.f32 %v1334_v5, %v1327_v63 }
 0x13a   : > { %v705_v47 = vrot.slane %v704_v6, 1  ;;  %v796_v48 = vrot.slane %v795_v0, 1  ;;  %v816_v50 = vmax.f32 %v814_v39, %v815_v44  ;;  %v1435_v1 = vsel %vm947_vm5, %v938_v23, %v958_v8 }
 0x13b   : > { %v803_v49 = vrot.slane %v802_v42, 1  ;;  %v505_v59 = vcombine.high %v441_v11, %v441_v11  ;;  %v512_v43 = vrot.slane %v441_v11, %v1304_v38  ;;  %v435_v60 = vadd.f32 %v1139_v46, %v1302_v31 }
 0x13c   : > { %v1437_v2 = vmax.f32 %v690_v58, %v691_v40  ;;  %v1439_v62 = vmax.f32 %v697_v32, %v698_v41  ;;  %v810_v37 = vrot.slane %v809_v24, 1  ;;  %v817_v4 = vrot.slane %v816_v50, 1 }
 0x13d   : > { %v519_v63 = vrot.slane %v505_v59, %v1304_v38  ;;  %v520_v5 = vcombine.high %v512_v43, %v512_v43  ;;  %v707_v7 = vsel %vm622_vm2, %v512_v43, -inf  ;;  %v445_v9 = vmax.f32 %v435_v60, 0.0 }
 0x13e   : > { %v1443_v55 = vmax.f32 %v704_v6, %v705_v47  ;;  %v1445_v13 = vmax.f32 %v795_v0, %v796_v48  ;;  %v1447_v31 = vmax.f32 %v802_v42, %v803_v49  ;;  %v708_v8 = vrot.slane %v707_v7, 4 }
 0x13f   : > { %v521_v14 = vcombine.high %v519_v63, %v519_v63  ;;  %v714_v15 = vsel %vm622_vm2, %v520_v5, -inf  ;;  %v721_v16 = vsel %vm622_vm2, %v519_v63, -inf  ;;  %v573_v17 = vcombine.high %v445_v9, %v445_v9 }
 0x140   : > { %v709_v18 = vmax.f32 %v707_v7, %v708_v8  ;;  %v715_v19 = vrot.slane %v714_v15, 4  ;;  %v722_v20 = vrot.slane %v721_v16, 4  ;;  %v580_v21 = vrot.slane %v445_v9, %v1304_v38 }
 0x141   : > { %v1452_v22 = vmax.f32 %v809_v24, %v810_v37  ;;  %v1454_v25 = vmax.f32 %v816_v50, %v817_v4  ;;  %v728_v26 = vsel %vm622_vm2, %v521_v14, -inf  ;;  %v587_v52 = vrot.slane %v573_v17, %v1304_v38 }
 0x142   : > { %v710_v27 = vrot.slane %v709_v18, 2  ;;  %v716_v28 = vmax.f32 %v714_v15, %v715_v19  ;;  %v723_v29 = vmax.f32 %v721_v16, %v722_v20  ;;  %v729_v30 = vrot.slane %v728_v26, 4 }
 0x143   : > { %v588_v3 = vcombine.high %v580_v21, %v580_v21  ;;  %v589_v58 = vcombine.high %v587_v52, %v587_v52  ;;  %v819_v32 = vsel %vm622_vm2, %v580_v21, -inf  ;;  %v833_v61 = vsel %vm622_vm2, %v587_v52, -inf }
 0x144   : > { %v711_v33 = vmax.f32 %v709_v18, %v710_v27  ;;  %v717_v34 = vrot.slane %v716_v28, 2  ;;  %v724_v35 = vrot.slane %v723_v29, 2  ;;  %v730_v36 = vmax.f32 %v728_v26, %v729_v30 }
 0x145   : > { %v820_v53 = vrot.slane %v819_v32, 4  ;;  %v826_v51 = vsel %vm622_vm2, %v588_v3, -inf  ;;  %v834_v38 = vrot.slane %v833_v61, 4  ;;  %v840_v6 = vsel %vm622_vm2, %v589_v58, -inf }
 0x146   : > { %v712_v10 = vrot.slane %v711_v33, 1  ;;  %v718_v56 = vmax.f32 %v716_v28, %v717_v34  ;;  %v725_v54 = vmax.f32 %v723_v29, %v724_v35  ;;  %v731_v39 = vrot.slane %v730_v36, 2 }
 0x147   : > { %v821_v23 = vmax.f32 %v819_v32, %v820_v53  ;;  %v827_v40 = vrot.slane %v826_v51, 4  ;;  %v835_v41 = vmax.f32 %v833_v61, %v834_v38  ;;  %v841_v57 = vrot.slane %v840_v6, 4 }
 0x148   : > { %v713_v0 = vmax.f32 %v711_v33, %v712_v10  ;;  %v719_v42 = vrot.slane %v718_v56, 1  ;;  %v726_v24 = vrot.slane %v725_v54, 1  ;;  %v732_v44 = vmax.f32 %v730_v36, %v731_v39 }
 0x149   : > { %v822_v11 = vrot.slane %v821_v23, 2  ;;  %v828_v46 = vmax.f32 %v826_v51, %v827_v40  ;;  %v836_v47 = vrot.slane %v835_v41, 2  ;;  %v842_v48 = vmax.f32 %v840_v6, %v841_v57 }
 0x14a   : > { %v720_v49 = vmax.f32 %v718_v56, %v719_v42  ;;  %v727_v50 = vmax.f32 %v725_v54, %v726_v24  ;;  %v733_v59 = vrot.slane %v732_v44, 1  ;;  %v851_v43 = vmax.f32 %v1424_v45, %v713_v0 }
 0x14b   : > { %v823_v60 = vmax.f32 %v821_v23, %v822_v11  ;;  %v829_v37 = vrot.slane %v828_v46, 2  ;;  %v837_v4 = vmax.f32 %v835_v41, %v836_v47  ;;  %v843_v63 = vrot.slane %v842_v48, 2 }
 0x14c   : > { %v734_v5 = vmax.f32 %v732_v44, %v733_v59  ;;  %v852_v7 = vmax.f32 %v1437_v2, %v720_v49  ;;  %v853_v9 = vmax.f32 %v1439_v62, %v727_v50  ;;  %v1088_v8 = vpack.c.bf16 %v851_v43, %v851_v43 }
 0x14d   : > { %v824_v14 = vrot.slane %v823_v60, 1  ;;  %v830_v15 = vmax.f32 %v828_v46, %v829_v37  ;;  %v838_v16 = vrot.slane %v837_v4, 1  ;;  %v844_v17 = vmax.f32 %v842_v48, %v843_v63 }
 0x14e   : > { %v854_v45 = vmax.f32 %v1443_v55, %v734_v5  ;;  %v1089_v18 = vpack.c.bf16 %v852_v7, %v852_v7  ;;  %v1090_v19 = vpack.c.bf16 %v853_v9, %v853_v9  ;;  %v931_v20 = vunpack.c.l.b16 %v1088_v8 }
 0x14f   : > { %v825_v21 = vmax.f32 %v823_v60, %v824_v14  ;;  %v831_v26 = vrot.slane %v830_v15, 1  ;;  %v839_v52 = vmax.f32 %v837_v4, %v838_v16  ;;  %v845_v2 = vrot.slane %v844_v17, 1 }
 0x150   : > { %v1091_v27 = vpack.c.bf16 %v854_v45, %v854_v45  ;;  %v932_v62 = vunpack.c.l.b16 %v1089_v18  ;;  %v933_v28 = vunpack.c.l.b16 %v1090_v19  ;;  %v950_v29 = vsel %vm949_vm6, %v931_v20, %v1428_v12 }
 0x151   : > { %v832_v30 = vmax.f32 %v830_v15, %v831_v26  ;;  %v846_v3 = vmax.f32 %v844_v17, %v845_v2  ;;  %v859_v58 = vmax.f32 %v1445_v13, %v825_v21  ;;  %v861_v55 = vmax.f32 %v1452_v22, %v839_v52 }
 0x152   : > { %v934_v32 = vunpack.c.l.b16 %v1091_v27  ;;  %v952_v61 = vsel %vm951_vm7, %v932_v62, %v950_v29 }
 0x153   : > { %v954_v33 = vsel %vm953_vm8, %v933_v28, %v952_v61  ;;  %v860_v34 = vmax.f32 %v1447_v31, %v832_v30  ;;  %v862_v35 = vmax.f32 %v1454_v25, %v846_v3  ;;  %v1096_v36 = vpack.c.bf16 %v859_v58, %v859_v58 }
 0x154   : > { %v956_v12 = vsel %vm955_vm9, %v934_v32, %v954_v33  ;;  %v1098_v53 = vpack.c.bf16 %v861_v55, %v861_v55 }
 0x155   : > { %v964_v13 = vpack.c.b16 %v956_v12, %v956_v12  ;;  %v1097_v51 = vpack.c.bf16 %v860_v34, %v860_v34  ;;  %v1099_v22 = vpack.c.bf16 %v862_v35, %v862_v35  ;;  %v939_v38 = vunpack.c.l.b16 %v1096_v36 }
 0x156   : > { %v941_v6 = vunpack.c.l.b16 %v1098_v53 }
 0x157   : > { %968 = vst [vmem:[%s175_s4] sm:$0xf] %v964_v13  ;;  %v940_v10 = vunpack.c.l.b16 %v1097_v51  ;;  %v942_v56 = vunpack.c.l.b16 %v1099_v22  ;;  %v960_v31 = vsel %vm949_vm6, %v939_v38, %v1435_v1 }
 0x159   : > { %v961_v25 = vsel %vm951_vm7, %v940_v10, %v960_v31 }
 0x15a   : > { %v962_v54 = vsel %vm953_vm8, %v941_v6, %v961_v25 }
 0x15b   : > { %v963_v39 = vsel %vm955_vm9, %v942_v56, %v962_v54 }
 0x15c   : > { %v965_v23 = vpack.c.b16 %v963_v39, %v963_v39 }
 0x15e   : > { %969 = vst [vmem:[%s175_s4 + $0x4] sm:$0xf] %v965_v23 }
 0x15f PF: > { %s13_s12 = sadd.s32 1, %s1201_s12  }
 0x160   : > { %p10_p5 = scmp.ge.s32.totalorder %s13_s12, 4  }
 0x162   :  { %12 = sbr.rel (!%p10_p5) target bundleno = 1 (0x1), region = 62 }

// kernel: toy_mnist_forward.3
= control target key start
LH: loop header
LB: loop body
LE: loop exit
PB: predicated region body
PF: predicated region fallthrough
CT: control target
= control target key end

     0   :  { %s6239_s12 = smov 0   ;;  %s7929_s0 = inlined_call_operand.vmem [shape: bf16[1152,25], index: 0, kind: input, shape index: {}]   ;;  %s7930_s1 = inlined_call_operand.vmem [shape: bf16[25,128], index: 1, kind: input, shape index: {}]   ;;  %s7931_s2 = inlined_call_operand.vmem [shape: f32[1,128], index: 2, kind: input, shape index: {}]   ;;  %s7932_s3 = inlined_call_operand.vmem [shape: bf16[288,128], index: 3, kind: output, shape index: {}]  }
   0x1 LB: > { %s5666_s13 = sadd.s32 4294967295, %s6215_s12   ;;  %p5670_p0 = scmp.ge.s32.totalorder %s6215_s12, 1  ;;  %s6215_s12 = sphi %s6239_s12, %s13_s12  }
   0x2   : > { %p138_p1 = scmp.lt.s32.totalorder %s6215_s12, 3 }
   0x4   : > { %p139_p2 = pnand %p5670_p0, %p138_p1 }
   0x6   : > { %142 = sbr.rel (%p139_p2) target bundleno = 1021 (0x3fd), region = 32 }
   0xd   : > { %v6166_v0 = vld [vmem:[%s7930_s1] sm:$0xff]   ;;  %vm558_vm0 = vcmask 1043456   ;;  %v6167_v1 = vld [vmem:[%s7930_s1 + $0x8] sm:$0x1f]   ;;  %vm559_vm1 = vcmask 1044480   ;;  %s162_s18 = smul.u32 72, %s5666_s13  ;;  %v1034_v44 = vlaneseq }
   0xe   : > { %6076 = vmatprep.subr.bf16.mxu0 %v6166_v0  ;;  %6152 = vmatprep.subr.bf16.mxu1 %v6166_v0  ;;  %v6217_v2 = vmov 65535   ;;  %vm449_vm2 = vcmask 203776   ;;  %v6218_v42 = vmov 1983009808   ;;  %v6335_v47 = vld [vmem:[%s7931_s2] ss:$0 sm:$0xff] }
   0xf   : > { %6077 = vmatpush3.bf16.msra.mxu0 %v6166_v0  ;;  %6154 = vmatpush3.bf16.msra.mxu1 %v6166_v0  ;;  %v560_v3 = vsel %vm558_vm0, 4294967295, %v6217_v2  ;;  %p163_p3 = scmp.lt.s32.totalorder %s162_s18, 143  ;;  %v1032_v43 = vunpack.c.l.s4 %v6218_v42  ;;  %v1035_v46 = vshrl.u32 %v1034_v44, 7  ;;  %vm2542_vm3 = vcmask 1041408   ;;  %s6604_s25 = smul.u32 18, %s5666_s13 }
  0x10   : > { %v561_v4 = vsel %vm559_vm1, %v560_v3, 0  ;;  %vm5423_vm4 = vcmask 1041409   ;;  %vm5425_vm5 = vcmask 1042434   ;;  %vm5427_vm6 = vcmask 1043459  }
  0x11   : > { %v563_v5 = vand.u32 %v6167_v1, %v561_v4  ;;  %s7955_s18 = smov (!%p163_p3, %s162_s18), 143  ;;  %v1033_v45 = vunpack.c.0.s8 %v1032_v43  ;;  %vm5429_vm7 = vcmask 1044484   ;;  %vm5431_vm8 = vcmask 1045509   ;;  %p169_p4 = scmp.lt.s32.totalorder %s6604_s25, 35 }
  0x12   : > { %s5671_s19 = sshll.u32 %s7955_s18, 2  ;;  %vm5433_vm9 = vcmask 1046534   ;;  %vm5435_vm10 = vcmask 1047559  }
  0x13   : > { %6078 = vmatprep.subr.bf16.mxu0 %v563_v5  ;;  %6153 = vmatprep.subr.bf16.mxu1 %v563_v5  ;;  %s6258_s22 = scalar_lea.vmem %s7929_s0, %s5671_s19  ;;  %v6338_v50 = vsub.s32 %v1033_v45, %v1035_v46  ;;  %s7957_s25 = smov (!%p169_p4, %s6604_s25), 35 }
  0x14   : > { %6079 = vmatpush3.bf16.msra.mxu0 %v563_v5  ;;  %6155 = vmatpush3.bf16.msra.mxu1 %v563_v5  ;;  %v6168_v6 = vld [vmem:[%s6258_s22] sm:$0xff]   ;;  %v6169_v7 = vld [vmem:[%s6258_s22 + $0x90] sm:$0xff]   ;;  %v6170_v8 = vld [vmem:[%s6258_s22 + $0x8] sm:$0xff]   ;;  %s5672_s26 = sshll.u32 %s7957_s25, 2 }
  0x15   : > { %6080 = vmatprep.mubr.msk.bf16.mxu0 %vm449_vm2, %v6168_v6  ;;  %6116 = vmatprep.mubr.msk.bf16.mxu1 %vm449_vm2, %v6169_v7  ;;  %v6171_v9 = vld [vmem:[%s6258_s22 + $0x98] sm:$0xff]   ;;  %v6172_v10 = vld [vmem:[%s6258_s22 + $0x10] sm:$0xff]   ;;  %v6173_v11 = vld [vmem:[%s6258_s22 + $0xa0] sm:$0xff]   ;;  %s6637_s29 = scalar_lea.vmem %s7932_s3, %s5672_s26 }
  0x16   : > { %v6174_v12 = vld [vmem:[%s6258_s22 + $0x18] sm:$0xff]   ;;  %v6175_v13 = vld [vmem:[%s6258_s22 + $0xa8] sm:$0xff]   ;;  %v6176_v14 = vld [vmem:[%s6258_s22 + $0x20] sm:$0xff]  }
  0x17   : > { %6081 = vmatmul.mubr.msk.bf16.vlgmr.msra.gmra.mrb[0].mxu0 %vm449_vm2, %v6170_v8  ;;  %6117 = vmatmul.mubr.msk.bf16.vlgmr.msra.gmra.mrb[0].mxu1 %vm449_vm2, %v6171_v9  ;;  %v6177_v15 = vld [vmem:[%s6258_s22 + $0xb0] sm:$0xff]   ;;  %v6178_v16 = vld [vmem:[%s6258_s22 + $0x28] sm:$0xff]   ;;  %v6179_v17 = vld [vmem:[%s6258_s22 + $0xb8] sm:$0xff]  }
  0x18   : > { %6084 = vmatprep.mubr.msk.bf16.mxu0 %vm449_vm2, %v6172_v10  ;;  %6120 = vmatprep.mubr.msk.bf16.mxu1 %vm449_vm2, %v6173_v11  ;;  %v6180_v18 = vld [vmem:[%s6258_s22 + $0x30] sm:$0xff]   ;;  %v6181_v19 = vld [vmem:[%s6258_s22 + $0xc0] sm:$0xff]   ;;  %v6182_v20 = vld [vmem:[%s6258_s22 + $0x38] sm:$0xff]  }
  0x19   : > { %v6183_v21 = vld [vmem:[%s6258_s22 + $0xc8] sm:$0xff]   ;;  %v6184_v22 = vld [vmem:[%s6258_s22 + $0x40] sm:$0xff]   ;;  %v6185_v23 = vld [vmem:[%s6258_s22 + $0xd0] sm:$0xff]  }
  0x1a   : > { %v6186_v24 = vld [vmem:[%s6258_s22 + $0x48] sm:$0xff]   ;;  %v6187_v25 = vld [vmem:[%s6258_s22 + $0xd8] sm:$0xff]   ;;  %v6188_v26 = vld [vmem:[%s6258_s22 + $0x50] sm:$0xff]  }
  0x1b   : > { %v6189_v27 = vld [vmem:[%s6258_s22 + $0xe0] sm:$0xff]   ;;  %v6190_v28 = vld [vmem:[%s6258_s22 + $0x58] sm:$0xff]   ;;  %v6191_v29 = vld [vmem:[%s6258_s22 + $0xe8] sm:$0xff]  }
  0x1c   : > { %v6192_v30 = vld [vmem:[%s6258_s22 + $0x60] sm:$0xff]   ;;  %v6193_v31 = vld [vmem:[%s6258_s22 + $0xf0] sm:$0xff]   ;;  %v6194_v32 = vld [vmem:[%s6258_s22 + $0x68] sm:$0xff]  }
  0x1d   : > { %v6195_v33 = vld [vmem:[%s6258_s22 + $0xf8] sm:$0xff]   ;;  %v6196_v34 = vld [vmem:[%s6258_s22 + $0x70] sm:$0xff]   ;;  %v6197_v35 = vld [vmem:[%s6258_s22 + $0x100] sm:$0xff]  }
  0x1e   : > { %v6198_v36 = vld [vmem:[%s6258_s22 + $0x78] sm:$0xff]   ;;  %v6199_v37 = vld [vmem:[%s6258_s22 + $0x108] sm:$0xff]   ;;  %v6200_v38 = vld [vmem:[%s6258_s22 + $0x80] sm:$0xff]  }
  0x1f   : > { %6085 = vmatmul.mubr.msk.bf16.gmra.mrb[4].mxu0 %vm449_vm2, %v6174_v12  ;;  %6121 = vmatmul.mubr.msk.bf16.gmra.mrb[4].mxu1 %vm449_vm2, %v6175_v13  ;;  %v6201_v39 = vld [vmem:[%s6258_s22 + $0x110] sm:$0xff]   ;;  %v6202_v40 = vld [vmem:[%s6258_s22 + $0x88] sm:$0xff]   ;;  %v6203_v41 = vld [vmem:[%s6258_s22 + $0x118] sm:$0xff]  }
  0x20   : > { %6088 = vmatprep.mubr.msk.bf16.mxu0 %vm449_vm2, %v6176_v14  ;;  %6124 = vmatprep.mubr.msk.bf16.mxu1 %vm449_vm2, %v6177_v15 }
  0x27   : > { %6089 = vmatmul.mubr.msk.bf16.gmra.mrb[8].mxu0 %vm449_vm2, %v6178_v16  ;;  %6125 = vmatmul.mubr.msk.bf16.gmra.mrb[8].mxu1 %vm449_vm2, %v6179_v17 }
  0x28   : > { %6092 = vmatprep.mubr.msk.bf16.mxu0 %vm449_vm2, %v6180_v18  ;;  %6128 = vmatprep.mubr.msk.bf16.mxu1 %vm449_vm2, %v6181_v19 }
  0x2f   : > { %6093 = vmatmul.mubr.msk.bf16.gmra.mrb[12].mxu0 %vm449_vm2, %v6182_v20  ;;  %6129 = vmatmul.mubr.msk.bf16.gmra.mrb[12].mxu1 %vm449_vm2, %v6183_v21 }
  0x30   : > { %6096 = vmatprep.mubr.msk.bf16.mxu0 %vm449_vm2, %v6184_v22  ;;  %6132 = vmatprep.mubr.msk.bf16.mxu1 %vm449_vm2, %v6185_v23 }
  0x37   : > { %6097 = vmatmul.mubr.msk.bf16.gmra.mrb[16].mxu0 %vm449_vm2, %v6186_v24  ;;  %6133 = vmatmul.mubr.msk.bf16.gmra.mrb[16].mxu1 %vm449_vm2, %v6187_v25 }
  0x38   : > { %6100 = vmatprep.mubr.msk.bf16.mxu0 %vm449_vm2, %v6188_v26  ;;  %6136 = vmatprep.mubr.msk.bf16.mxu1 %vm449_vm2, %v6189_v27 }
  0x3f   : > { %6101 = vmatmul.mubr.msk.bf16.gmra.mrb[20].mxu0 %vm449_vm2, %v6190_v28  ;;  %6137 = vmatmul.mubr.msk.bf16.gmra.mrb[20].mxu1 %vm449_vm2, %v6191_v29 }
  0x40   : > { %6104 = vmatprep.mubr.msk.bf16.mxu0 %vm449_vm2, %v6192_v30  ;;  %6140 = vmatprep.mubr.msk.bf16.mxu1 %vm449_vm2, %v6193_v31 }
  0x47   : > { %6105 = vmatmul.mubr.msk.bf16.gmra.mrb[24].mxu0 %vm449_vm2, %v6194_v32  ;;  %6141 = vmatmul.mubr.msk.bf16.gmra.mrb[24].mxu1 %vm449_vm2, %v6195_v33 }
  0x48   : > { %6108 = vmatprep.mubr.msk.bf16.mxu0 %vm449_vm2, %v6196_v34  ;;  %6144 = vmatprep.mubr.msk.bf16.mxu1 %vm449_vm2, %v6197_v35 }
  0x4f   : > { %6109 = vmatmul.mubr.msk.bf16.gmra.mrb[28].mxu0 %vm449_vm2, %v6198_v36  ;;  %6145 = vmatmul.mubr.msk.bf16.gmra.mrb[28].mxu1 %vm449_vm2, %v6199_v37 }
  0x50   : > { %6112 = vmatprep.mubr.msk.bf16.mxu0 %vm449_vm2, %v6200_v38  ;;  %6148 = vmatprep.mubr.msk.bf16.mxu1 %vm449_vm2, %v6201_v39 }
  0x57   : > { %6113 = vmatmul.mubr.msk.bf16.gmra.mrb[32].mxu0 %vm449_vm2, %v6202_v40  ;;  %6149 = vmatmul.mubr.msk.bf16.gmra.mrb[32].mxu1 %vm449_vm2, %v6203_v41 }
  0xea   : > { %v6082_v48 = vpop.f32.mrb[0].mxu0  ;;  %v6118_v51 = vpop.f32.mrb[0].mxu1 }
  0xeb   : > { %v608_v49 = vadd.f32 %v6082_v48, %v6335_v47  ;;  %v599_v52 = vpop.f32.mrb[1].mxu0  ;;  %v752_v53 = vadd.f32 %v6118_v51, %v6335_v47  ;;  %v743_v55 = vpop.f32.mrb[1].mxu1 }
  0xec   : > { %v600_v54 = vadd.f32 %v6335_v47, %v599_v52  ;;  %v6083_v56 = vpop.f32.mrb[2].mxu0  ;;  %v744_v58 = vadd.f32 %v6335_v47, %v743_v55  ;;  %v6119_v60 = vpop.f32.mrb[2].mxu1 }
  0xed   : > { %v888_v57 = vmax.f32 %v608_v49, 0.0  ;;  %v611_v59 = vadd.f32 %v6083_v56, %v6335_v47  ;;  %v602_v61 = vpop.f32.mrb[3].mxu0  ;;  %v924_v62 = vmax.f32 %v752_v53, 0.0  ;;  %v6347_v0 = vadd.f32 %v6119_v60, %v6335_v47  ;;  %v6352_v2 = vpop.f32.mrb[3].mxu1 }
  0xee   : > { %v6344_v63 = vmax.f32 %v600_v54, 0.0  ;;  %v6350_v1 = vadd.f32 %v6335_v47, %v602_v61  ;;  %v6355_v5 = vmax.f32 %v744_v58, 0.0 }
  0xef   : > { %v1064_v3 = vcombine.high %v888_v57, %v888_v57  ;;  %v1071_v4 = vrot.slane %v888_v57, %v6338_v50  ;;  %v6357_v6 = vmax.f32 %v611_v59, 0.0  ;;  %v1676_v7 = vcombine.high %v924_v62, %v924_v62 }
  0xf0   : > { %v1683_v8 = vrot.slane %v924_v62, %v6338_v50  ;;  %v1030_v9 = vcombine.high %v6344_v63, %v6344_v63  ;;  %v6364_v10 = vrot.slane %v6344_v63, %v6338_v50  ;;  %v1642_v14 = vcombine.high %v6355_v5, %v6355_v5 }
  0xf1   : > { %v1078_v11 = vrot.slane %v1064_v3, %v6338_v50  ;;  %v1079_v12 = vcombine.high %v1071_v4, %v1071_v4  ;;  %v2599_v13 = vsel %vm2542_vm3, %v1071_v4, -inf  ;;  %v1690_v16 = vrot.slane %v1676_v7, %v6338_v50 }
  0xf2   : > { %v2600_v15 = vrot.slane %v2599_v13, 4  ;;  %v1691_v17 = vcombine.high %v1683_v8, %v1683_v8  ;;  %v3607_v18 = vsel %vm2542_vm3, %v1683_v8, -inf  ;;  %v6372_v19 = vpop.f32.mrb[4].mxu0  ;;  %v6376_v24 = vpop.f32.mrb[4].mxu1 }
  0xf3   : > { %v1080_v20 = vcombine.high %v1078_v11, %v1078_v11  ;;  %v2606_v21 = vsel %vm2542_vm3, %v1079_v12, -inf  ;;  %v2613_v22 = vsel %vm2542_vm3, %v1078_v11, -inf  ;;  %v3608_v23 = vrot.slane %v3607_v18, 4  ;;  %v6378_v25 = vpop.f32.mrb[5].mxu0  ;;  %v6380_v30 = vpop.f32.mrb[5].mxu1 }
  0xf4   : > { %v2601_v26 = vmax.f32 %v2599_v13, %v2600_v15  ;;  %v2607_v27 = vrot.slane %v2606_v21, 4  ;;  %v2614_v28 = vrot.slane %v2613_v22, 4  ;;  %v1692_v29 = vcombine.high %v1690_v16, %v1690_v16  ;;  %v6382_v31 = vpop.f32.mrb[6].mxu0  ;;  %v6387_v36 = vpop.f32.mrb[6].mxu1 }
  0xf5   : > { %v2620_v32 = vsel %vm2542_vm3, %v1080_v20, -inf  ;;  %v3609_v33 = vmax.f32 %v3607_v18, %v3608_v23  ;;  %v3614_v34 = vsel %vm2542_vm3, %v1691_v17, -inf  ;;  %v3621_v35 = vsel %vm2542_vm3, %v1690_v16, -inf  ;;  %v6389_v37 = vpop.f32.mrb[7].mxu0  ;;  %v6391_v42 = vpop.f32.mrb[7].mxu1 }
  0xf6   : > { %v2602_v38 = vrot.slane %v2601_v26, 2  ;;  %v2608_v39 = vmax.f32 %v2606_v21, %v2607_v27  ;;  %v2615_v40 = vmax.f32 %v2613_v22, %v2614_v28  ;;  %v2621_v41 = vrot.slane %v2620_v32, 4 }
  0xf7   : > { %v3610_v43 = vrot.slane %v3609_v33, 2  ;;  %v3615_v44 = vrot.slane %v3614_v34, 4  ;;  %v3622_v45 = vrot.slane %v3621_v35, 4  ;;  %v3628_v46 = vsel %vm2542_vm3, %v1692_v29, -inf }
  0xf8   : > { %v2603_v48 = vmax.f32 %v2601_v26, %v2602_v38  ;;  %v2609_v49 = vrot.slane %v2608_v39, 2  ;;  %v2616_v51 = vrot.slane %v2615_v40, 2  ;;  %v2622_v52 = vmax.f32 %v2620_v32, %v2621_v41 }
  0xf9   : > { %v3611_v53 = vmax.f32 %v3609_v33, %v3610_v43  ;;  %v3616_v54 = vmax.f32 %v3614_v34, %v3615_v44  ;;  %v3623_v55 = vmax.f32 %v3621_v35, %v3622_v45  ;;  %v3629_v56 = vrot.slane %v3628_v46, 4 }
  0xfa   : > { %v2604_v57 = vrot.slane %v2603_v48, 1  ;;  %v2610_v58 = vmax.f32 %v2608_v39, %v2609_v49  ;;  %v2617_v59 = vmax.f32 %v2615_v40, %v2616_v51  ;;  %v2623_v60 = vrot.slane %v2622_v52, 2  ;;  %v6396_v13 = vpop.f32.mrb[8].mxu0 }
  0xfb   : > { %v3612_v61 = vrot.slane %v3611_v53, 1  ;;  %v3617_v62 = vrot.slane %v3616_v54, 2  ;;  %v3624_v3 = vrot.slane %v3623_v55, 2  ;;  %v3630_v4 = vmax.f32 %v3628_v46, %v3629_v56 }
  0xfc   : > { %v6394_v7 = vmax.f32 %v2603_v48, %v2604_v57  ;;  %v2611_v8 = vrot.slane %v2610_v58, 1  ;;  %v2618_v11 = vrot.slane %v2617_v59, 1  ;;  %v2624_v12 = vmax.f32 %v2622_v52, %v2623_v60 }
  0xfd   : > { %v6398_v15 = vmax.f32 %v3611_v53, %v3612_v61  ;;  %v3618_v16 = vmax.f32 %v3616_v54, %v3617_v62  ;;  %v3625_v17 = vmax.f32 %v3623_v55, %v3624_v3  ;;  %v3631_v18 = vrot.slane %v3630_v4, 2 }
  0xfe   : > { %v6400_v20 = vmax.f32 %v2610_v58, %v2611_v8  ;;  %v6402_v21 = vmax.f32 %v2617_v59, %v2618_v11  ;;  %v2625_v22 = vrot.slane %v2624_v12, 1  ;;  %v1044_v23 = vrot.slane %v1030_v9, %v6338_v50 }
  0xff   : > { %v3619_v26 = vrot.slane %v3618_v16, 1  ;;  %v3626_v27 = vrot.slane %v3625_v17, 1  ;;  %v3632_v28 = vmax.f32 %v3630_v4, %v3631_v18  ;;  %v1045_v29 = vcombine.high %v6364_v10, %v6364_v10 }
 0x100   : > { %v6410_v32 = vmax.f32 %v2624_v12, %v2625_v22  ;;  %v1046_v33 = vcombine.high %v1044_v23, %v1044_v23  ;;  %v2543_v34 = vsel %vm2542_vm3, %v6364_v10, -inf  ;;  %v2557_v35 = vsel %vm2542_vm3, %v1044_v23, -inf }
 0x101   : > { %v6415_v38 = vmax.f32 %v3618_v16, %v3619_v26  ;;  %v6417_v39 = vmax.f32 %v3625_v17, %v3626_v27  ;;  %v3633_v63 = vrot.slane %v3632_v28, 1  ;;  %v2544_v9 = vrot.slane %v2543_v34, 4  ;;  %v6433_v16 = vpop.f32.mrb[8].mxu1 }
 0x102   : > { %v2550_v40 = vsel %vm2542_vm3, %v1045_v29, -inf  ;;  %v2558_v41 = vrot.slane %v2557_v35, 4  ;;  %v2564_v43 = vsel %vm2542_vm3, %v1046_v33, -inf  ;;  %v1649_v44 = vrot.slane %v6355_v5, %v6338_v50 }
 0x103   : > { %v6423_v45 = vmax.f32 %v3632_v28, %v3633_v63  ;;  %v2545_v46 = vmax.f32 %v2543_v34, %v2544_v9  ;;  %v2551_v10 = vrot.slane %v2550_v40, 4  ;;  %v2565_v48 = vrot.slane %v2564_v43, 4 }
 0x104   : > { %v2559_v49 = vmax.f32 %v2557_v35, %v2558_v41  ;;  %v1656_v51 = vrot.slane %v1642_v14, %v6338_v50  ;;  %v1657_v52 = vcombine.high %v1649_v44, %v1649_v44  ;;  %v3551_v53 = vsel %vm2542_vm3, %v1649_v44, -inf }
 0x105   : > { %v2546_v54 = vrot.slane %v2545_v46, 2  ;;  %v2552_v55 = vmax.f32 %v2550_v40, %v2551_v10  ;;  %v2566_v56 = vmax.f32 %v2564_v43, %v2565_v48  ;;  %v3552_v57 = vrot.slane %v3551_v53, 4 }
 0x106   : > { %v2560_v58 = vrot.slane %v2559_v49, 2  ;;  %v1658_v59 = vcombine.high %v1656_v51, %v1656_v51  ;;  %v3558_v60 = vsel %vm2542_vm3, %v1657_v52, -inf  ;;  %v3565_v61 = vsel %vm2542_vm3, %v1656_v51, -inf }
 0x107   : > { %v2547_v62 = vmax.f32 %v2545_v46, %v2546_v54  ;;  %v2553_v3 = vrot.slane %v2552_v55, 2  ;;  %v2567_v4 = vrot.slane %v2566_v56, 2  ;;  %v3553_v8 = vmax.f32 %v3551_v53, %v3552_v57 }
 0x108   : > { %v2561_v11 = vmax.f32 %v2559_v49, %v2560_v58  ;;  %v3559_v5 = vrot.slane %v3558_v60, 4  ;;  %v3566_v14 = vrot.slane %v3565_v61, 4  ;;  %v3572_v12 = vsel %vm2542_vm3, %v1658_v59, -inf }
 0x109   : > { %v2548_v17 = vrot.slane %v2547_v62, 1  ;;  %v2554_v18 = vmax.f32 %v2552_v55, %v2553_v3  ;;  %v2568_v22 = vmax.f32 %v2566_v56, %v2567_v4  ;;  %v3554_v23 = vrot.slane %v3553_v8, 2 }
 0x10a   : > { %v2562_v26 = vrot.slane %v2561_v11, 1  ;;  %v3560_v27 = vmax.f32 %v3558_v60, %v3559_v5  ;;  %v3567_v28 = vmax.f32 %v3565_v61, %v3566_v14  ;;  %v3573_v29 = vrot.slane %v3572_v12, 4 }
 0x10b   : > { %v6435_v33 = vmax.f32 %v2547_v62, %v2548_v17  ;;  %v2555_v34 = vrot.slane %v2554_v18, 1  ;;  %v2569_v35 = vrot.slane %v2568_v22, 1  ;;  %v3555_v63 = vmax.f32 %v3553_v8, %v3554_v23 }
 0x10c   : > { %v6437_v9 = vmax.f32 %v2561_v11, %v2562_v26  ;;  %v3561_v40 = vrot.slane %v3560_v27, 2  ;;  %v3568_v41 = vrot.slane %v3567_v28, 2  ;;  %v3574_v43 = vmax.f32 %v3572_v12, %v3573_v29 }
 0x10d   : > { %v6439_v44 = vmax.f32 %v2554_v18, %v2555_v34  ;;  %v6441_v46 = vmax.f32 %v2568_v22, %v2569_v35  ;;  %v3556_v10 = vrot.slane %v3555_v63, 1  ;;  %v1081_v48 = vcombine.high %v6357_v6, %v6357_v6 }
 0x10e   : > { %v3562_v49 = vmax.f32 %v3560_v27, %v3561_v40  ;;  %v3569_v51 = vmax.f32 %v3567_v28, %v3568_v41  ;;  %v3575_v52 = vrot.slane %v3574_v43, 2  ;;  %v1088_v53 = vrot.slane %v6357_v6, %v6338_v50  ;;  %v6465_v27 = vpop.f32.mrb[9].mxu0 }
 0x10f   : > { %v6447_v54 = vmax.f32 %v3555_v63, %v3556_v10  ;;  %v1095_v55 = vrot.slane %v1081_v48, %v6338_v50  ;;  %v925_v56 = vmax.f32 %v6347_v0, 0.0  ;;  %v6452_v57 = vmax.f32 %v6350_v1, 0.0 }
 0x110   : > { %v3563_v58 = vrot.slane %v3562_v49, 1  ;;  %v3570_v59 = vrot.slane %v3569_v51, 1  ;;  %v3576_v60 = vmax.f32 %v3574_v43, %v3575_v52  ;;  %v1096_v61 = vcombine.high %v1088_v53, %v1088_v53 }
 0x111   : > { %v1097_v62 = vcombine.high %v1095_v55, %v1095_v55  ;;  %v2627_v3 = vsel %vm2542_vm3, %v1088_v53, -inf  ;;  %v2641_v4 = vsel %vm2542_vm3, %v1095_v55, -inf  ;;  %v1693_v8 = vcombine.high %v925_v56, %v925_v56 }
 0x112   : > { %v6456_v6 = vmax.f32 %v3562_v49, %v3563_v58  ;;  %v6458_v11 = vmax.f32 %v3569_v51, %v3570_v59  ;;  %v3577_v5 = vrot.slane %v3576_v60, 1  ;;  %v2628_v14 = vrot.slane %v2627_v3, 4 }
 0x113   : > { %v2634_v0 = vsel %vm2542_vm3, %v1096_v61, -inf  ;;  %v2642_v1 = vrot.slane %v2641_v4, 4  ;;  %v2648_v12 = vsel %vm2542_vm3, %v1097_v62, -inf  ;;  %v1700_v17 = vrot.slane %v925_v56, %v6338_v50 }
 0x114   : > { %v6463_v18 = vmax.f32 %v3576_v60, %v3577_v5  ;;  %v2629_v22 = vmax.f32 %v2627_v3, %v2628_v14  ;;  %v2635_v23 = vrot.slane %v2634_v0, 4  ;;  %v2649_v26 = vrot.slane %v2648_v12, 4 }
 0x115   : > { %v2643_v28 = vmax.f32 %v2641_v4, %v2642_v1  ;;  %v1707_v29 = vrot.slane %v1693_v8, %v6338_v50  ;;  %v1708_v34 = vcombine.high %v1700_v17, %v1700_v17  ;;  %v3635_v35 = vsel %vm2542_vm3, %v1700_v17, -inf }
 0x116   : > { %v2630_v63 = vrot.slane %v2629_v22, 2  ;;  %v2636_v40 = vmax.f32 %v2634_v0, %v2635_v23  ;;  %v2650_v41 = vmax.f32 %v2648_v12, %v2649_v26  ;;  %v3636_v43 = vrot.slane %v3635_v35, 4 }
 0x117   : > { %v2644_v10 = vrot.slane %v2643_v28, 2  ;;  %v1709_v48 = vcombine.high %v1707_v29, %v1707_v29  ;;  %v3642_v49 = vsel %vm2542_vm3, %v1708_v34, -inf  ;;  %v3649_v51 = vsel %vm2542_vm3, %v1707_v29, -inf }
 0x118   : > { %v2631_v52 = vmax.f32 %v2629_v22, %v2630_v63  ;;  %v2637_v53 = vrot.slane %v2636_v40, 2  ;;  %v2651_v55 = vrot.slane %v2650_v41, 2  ;;  %v3637_v56 = vmax.f32 %v3635_v35, %v3636_v43 }
 0x119   : > { %v2645_v58 = vmax.f32 %v2643_v28, %v2644_v10  ;;  %v3643_v59 = vrot.slane %v3642_v49, 4  ;;  %v3650_v60 = vrot.slane %v3649_v51, 4  ;;  %v3656_v61 = vsel %vm2542_vm3, %v1709_v48, -inf }
 0x11a   : > { %v2632_v62 = vrot.slane %v2631_v52, 1  ;;  %v2638_v3 = vmax.f32 %v2636_v40, %v2637_v53  ;;  %v2652_v4 = vmax.f32 %v2650_v41, %v2651_v55  ;;  %v3638_v8 = vrot.slane %v3637_v56, 2 }
 0x11b   : > { %v2646_v5 = vrot.slane %v2645_v58, 1  ;;  %v3644_v14 = vmax.f32 %v3642_v49, %v3643_v59  ;;  %v3651_v0 = vmax.f32 %v3649_v51, %v3650_v60  ;;  %v3657_v1 = vrot.slane %v3656_v61, 4  ;;  %v6474_v51 = vpop.f32.mrb[9].mxu1 }
 0x11c   : > { %v2633_v12 = vmax.f32 %v2631_v52, %v2632_v62  ;;  %v2639_v17 = vrot.slane %v2638_v3, 1  ;;  %v2653_v22 = vrot.slane %v2652_v4, 1  ;;  %v3639_v23 = vmax.f32 %v3637_v56, %v3638_v8 }
 0x11d   : > { %v2647_v26 = vmax.f32 %v2645_v58, %v2646_v5  ;;  %v3645_v28 = vrot.slane %v3644_v14, 2  ;;  %v3652_v29 = vrot.slane %v3651_v0, 2  ;;  %v3658_v34 = vmax.f32 %v3656_v61, %v3657_v1 }
 0x11e   : > { %v2640_v35 = vmax.f32 %v2638_v3, %v2639_v17  ;;  %v2654_v63 = vmax.f32 %v2652_v4, %v2653_v22  ;;  %v4559_v40 = vmax.f32 %v6435_v33, %v2633_v12  ;;  %v3640_v41 = vrot.slane %v3639_v23, 1 }
 0x11f   : > { %v4561_v43 = vmax.f32 %v6437_v9, %v2647_v26  ;;  %v3646_v10 = vmax.f32 %v3644_v14, %v3645_v28  ;;  %v3653_v48 = vmax.f32 %v3651_v0, %v3652_v29  ;;  %v3659_v49 = vrot.slane %v3658_v34, 2 }
 0x120   : > { %v4560_v52 = vmax.f32 %v6439_v44, %v2640_v35  ;;  %v4562_v53 = vmax.f32 %v6441_v46, %v2654_v63  ;;  %v5894_v55 = vpack.c.bf16 %v4559_v40, %v4559_v40  ;;  %v3641_v56 = vmax.f32 %v3639_v23, %v3640_v41 }
 0x121   : > { %v5896_v58 = vpack.c.bf16 %v4561_v43, %v4561_v43  ;;  %v3647_v59 = vrot.slane %v3646_v10, 1  ;;  %v3654_v60 = vrot.slane %v3653_v48, 1  ;;  %v3660_v61 = vmax.f32 %v3658_v34, %v3659_v49 }
 0x122   : > { %v5895_v62 = vpack.c.bf16 %v4560_v52, %v4560_v52  ;;  %v5897_v33 = vpack.c.bf16 %v4562_v53, %v4562_v53  ;;  %v5279_v3 = vunpack.c.l.b16 %v5894_v55  ;;  %v4631_v9 = vmax.f32 %v6447_v54, %v3641_v56 }
 0x123   : > { %v5281_v4 = vunpack.c.l.b16 %v5896_v58  ;;  %v3648_v8 = vmax.f32 %v3646_v10, %v3647_v59  ;;  %v3655_v5 = vmax.f32 %v3653_v48, %v3654_v60  ;;  %v3661_v14 = vrot.slane %v3660_v61, 1  ;;  %v6502_v60 = vpop.f32.mrb[10].mxu0 }
 0x124   : > { %v5280_v0 = vunpack.c.l.b16 %v5895_v62  ;;  %v6479_v1 = vunpack.c.l.b16 %v5897_v33  ;;  %v5966_v44 = vpack.c.bf16 %v4631_v9, %v4631_v9  ;;  %v1047_v46 = vcombine.high %v6452_v57, %v6452_v57 }
 0x125   : > { %v3662_v12 = vmax.f32 %v3660_v61, %v3661_v14  ;;  %v4632_v17 = vmax.f32 %v6456_v6, %v3648_v8  ;;  %v4633_v22 = vmax.f32 %v6458_v11, %v3655_v5  ;;  %v1054_v23 = vrot.slane %v6452_v57, %v6338_v50 }
 0x126   : > { %v5424_v54 = vsel %vm5423_vm4, %v5280_v0, %v5279_v3  ;;  %v5351_v26 = vunpack.c.l.b16 %v5966_v44  ;;  %v1061_v28 = vrot.slane %v1047_v46, %v6338_v50  ;;  %v747_v29 = vadd.f32 %v6335_v47, %v6352_v2 }
 0x127   : > { %v6492_v34 = vsel %vm5425_vm5, %v5281_v4, %v5424_v54  ;;  %v4634_v35 = vmax.f32 %v6463_v18, %v3662_v12  ;;  %v5967_v63 = vpack.c.bf16 %v4632_v17, %v4632_v17  ;;  %v5968_v6 = vpack.c.bf16 %v4633_v22, %v4633_v22 }
 0x128   : > { %v1062_v40 = vcombine.high %v1054_v23, %v1054_v23  ;;  %v1063_v11 = vcombine.high %v1061_v28, %v1061_v28  ;;  %v2571_v41 = vsel %vm2542_vm3, %v1054_v23, -inf  ;;  %v2585_v57 = vsel %vm2542_vm3, %v1061_v28, -inf }
 0x129   : > { %v5969_v43 = vpack.c.bf16 %v4634_v35, %v4634_v35  ;;  %v5352_v10 = vunpack.c.l.b16 %v5967_v63  ;;  %v5353_v48 = vunpack.c.l.b16 %v5968_v6  ;;  %v2572_v49 = vrot.slane %v2571_v41, 4 }
 0x12a   : > { %v2578_v52 = vsel %vm2542_vm3, %v1062_v40, -inf  ;;  %v2586_v2 = vrot.slane %v2585_v57, 4  ;;  %v2592_v53 = vsel %vm2542_vm3, %v1063_v11, -inf  ;;  %v923_v55 = vmax.f32 %v747_v29, 0.0  ;;  %v6516_v40 = vpop.f32.mrb[10].mxu1 }
 0x12b   : > { %v6499_v56 = vunpack.c.l.b16 %v5969_v43  ;;  %v5493_v18 = vsel %vm5423_vm4, %v5352_v10, %v5351_v26  ;;  %v2573_v58 = vmax.f32 %v2571_v41, %v2572_v49  ;;  %v2579_v59 = vrot.slane %v2578_v52, 4  ;;  %7933 = vst [vmem:[#allocation2_spill] sm:$0xff] %v6516_v40 }
 0x12c   : > { %v6505_v61 = vsel %vm5425_vm5, %v5353_v48, %v5493_v18  ;;  %v2587_v62 = vmax.f32 %v2585_v57, %v2586_v2  ;;  %v2593_v33 = vrot.slane %v2592_v53, 4  ;;  %v1659_v3 = vcombine.high %v923_v55, %v923_v55 }
 0x12d   : > { %v2574_v9 = vrot.slane %v2573_v58, 2  ;;  %v2580_v4 = vmax.f32 %v2578_v52, %v2579_v59  ;;  %v1666_v8 = vrot.slane %v923_v55, %v6338_v50  ;;  %v624_v5 = vadd.f32 %v6372_v19, %v6335_v47 }
 0x12e   : > { %v2588_v14 = vrot.slane %v2587_v62, 2  ;;  %v2594_v0 = vmax.f32 %v2592_v53, %v2593_v33  ;;  %v1673_v44 = vrot.slane %v1659_v3, %v6338_v50  ;;  %v768_v46 = vadd.f32 %v6376_v24, %v6335_v47 }
 0x12f   : > { %v2575_v12 = vmax.f32 %v2573_v58, %v2574_v9  ;;  %v2581_v17 = vrot.slane %v2580_v4, 2  ;;  %v1674_v22 = vcombine.high %v1666_v8, %v1666_v8  ;;  %v3579_v23 = vsel %vm2542_vm3, %v1666_v8, -inf }
 0x130   : > { %v2589_v54 = vmax.f32 %v2587_v62, %v2588_v14  ;;  %v2595_v26 = vrot.slane %v2594_v0, 2  ;;  %v1675_v28 = vcombine.high %v1673_v44, %v1673_v44  ;;  %v3580_v29 = vrot.slane %v3579_v23, 4 }
 0x131   : > { %v2576_v35 = vrot.slane %v2575_v12, 1  ;;  %v2582_v63 = vmax.f32 %v2580_v4, %v2581_v17  ;;  %v3586_v19 = vsel %vm2542_vm3, %v1674_v22, -inf  ;;  %v3593_v6 = vsel %vm2542_vm3, %v1673_v44, -inf }
 0x132   : > { %v2590_v11 = vrot.slane %v2589_v54, 1  ;;  %v2596_v41 = vmax.f32 %v2594_v0, %v2595_v26  ;;  %v3581_v24 = vmax.f32 %v3579_v23, %v3580_v29  ;;  %v3587_v57 = vrot.slane %v3586_v19, 4 }
 0x133   : > { %v6518_v43 = vmax.f32 %v2575_v12, %v2576_v35  ;;  %v2583_v10 = vrot.slane %v2582_v63, 1  ;;  %v3594_v48 = vrot.slane %v3593_v6, 4  ;;  %v3600_v49 = vsel %vm2542_vm3, %v1675_v28, -inf }
 0x134   : > { %v6521_v52 = vmax.f32 %v2589_v54, %v2590_v11  ;;  %v2597_v2 = vrot.slane %v2596_v41, 1  ;;  %v3582_v53 = vrot.slane %v3581_v24, 2  ;;  %v3588_v55 = vmax.f32 %v3586_v19, %v3587_v57 }
 0x135   : > { %v6523_v18 = vmax.f32 %v2582_v63, %v2583_v10  ;;  %v3595_v58 = vmax.f32 %v3593_v6, %v3594_v48  ;;  %v3601_v59 = vrot.slane %v3600_v49, 4  ;;  %v892_v62 = vmax.f32 %v624_v5, 0.0 }
 0x136   : > { %v6525_v33 = vmax.f32 %v2596_v41, %v2597_v2  ;;  %v3583_v3 = vmax.f32 %v3581_v24, %v3582_v53  ;;  %v3589_v9 = vrot.slane %v3588_v55, 2  ;;  %v928_v4 = vmax.f32 %v768_v46, 0.0 }
 0x137   : > { %v3596_v8 = vrot.slane %v3595_v58, 2  ;;  %v3602_v14 = vmax.f32 %v3600_v49, %v3601_v59  ;;  %v1132_v0 = vcombine.high %v892_v62, %v892_v62  ;;  %v1139_v44 = vrot.slane %v892_v62, %v6338_v50 }
 0x138   : > { %v3584_v12 = vrot.slane %v3583_v3, 1  ;;  %v3590_v17 = vmax.f32 %v3588_v55, %v3589_v9  ;;  %v1744_v22 = vcombine.high %v928_v4, %v928_v4  ;;  %v1751_v23 = vrot.slane %v928_v4, %v6338_v50 }
 0x139   : > { %v3597_v54 = vmax.f32 %v3595_v58, %v3596_v8  ;;  %v3603_v26 = vrot.slane %v3602_v14, 2  ;;  %v1146_v28 = vrot.slane %v1132_v0, %v6338_v50  ;;  %v1147_v5 = vcombine.high %v1139_v44, %v1139_v44  ;;  %v6544_v0 = vpop.f32.mrb[11].mxu0 }
 0x13a   : > { %v6530_v29 = vmax.f32 %v3583_v3, %v3584_v12  ;;  %v3591_v35 = vrot.slane %v3590_v17, 1  ;;  %v2711_v46 = vsel %vm2542_vm3, %v1139_v44, -inf  ;;  %v1758_v63 = vrot.slane %v1744_v22, %v6338_v50  ;;  %7934 = vst [vmem:[#allocation3_spill] sm:$0xff] %v6544_v0 }
 0x13b   : > { %v3598_v19 = vrot.slane %v3597_v54, 1  ;;  %v3604_v6 = vmax.f32 %v3602_v14, %v3603_v26  ;;  %v1148_v11 = vcombine.high %v1146_v28, %v1146_v28  ;;  %v2712_v41 = vrot.slane %v2711_v46, 4 }
 0x13c   : > { %v6534_v24 = vmax.f32 %v3590_v17, %v3591_v35  ;;  %v2718_v57 = vsel %vm2542_vm3, %v1147_v5, -inf  ;;  %v2725_v10 = vsel %vm2542_vm3, %v1146_v28, -inf  ;;  %v1759_v48 = vcombine.high %v1751_v23, %v1751_v23 }
 0x13d   : > { %v6538_v49 = vmax.f32 %v3597_v54, %v3598_v19  ;;  %v3605_v2 = vrot.slane %v3604_v6, 1  ;;  %v2713_v53 = vmax.f32 %v2711_v46, %v2712_v41  ;;  %v2719_v55 = vrot.slane %v2718_v57, 4 }
 0x13e   : > { %v2726_v58 = vrot.slane %v2725_v10, 4  ;;  %v2732_v59 = vsel %vm2542_vm3, %v1148_v11, -inf  ;;  %v1760_v62 = vcombine.high %v1758_v63, %v1758_v63  ;;  %v3719_v3 = vsel %vm2542_vm3, %v1751_v23, -inf }
 0x13f   : > { %v6542_v9 = vmax.f32 %v3604_v6, %v3605_v2  ;;  %v2714_v4 = vrot.slane %v2713_v53, 2  ;;  %v2720_v8 = vmax.f32 %v2718_v57, %v2719_v55  ;;  %v2733_v14 = vrot.slane %v2732_v59, 4 }
 0x140   : > { %v2727_v44 = vmax.f32 %v2725_v10, %v2726_v58  ;;  %v3720_v12 = vrot.slane %v3719_v3, 4  ;;  %v3726_v17 = vsel %vm2542_vm3, %v1759_v48, -inf  ;;  %v3733_v22 = vsel %vm2542_vm3, %v1758_v63, -inf }
 0x141   : > { %v2715_v54 = vmax.f32 %v2713_v53, %v2714_v4  ;;  %v2721_v26 = vrot.slane %v2720_v8, 2  ;;  %v2734_v28 = vmax.f32 %v2732_v59, %v2733_v14  ;;  %v3727_v5 = vrot.slane %v3726_v17, 4 }
 0x142   : > { %v2728_v35 = vrot.slane %v2727_v44, 2  ;;  %v3721_v23 = vmax.f32 %v3719_v3, %v3720_v12  ;;  %v3734_v46 = vrot.slane %v3733_v22, 4  ;;  %v3740_v19 = vsel %vm2542_vm3, %v1760_v62, -inf }
 0x143   : > { %v2716_v6 = vrot.slane %v2715_v54, 1  ;;  %v2722_v11 = vmax.f32 %v2720_v8, %v2721_v26  ;;  %v2735_v41 = vrot.slane %v2734_v28, 2  ;;  %v3728_v57 = vmax.f32 %v3726_v17, %v3727_v5 }
 0x144   : > { %v2729_v2 = vmax.f32 %v2727_v44, %v2728_v35  ;;  %v3722_v10 = vrot.slane %v3721_v23, 2  ;;  %v3735_v55 = vmax.f32 %v3733_v22, %v3734_v46  ;;  %v3741_v58 = vrot.slane %v3740_v19, 4 }
 0x145   : > { %v6549_v48 = vmax.f32 %v2715_v54, %v2716_v6  ;;  %v2723_v63 = vrot.slane %v2722_v11, 1  ;;  %v2736_v53 = vmax.f32 %v2734_v28, %v2735_v41  ;;  %v3729_v4 = vrot.slane %v3728_v57, 2 }
 0x146   : > { %v2730_v59 = vrot.slane %v2729_v2, 1  ;;  %v3723_v14 = vmax.f32 %v3721_v23, %v3722_v10  ;;  %v3736_v0 = vrot.slane %v3735_v55, 2  ;;  %v3742_v3 = vmax.f32 %v3740_v19, %v3741_v58 }
 0x147   : > { %v6551_v12 = vmax.f32 %v2722_v11, %v2723_v63  ;;  %v2737_v62 = vrot.slane %v2736_v53, 1  ;;  %v3730_v40 = vmax.f32 %v3728_v57, %v3729_v4  ;;  %v616_v8 = vadd.f32 %v6335_v47, %v6378_v25  ;;  %v6576_v57 = vpop.f32.mrb[11].mxu1 }
 0x148   : > { %v6555_v44 = vmax.f32 %v2729_v2, %v2730_v59  ;;  %v3724_v17 = vrot.slane %v3723_v14, 1  ;;  %v3737_v22 = vmax.f32 %v3735_v55, %v3736_v0  ;;  %v3743_v54 = vrot.slane %v3742_v3, 2 }
 0x149   : > { %v6557_v26 = vmax.f32 %v2736_v53, %v2737_v62  ;;  %v3731_v28 = vrot.slane %v3730_v40, 1  ;;  %v890_v5 = vmax.f32 %v616_v8, 0.0  ;;  %v6562_v35 = vsel %vm5427_vm6, %v6479_v1, %v6492_v34 }
 0x14a   : > { %v6564_v23 = vmax.f32 %v3723_v14, %v3724_v17  ;;  %v3738_v46 = vrot.slane %v3737_v22, 1  ;;  %v3744_v19 = vmax.f32 %v3742_v3, %v3743_v54  ;;  %v760_v25 = vadd.f32 %v6335_v47, %v6380_v30 }
 0x14b   : > { %v6568_v6 = vmax.f32 %v3730_v40, %v3731_v28  ;;  %v1098_v0 = vcombine.high %v890_v5, %v890_v5  ;;  %v1105_v11 = vrot.slane %v890_v5, %v6338_v50  ;;  %v6574_v41 = vsel %vm5427_vm6, %v6499_v56, %v6505_v61 }
 0x14c   : > { %v6578_v1 = vmax.f32 %v3737_v22, %v3738_v46  ;;  %v3745_v34 = vrot.slane %v3744_v19, 1  ;;  %v926_v2 = vmax.f32 %v760_v25, 0.0  ;;  %v627_v10 = vadd.f32 %v6382_v31, %v6335_v47 }
 0x14d   : > { %v1112_v30 = vrot.slane %v1098_v0, %v6338_v50  ;;  %v1113_v40 = vcombine.high %v1105_v11, %v1105_v11  ;;  %v2655_v55 = vsel %vm2542_vm3, %v1105_v11, -inf  ;;  %v6586_v58 = vadd.f32 %v6387_v36, %v6335_v47 }
 0x14e   : > { %v6588_v56 = vmax.f32 %v3744_v19, %v3745_v34  ;;  %v2656_v61 = vrot.slane %v2655_v55, 4  ;;  %v1710_v63 = vcombine.high %v926_v2, %v926_v2  ;;  %v1717_v53 = vrot.slane %v926_v2, %v6338_v50 }
 0x14f   : > { %v1114_v4 = vcombine.high %v1112_v30, %v1112_v30  ;;  %v2662_v59 = vsel %vm2542_vm3, %v1113_v40, -inf  ;;  %v2669_v31 = vsel %vm2542_vm3, %v1112_v30, -inf  ;;  %v6593_v14 = vmax.f32 %v627_v10, 0.0 }
 0x150   : > { %7935 = vst [vmem:[#allocation4_spill] sm:$0xff] %v6588_v56  ;;  %v2657_v3 = vmax.f32 %v2655_v55, %v2656_v61  ;;  %v2663_v62 = vrot.slane %v2662_v59, 4  ;;  %v2670_v8 = vrot.slane %v2669_v31, 4  ;;  %v1724_v17 = vrot.slane %v1710_v63, %v6338_v50 }
 0x151   : > { %v2676_v47 = vsel %vm2542_vm3, %v1114_v4, -inf  ;;  %v1725_v36 = vcombine.high %v1717_v53, %v1717_v53  ;;  %v3663_v22 = vsel %vm2542_vm3, %v1717_v53, -inf }
 0x152   : > { %v2658_v28 = vrot.slane %v2657_v3, 2  ;;  %v2664_v5 = vmax.f32 %v2662_v59, %v2663_v62  ;;  %v2671_v46 = vmax.f32 %v2669_v31, %v2670_v8  ;;  %v2677_v19 = vrot.slane %v2676_v47, 4 }
 0x153   : > { %v1726_v25 = vcombine.high %v1724_v17, %v1724_v17  ;;  %v3664_v0 = vrot.slane %v3663_v22, 4  ;;  %v3670_v11 = vsel %vm2542_vm3, %v1725_v36, -inf  ;;  %v3677_v34 = vsel %vm2542_vm3, %v1724_v17, -inf }
 0x154   : > { %v2659_v2 = vmax.f32 %v2657_v3, %v2658_v28  ;;  %v2665_v10 = vrot.slane %v2664_v5, 2  ;;  %v2672_v30 = vrot.slane %v2671_v46, 2  ;;  %v2678_v40 = vmax.f32 %v2676_v47, %v2677_v19 }
 0x155   : > { %v3665_v55 = vmax.f32 %v3663_v22, %v3664_v0  ;;  %v3671_v61 = vrot.slane %v3670_v11, 4  ;;  %v3678_v63 = vrot.slane %v3677_v34, 4  ;;  %v3684_v53 = vsel %vm2542_vm3, %v1726_v25, -inf }
 0x156   : > { %v2660_v4 = vrot.slane %v2659_v2, 1  ;;  %v2666_v59 = vmax.f32 %v2664_v5, %v2665_v10  ;;  %v2673_v31 = vmax.f32 %v2671_v46, %v2672_v30  ;;  %v2679_v62 = vrot.slane %v2678_v40, 2 }
 0x157   : > { %v3666_v8 = vrot.slane %v3665_v55, 2  ;;  %v3672_v3 = vmax.f32 %v3670_v11, %v3671_v61  ;;  %v3679_v17 = vmax.f32 %v3677_v34, %v3678_v63  ;;  %v3685_v36 = vrot.slane %v3684_v53, 4 }
 0x158   : > { %v2661_v47 = vmax.f32 %v2659_v2, %v2660_v4  ;;  %v2667_v28 = vrot.slane %v2666_v59, 1  ;;  %v2674_v19 = vrot.slane %v2673_v31, 1  ;;  %v2680_v54 = vmax.f32 %v2678_v40, %v2679_v62 }
 0x159   : > { %v3667_v22 = vmax.f32 %v3665_v55, %v3666_v8  ;;  %v3673_v25 = vrot.slane %v3672_v3, 2  ;;  %v3680_v0 = vrot.slane %v3679_v17, 2  ;;  %v3686_v5 = vmax.f32 %v3684_v53, %v3685_v36  ;;  %v6616_v36 = vpop.f32.mrb[12].mxu0 }
 0x15a   : > { %v2668_v46 = vmax.f32 %v2666_v59, %v2667_v28  ;;  %v2675_v10 = vmax.f32 %v2673_v31, %v2674_v19  ;;  %v2681_v30 = vrot.slane %v2680_v54, 1  ;;  %v4563_v11 = vmax.f32 %v6518_v43, %v2661_v47 }
 0x15b   : > { %v3668_v34 = vrot.slane %v3667_v22, 1  ;;  %v3674_v61 = vmax.f32 %v3672_v3, %v3673_v25  ;;  %v3681_v2 = vmax.f32 %v3679_v17, %v3680_v0  ;;  %v3687_v63 = vrot.slane %v3686_v5, 2 }
 0x15c   : > { %v2682_v4 = vmax.f32 %v2680_v54, %v2681_v30  ;;  %v4564_v40 = vmax.f32 %v6523_v18, %v2668_v46  ;;  %v4565_v62 = vmax.f32 %v6521_v52, %v2675_v10  ;;  %v5898_v55 = vpack.c.bf16 %v4563_v11, %v4563_v11 }
 0x15d   : > { %v3669_v8 = vmax.f32 %v3667_v22, %v3668_v34  ;;  %v3675_v53 = vrot.slane %v3674_v61, 1  ;;  %v3682_v59 = vrot.slane %v3681_v2, 1  ;;  %v3688_v31 = vmax.f32 %v3686_v5, %v3687_v63 }
 0x15e   : > { %v4566_v43 = vmax.f32 %v6525_v33, %v2682_v4  ;;  %v5899_v3 = vpack.c.bf16 %v4564_v40, %v4564_v40  ;;  %v5900_v17 = vpack.c.bf16 %v4565_v62, %v4565_v62  ;;  %v5283_v54 = vunpack.c.l.b16 %v5898_v55 }
 0x15f   : > { %v3676_v47 = vmax.f32 %v3674_v61, %v3675_v53  ;;  %v3683_v18 = vmax.f32 %v3681_v2, %v3682_v59  ;;  %v3689_v28 = vrot.slane %v3688_v31, 1  ;;  %v4635_v52 = vmax.f32 %v6530_v29, %v3669_v8 }
 0x160   : > { %v5901_v19 = vpack.c.bf16 %v4566_v43, %v4566_v43  ;;  %v5284_v25 = vunpack.c.l.b16 %v5899_v3  ;;  %v5285_v0 = vunpack.c.l.b16 %v5900_v17  ;;  %v5430_v22 = vsel %vm5429_vm7, %v5283_v54, %v6562_v35 }
 0x161   : > { %v3690_v5 = vmax.f32 %v3688_v31, %v3689_v28  ;;  %v4636_v46 = vmax.f32 %v6534_v24, %v3676_v47  ;;  %v4637_v33 = vmax.f32 %v6538_v49, %v3683_v18  ;;  %v5970_v10 = vpack.c.bf16 %v4635_v52, %v4635_v52  ;;  %v6647_v18 = vpop.f32.mrb[12].mxu1 }
 0x162   : > { %v5286_v30 = vunpack.c.l.b16 %v5901_v19  ;;  %v5432_v11 = vsel %vm5431_vm8, %v5284_v25, %v5430_v22  ;;  %v1156_v34 = vrot.slane %v6593_v14, %v6338_v50  ;;  %v7936_v29 = vcombine.high %v6593_v14, %v6593_v14 }
 0x163   : > { %v5434_v35 = vsel %vm5433_vm9, %v5285_v0, %v5432_v11  ;;  %v4638_v2 = vmax.f32 %v6542_v9, %v3690_v5  ;;  %v5971_v63 = vpack.c.bf16 %v4636_v46, %v4636_v46  ;;  %v5972_v24 = vpack.c.bf16 %v4637_v33, %v4637_v33 }
 0x164   : > { %v1163_v61 = vrot.slane %v7936_v29, %v6338_v50  ;;  %v5436_v49 = vsel %vm5435_vm10, %v5286_v30, %v5434_v35  ;;  %v5355_v4 = vunpack.c.l.b16 %v5970_v10  ;;  %v1164_v40 = vcombine.high %v1156_v34, %v1156_v34 }
 0x165   : > { %v5556_v55 = vpack.c.b16 %v5436_v49, %v5436_v49  ;;  %v5973_v14 = vpack.c.bf16 %v4638_v2, %v4638_v2  ;;  %v5356_v8 = vunpack.c.l.b16 %v5971_v63  ;;  %v5357_v53 = vunpack.c.l.b16 %v5972_v24 }
 0x166   : > { %v1165_v62 = vcombine.high %v1163_v61, %v1163_v61  ;;  %v5496_v9 = vsel %vm5429_vm7, %v5355_v4, %v6574_v41  ;;  %v2739_v59 = vsel %vm2542_vm3, %v1156_v34, -inf  ;;  %v2746_v31 = vsel %vm2542_vm3, %v1164_v40, -inf }
 0x167   : > { %v2753_v43 = vsel %vm2542_vm3, %v1163_v61, -inf  ;;  %5592 = vst [vmem:[%s6637_s29] sm:$0xf] %v5556_v55  ;;  %v5358_v3 = vunpack.c.l.b16 %v5973_v14  ;;  %v5497_v17 = vsel %vm5431_vm8, %v5356_v8, %v5496_v9  ;;  %v2740_v54 = vrot.slane %v2739_v59, 4  ;;  %v6657_v61 = vld [vmem:[%s7931_s2] ss:$0 sm:$0xff] }
 0x168   : > { %v2747_v47 = vrot.slane %v2746_v31, 4  ;;  %v5498_v28 = vsel %vm5433_vm9, %v5357_v53, %v5497_v17  ;;  %v2754_v52 = vrot.slane %v2753_v43, 4  ;;  %v2760_v41 = vsel %vm2542_vm3, %v1165_v62, -inf }
 0x169   : > { %v929_v19 = vmax.f32 %v6586_v58, 0.0  ;;  %v5499_v25 = vsel %vm5435_vm10, %v5358_v3, %v5498_v28  ;;  %v2741_v0 = vmax.f32 %v2739_v59, %v2740_v54  ;;  %v2761_v5 = vrot.slane %v2760_v41, 4 }
 0x16a   : > { %v2748_v22 = vmax.f32 %v2746_v31, %v2747_v47  ;;  %v5565_v46 = vpack.c.b16 %v5499_v25, %v5499_v25  ;;  %v2755_v33 = vmax.f32 %v2753_v43, %v2754_v52  ;;  %v619_v58 = vadd.f32 %v6657_v61, %v6389_v37 }
 0x16b   : > { %v1761_v10 = vcombine.high %v929_v19, %v929_v19  ;;  %v1768_v30 = vrot.slane %v929_v19, %v6338_v50  ;;  %v2742_v11 = vrot.slane %v2741_v0, 2  ;;  %v2762_v29 = vmax.f32 %v2760_v41, %v2761_v5  ;;  %v6671_v19 = vpop.f32.mrb[13].mxu0 }
 0x16c   : > { %v2749_v34 = vrot.slane %v2748_v22, 2  ;;  %5601 = vst [vmem:[%s6637_s29 + $0x24] sm:$0xf] %v5565_v46  ;;  %v2756_v35 = vrot.slane %v2755_v33, 2 }
 0x16d   : > { %v1775_v2 = vrot.slane %v1761_v10, %v6338_v50  ;;  %v1776_v63 = vcombine.high %v1768_v30, %v1768_v30  ;;  %v3747_v24 = vsel %vm2542_vm3, %v1768_v30, -inf  ;;  %v2743_v49 = vmax.f32 %v2741_v0, %v2742_v11 }
 0x16e   : > { %v2750_v4 = vmax.f32 %v2748_v22, %v2749_v34  ;;  %v2763_v40 = vrot.slane %v2762_v29, 2  ;;  %v3748_v62 = vrot.slane %v3747_v24, 4  ;;  %v2757_v55 = vmax.f32 %v2755_v33, %v2756_v35 }
 0x16f   : > { %v1777_v14 = vcombine.high %v1775_v2, %v1775_v2  ;;  %v3754_v8 = vsel %vm2542_vm3, %v1776_v63, -inf  ;;  %v3761_v53 = vsel %vm2542_vm3, %v1775_v2, -inf  ;;  %v2744_v9 = vrot.slane %v2743_v49, 1 }
 0x170   : > { %v2751_v59 = vrot.slane %v2750_v4, 1  ;;  %v2764_v37 = vmax.f32 %v2762_v29, %v2763_v40  ;;  %v3749_v31 = vmax.f32 %v3747_v24, %v3748_v62  ;;  %v2758_v43 = vrot.slane %v2757_v55, 1 }
 0x171   : > { %v3755_v3 = vrot.slane %v3754_v8, 4  ;;  %v3762_v17 = vrot.slane %v3761_v53, 4  ;;  %v3768_v54 = vsel %vm2542_vm3, %v1777_v14, -inf  ;;  %v6667_v47 = vmax.f32 %v2743_v49, %v2744_v9 }
 0x172   : > { %v6669_v28 = vmax.f32 %v2750_v4, %v2751_v59  ;;  %v2765_v52 = vrot.slane %v2764_v37, 1  ;;  %v3750_v41 = vrot.slane %v3749_v31, 2  ;;  %v6673_v25 = vmax.f32 %v2757_v55, %v2758_v43 }
 0x173   : > { %v3756_v0 = vmax.f32 %v3754_v8, %v3755_v3  ;;  %v3763_v22 = vmax.f32 %v3761_v53, %v3762_v17  ;;  %v3769_v5 = vrot.slane %v3768_v54, 4  ;;  %v891_v10 = vmax.f32 %v619_v58, 0.0  ;;  %v6690_v17 = vpop.f32.mrb[13].mxu1 }
 0x174   : > { %v6675_v46 = vmax.f32 %v2764_v37, %v2765_v52  ;;  %v3751_v33 = vmax.f32 %v3749_v31, %v3750_v41  ;;  %v763_v30 = vadd.f32 %v6657_v61, %v6391_v42  ;;  %v640_v35 = vadd.f32 %v6657_v61, %v6396_v13  ;;  %7937 = vst [vmem:[#allocation5_spill] sm:$0xff] %v6690_v17 }
 0x175   : > { %v3757_v11 = vrot.slane %v3756_v0, 2  ;;  %v3764_v34 = vrot.slane %v3763_v22, 2  ;;  %v3770_v29 = vmax.f32 %v3768_v54, %v3769_v5  ;;  %v1115_v63 = vcombine.high %v891_v10, %v891_v10 }
 0x176   : > { %v3752_v2 = vrot.slane %v3751_v33, 1  ;;  %v1122_v24 = vrot.slane %v891_v10, %v6338_v50  ;;  %v927_v49 = vmax.f32 %v763_v30, 0.0  ;;  %v6682_v55 = vmax.f32 %v640_v35, 0.0 }
 0x177   : > { %v3758_v4 = vmax.f32 %v3756_v0, %v3757_v11  ;;  %v3765_v40 = vmax.f32 %v3763_v22, %v3764_v34  ;;  %v3771_v62 = vrot.slane %v3770_v29, 2  ;;  %v1129_v42 = vrot.slane %v1115_v63, %v6338_v50 }
 0x178   : > { %v6684_v58 = vmax.f32 %v3751_v33, %v3752_v2  ;;  %v1130_v14 = vcombine.high %v1122_v24, %v1122_v24  ;;  %v2683_v8 = vsel %vm2542_vm3, %v1122_v24, -inf  ;;  %v1727_v3 = vcombine.high %v927_v49, %v927_v49 }
 0x179   : > { %v3759_v53 = vrot.slane %v3758_v4, 1  ;;  %v3766_v9 = vrot.slane %v3765_v40, 1  ;;  %v3772_v13 = vmax.f32 %v3770_v29, %v3771_v62  ;;  %v2684_v59 = vrot.slane %v2683_v8, 4 }
 0x17a   : > { %v1131_v37 = vcombine.high %v1129_v42, %v1129_v42  ;;  %v2690_v31 = vsel %vm2542_vm3, %v1130_v14, -inf  ;;  %v2697_v43 = vsel %vm2542_vm3, %v1129_v42, -inf  ;;  %v1734_v10 = vrot.slane %v927_v49, %v6338_v50 }
 0x17b   : > { %v6692_v54 = vmax.f32 %v3758_v4, %v3759_v53  ;;  %v6694_v52 = vmax.f32 %v3765_v40, %v3766_v9  ;;  %v3773_v41 = vrot.slane %v3772_v13, 1  ;;  %v2685_v0 = vmax.f32 %v2683_v8, %v2684_v59 }
 0x17c   : > { %v2691_v22 = vrot.slane %v2690_v31, 4  ;;  %v2698_v5 = vrot.slane %v2697_v43, 4  ;;  %v2704_v33 = vsel %vm2542_vm3, %v1131_v37, -inf  ;;  %v1741_v29 = vrot.slane %v1727_v3, %v6338_v50 }
 0x17d   : > { %v6698_v30 = vmax.f32 %v3772_v13, %v3773_v41  ;;  %v2686_v11 = vrot.slane %v2685_v0, 2  ;;  %v2705_v34 = vrot.slane %v2704_v33, 4  ;;  %v1742_v63 = vcombine.high %v1734_v10, %v1734_v10 }
 0x17e   : > { %v2692_v35 = vmax.f32 %v2690_v31, %v2691_v22  ;;  %v2699_v2 = vmax.f32 %v2697_v43, %v2698_v5  ;;  %v3691_v24 = vsel %vm2542_vm3, %v1734_v10, -inf  ;;  %v1743_v62 = vcombine.high %v1741_v29, %v1741_v29  ;;  %v6705_v10 = vpop.f32.mrb[14].mxu0 }
 0x17f   : > { %v2687_v4 = vmax.f32 %v2685_v0, %v2686_v11  ;;  %v2706_v40 = vmax.f32 %v2704_v33, %v2705_v34  ;;  %v3692_v42 = vrot.slane %v3691_v24, 4  ;;  %v3698_v53 = vsel %vm2542_vm3, %v1742_v63, -inf  ;;  %7938 = vst [vmem:[#allocation6_spill] sm:$0xff] %v6705_v10 }
 0x180   : > { %v2693_v14 = vrot.slane %v2692_v35, 2  ;;  %v2700_v8 = vrot.slane %v2699_v2, 2  ;;  %v3705_v49 = vsel %vm2542_vm3, %v1741_v29, -inf  ;;  %v3699_v37 = vrot.slane %v3698_v53, 4 }
 0x181   : > { %v2688_v9 = vrot.slane %v2687_v4, 1  ;;  %v2707_v13 = vrot.slane %v2706_v40, 2  ;;  %v3693_v59 = vmax.f32 %v3691_v24, %v3692_v42  ;;  %v3706_v43 = vrot.slane %v3705_v49, 4 }
 0x182   : > { %v2694_v3 = vmax.f32 %v2692_v35, %v2693_v14  ;;  %v2701_v31 = vmax.f32 %v2699_v2, %v2700_v8  ;;  %v3712_v41 = vsel %vm2542_vm3, %v1743_v62, -inf  ;;  %v3700_v33 = vmax.f32 %v3698_v53, %v3699_v37 }
 0x183   : > { %v2689_v22 = vmax.f32 %v2687_v4, %v2688_v9  ;;  %v2708_v0 = vmax.f32 %v2706_v40, %v2707_v13  ;;  %v3694_v5 = vrot.slane %v3693_v59, 2  ;;  %v3707_v63 = vmax.f32 %v3705_v49, %v3706_v43 }
 0x184   : > { %v2695_v11 = vrot.slane %v2694_v3, 1  ;;  %v2702_v34 = vrot.slane %v2701_v31, 1  ;;  %v3713_v17 = vrot.slane %v3712_v41, 4  ;;  %v3701_v42 = vrot.slane %v3700_v33, 2 }
 0x185   : > { %v2709_v29 = vrot.slane %v2708_v0, 1  ;;  %v4567_v56 = vmax.f32 %v6394_v7, %v2689_v22  ;;  %v3695_v24 = vmax.f32 %v3693_v59, %v3694_v5  ;;  %v3708_v14 = vrot.slane %v3707_v63, 2 }
 0x186   : > { %v2696_v35 = vmax.f32 %v2694_v3, %v2695_v11  ;;  %v2703_v2 = vmax.f32 %v2701_v31, %v2702_v34  ;;  %v3714_v8 = vmax.f32 %v3712_v41, %v3713_v17  ;;  %v3702_v9 = vmax.f32 %v3700_v33, %v3701_v42 }
 0x187   : > { %v2710_v62 = vmax.f32 %v2708_v0, %v2709_v29  ;;  %v5902_v4 = vpack.c.bf16 %v4567_v56, %v4567_v56  ;;  %v3696_v40 = vrot.slane %v3695_v24, 1  ;;  %v3709_v37 = vmax.f32 %v3707_v63, %v3708_v14 }
 0x188   : > { %v4568_v53 = vmax.f32 %v6400_v20, %v2696_v35  ;;  %v4569_v13 = vmax.f32 %v6402_v21, %v2703_v2  ;;  %v3715_v49 = vrot.slane %v3714_v8, 2  ;;  %v3703_v59 = vrot.slane %v3702_v9, 1 }
 0x189   : > { %v4570_v43 = vmax.f32 %v6410_v32, %v2710_v62  ;;  %v5287_v10 = vunpack.c.l.b16 %v5902_v4  ;;  %v3697_v7 = vmax.f32 %v3695_v24, %v3696_v40  ;;  %v3710_v31 = vrot.slane %v3709_v37, 1  ;;  %v6719_v24 = vpop.f32.mrb[14].mxu1 }
 0x18a   : > { %v5903_v22 = vpack.c.bf16 %v4568_v53, %v4568_v53  ;;  %v5904_v3 = vpack.c.bf16 %v4569_v13, %v4569_v13  ;;  %v3716_v5 = vmax.f32 %v3714_v8, %v3715_v49  ;;  %v3704_v41 = vmax.f32 %v3702_v9, %v3703_v59 }
 0x18b   : > { %v5905_v17 = vpack.c.bf16 %v4570_v43, %v4570_v43  ;;  %v4639_v56 = vmax.f32 %v6398_v15, %v3697_v7  ;;  %v1200_v20 = vcombine.high %v6682_v55, %v6682_v55  ;;  %v3711_v33 = vmax.f32 %v3709_v37, %v3710_v31  ;;  %v6735_v31 = vpop.f32.mrb[15].mxu0 }
 0x18c   : > { %v5288_v0 = vunpack.c.l.b16 %v5903_v22  ;;  %v5289_v21 = vunpack.c.l.b16 %v5904_v3  ;;  %v3717_v11 = vrot.slane %v3716_v5, 1  ;;  %v4640_v32 = vmax.f32 %v6415_v38, %v3704_v41 }
 0x18d   : > { %v6714_v34 = vunpack.c.l.b16 %v5905_v17  ;;  %v5974_v63 = vpack.c.bf16 %v4639_v56, %v4639_v56  ;;  %v1207_v29 = vrot.slane %v6682_v55, %v6338_v50  ;;  %v4641_v35 = vmax.f32 %v6417_v39, %v3711_v33 }
 0x18e   : > { %v5437_v42 = vsel %vm5423_vm4, %v5288_v0, %v5287_v10  ;;  %v3718_v15 = vmax.f32 %v3716_v5, %v3717_v11  ;;  %v1214_v2 = vrot.slane %v1200_v20, %v6338_v50  ;;  %v5975_v8 = vpack.c.bf16 %v4640_v32, %v4640_v32 }
 0x18f   : > { %v6725_v14 = vsel %vm5425_vm5, %v5289_v21, %v5437_v42  ;;  %v5359_v62 = vunpack.c.l.b16 %v5974_v63  ;;  %v1215_v4 = vcombine.high %v1207_v29, %v1207_v29  ;;  %v5976_v40 = vpack.c.bf16 %v4641_v35, %v4641_v35 }
 0x190   : > { %v4642_v38 = vmax.f32 %v6423_v45, %v3718_v15  ;;  %v1216_v9 = vcombine.high %v1214_v2, %v1214_v2  ;;  %v2823_v55 = vsel %vm2542_vm3, %v1207_v29, -inf  ;;  %v5360_v53 = vunpack.c.l.b16 %v5975_v8 }
 0x191   : > { %v2824_v13 = vrot.slane %v2823_v55, 4  ;;  %v2830_v10 = vsel %vm2542_vm3, %v1215_v4, -inf  ;;  %v2837_v39 = vsel %vm2542_vm3, %v1214_v2, -inf  ;;  %v5361_v49 = vunpack.c.l.b16 %v5976_v40 }
 0x192   : > { %v5977_v37 = vpack.c.bf16 %v4642_v38, %v4642_v38  ;;  %v2831_v43 = vrot.slane %v2830_v10, 4  ;;  %v2838_v7 = vrot.slane %v2837_v39, 4  ;;  %v5500_v59 = vsel %vm5423_vm4, %v5360_v53, %v5359_v62 }
 0x193   : > { %v2825_v22 = vmax.f32 %v2823_v55, %v2824_v13  ;;  %v2844_v3 = vsel %vm2542_vm3, %v1216_v9, -inf  ;;  %v784_v45 = vadd.f32 %v6657_v61, %v6433_v16  ;;  %v6740_v17 = vsel %vm5425_vm5, %v5361_v49, %v5500_v59 }
 0x194   : > { %v6737_v5 = vunpack.c.l.b16 %v5977_v37  ;;  %v2832_v41 = vmax.f32 %v2830_v10, %v2831_v43  ;;  %v2839_v56 = vmax.f32 %v2837_v39, %v2838_v7  ;;  %v2845_v0 = vrot.slane %v2844_v3, 4 }
 0x195   : > { %v2826_v20 = vrot.slane %v2825_v22, 2  ;;  %v932_v21 = vmax.f32 %v784_v45, 0.0  ;;  %v632_v33 = vadd.f32 %v6657_v61, %v6465_v27  ;;  %v776_v16 = vadd.f32 %v6657_v61, %v6474_v51 }
 0x196   : > { %v2833_v11 = vrot.slane %v2832_v41, 2  ;;  %v2840_v32 = vrot.slane %v2839_v56, 2  ;;  %v6748_v63 = vadd.f32 %v6657_v61, %v6502_v60  ;;  %v2846_v42 = vmax.f32 %v2844_v3, %v2845_v0 }
 0x197   : > { %v2827_v29 = vmax.f32 %v2825_v22, %v2826_v20  ;;  %v1812_v15 = vcombine.high %v932_v21, %v932_v21  ;;  %v1819_v35 = vrot.slane %v932_v21, %v6338_v50  ;;  %v894_v62 = vmax.f32 %v632_v33, 0.0 }
 0x198   : > { %v2834_v2 = vmax.f32 %v2832_v41, %v2833_v11  ;;  %v2841_v8 = vmax.f32 %v2839_v56, %v2840_v32  ;;  %v6751_v4 = vmax.f32 %v776_v16, 0.0  ;;  %v2847_v38 = vrot.slane %v2846_v42, 2 }
 0x199   : > { %v2828_v27 = vrot.slane %v2827_v29, 1  ;;  %v1826_v40 = vrot.slane %v1812_v15, %v6338_v50  ;;  %v1827_v9 = vcombine.high %v1819_v35, %v1819_v35  ;;  %v3831_v60 = vsel %vm2542_vm3, %v1819_v35, -inf }
 0x19a   : > { %v2835_v51 = vrot.slane %v2834_v2, 1  ;;  %v2842_v55 = vrot.slane %v2841_v8, 1  ;;  %v1166_v53 = vcombine.high %v894_v62, %v894_v62  ;;  %v2848_v10 = vmax.f32 %v2846_v42, %v2847_v38 }
 0x19b   : > { %v2829_v13 = vmax.f32 %v2827_v29, %v2828_v27  ;;  %v1828_v39 = vcombine.high %v1826_v40, %v1826_v40  ;;  %v3832_v37 = vrot.slane %v3831_v60, 4  ;;  %v3838_v7 = vsel %vm2542_vm3, %v1827_v9, -inf }
 0x19c   : > { %v2836_v49 = vmax.f32 %v2834_v2, %v2835_v51  ;;  %v2843_v43 = vmax.f32 %v2841_v8, %v2842_v55  ;;  %v3845_v59 = vsel %vm2542_vm3, %v1826_v40, -inf  ;;  %v2849_v22 = vrot.slane %v2848_v10, 1 }
 0x19d   : > { %v4575_v3 = vmax.f32 %v6667_v47, %v2829_v13  ;;  %v3833_v45 = vmax.f32 %v3831_v60, %v3832_v37  ;;  %v3839_v41 = vrot.slane %v3838_v7, 4  ;;  %v3846_v0 = vrot.slane %v3845_v59, 4 }
 0x19e   : > { %v4576_v56 = vmax.f32 %v6669_v28, %v2836_v49  ;;  %v4577_v20 = vmax.f32 %v6673_v25, %v2843_v43  ;;  %v3852_v21 = vsel %vm2542_vm3, %v1828_v39, -inf  ;;  %v2850_v33 = vmax.f32 %v2848_v10, %v2849_v22 }
 0x19f   : > { %v5910_v11 = vpack.c.bf16 %v4575_v3, %v4575_v3  ;;  %v3834_v32 = vrot.slane %v3833_v45, 2  ;;  %v3840_v16 = vmax.f32 %v3838_v7, %v3839_v41  ;;  %v3847_v15 = vmax.f32 %v3845_v59, %v3846_v0  ;;  %v6770_v59 = vpop.f32.mrb[15].mxu1 }
 0x1a0   : > { %v5911_v29 = vpack.c.bf16 %v4576_v56, %v4576_v56  ;;  %v5912_v42 = vpack.c.bf16 %v4577_v20, %v4577_v20  ;;  %v3853_v35 = vrot.slane %v3852_v21, 4  ;;  %v4578_v2 = vmax.f32 %v6675_v46, %v2850_v33 }
 0x1a1   : > { %v5295_v47 = vunpack.c.l.b16 %v5910_v11  ;;  %v3835_v8 = vmax.f32 %v3833_v45, %v3834_v32  ;;  %v3841_v27 = vrot.slane %v3840_v16, 2  ;;  %v3848_v40 = vrot.slane %v3847_v15, 2 }
 0x1a2   : > { %v5296_v38 = vunpack.c.l.b16 %v5911_v29  ;;  %v5297_v28 = vunpack.c.l.b16 %v5912_v42  ;;  %v3854_v25 = vmax.f32 %v3852_v21, %v3853_v35  ;;  %v5913_v9 = vpack.c.bf16 %v4578_v2, %v4578_v2 }
 0x1a3   : > { %v3836_v51 = vrot.slane %v3835_v8, 1  ;;  %v3842_v55 = vmax.f32 %v3840_v16, %v3841_v27  ;;  %v1173_v60 = vrot.slane %v894_v62, %v6338_v50  ;;  %v3849_v10 = vmax.f32 %v3847_v15, %v3848_v40 }
 0x1a4   : > { %v5444_v13 = vsel %vm5423_vm4, %v5296_v38, %v5295_v47  ;;  %v3855_v39 = vrot.slane %v3854_v25, 2  ;;  %v1180_v37 = vrot.slane %v1166_v53, %v6338_v50  ;;  %v6765_v49 = vunpack.c.l.b16 %v5913_v9 }
 0x1a5   : > { %v6768_v46 = vsel %vm5425_vm5, %v5297_v28, %v5444_v13  ;;  %v3837_v43 = vmax.f32 %v3835_v8, %v3836_v51  ;;  %v3843_v7 = vrot.slane %v3842_v55, 1  ;;  %v3850_v22 = vrot.slane %v3849_v10, 1 }
 0x1a6   : > { %v3856_v3 = vmax.f32 %v3854_v25, %v3855_v39  ;;  %v1181_v45 = vcombine.high %v1173_v60, %v1173_v60  ;;  %v1182_v41 = vcombine.high %v1180_v37, %v1180_v37  ;;  %v2767_v20 = vsel %vm2542_vm3, %v1173_v60, -inf }
 0x1a7   : > { %v3844_v62 = vmax.f32 %v3842_v55, %v3843_v7  ;;  %v4647_v56 = vmax.f32 %v6684_v58, %v3837_v43  ;;  %v2781_v53 = vsel %vm2542_vm3, %v1180_v37, -inf  ;;  %v3851_v0 = vmax.f32 %v3849_v10, %v3850_v22 }
 0x1a8   : > { %v3857_v21 = vrot.slane %v3856_v3, 1  ;;  %v2768_v33 = vrot.slane %v2767_v20, 4  ;;  %v2774_v11 = vsel %vm2542_vm3, %v1181_v45, -inf  ;;  %v2782_v42 = vrot.slane %v2781_v53, 4 }
 0x1a9   : > { %v4648_v32 = vmax.f32 %v6692_v54, %v3844_v62  ;;  %v5982_v16 = vpack.c.bf16 %v4647_v56, %v4647_v56  ;;  %v2775_v29 = vrot.slane %v2774_v11, 4  ;;  %v4649_v35 = vmax.f32 %v6694_v52, %v3851_v0  ;;  %v6790_v62 = vpop.f32.mrb[16].mxu0 }
 0x1aa   : > { %v3858_v15 = vmax.f32 %v3856_v3, %v3857_v21  ;;  %v2769_v2 = vmax.f32 %v2767_v20, %v2768_v33  ;;  %v2788_v58 = vsel %vm2542_vm3, %v1182_v41, -inf  ;;  %v2783_v38 = vmax.f32 %v2781_v53, %v2782_v42 }
 0x1ab   : > { %v5983_v47 = vpack.c.bf16 %v4648_v32, %v4648_v32  ;;  %v5367_v8 = vunpack.c.l.b16 %v5982_v16  ;;  %v2776_v27 = vmax.f32 %v2774_v11, %v2775_v29  ;;  %v5984_v40 = vpack.c.bf16 %v4649_v35, %v4649_v35 }
 0x1ac   : > { %v4650_v28 = vmax.f32 %v6698_v30, %v3858_v15  ;;  %v2770_v25 = vrot.slane %v2769_v2, 2  ;;  %v2789_v9 = vrot.slane %v2788_v58, 4  ;;  %v2784_v55 = vrot.slane %v2783_v38, 2 }
 0x1ad   : > { %v5368_v51 = vunpack.c.l.b16 %v5983_v47  ;;  %v2777_v54 = vrot.slane %v2776_v27, 2  ;;  %v1778_v60 = vcombine.high %v6751_v4, %v6751_v4  ;;  %v5369_v52 = vunpack.c.l.b16 %v5984_v40 }
 0x1ae   : > { %v5985_v13 = vpack.c.bf16 %v4650_v28, %v4650_v28  ;;  %v2771_v10 = vmax.f32 %v2769_v2, %v2770_v25  ;;  %v2790_v39 = vmax.f32 %v2788_v58, %v2789_v9  ;;  %v2785_v7 = vmax.f32 %v2783_v38, %v2784_v55  ;;  %v6808_v9 = vpop.f32.mrb[16].mxu1 }
 0x1af   : > { %v5507_v37 = vsel %vm5423_vm4, %v5368_v51, %v5367_v8  ;;  %v2778_v43 = vmax.f32 %v2776_v27, %v2777_v54  ;;  %v1785_v30 = vrot.slane %v6751_v4, %v6338_v50  ;;  %v1792_v53 = vrot.slane %v1778_v60, %v6338_v50 }
 0x1b0   : > { %v6785_v22 = vunpack.c.l.b16 %v5985_v13  ;;  %v6788_v3 = vsel %vm5425_vm5, %v5369_v52, %v5507_v37  ;;  %v2772_v45 = vrot.slane %v2771_v10, 1  ;;  %v2791_v41 = vrot.slane %v2790_v39, 2 }
 0x1b1   : > { %v2779_v56 = vrot.slane %v2778_v43, 1  ;;  %v2786_v20 = vrot.slane %v2785_v7, 1  ;;  %v1793_v0 = vcombine.high %v1785_v30, %v1785_v30  ;;  %v3775_v11 = vsel %vm2542_vm3, %v1785_v30, -inf }
 0x1b2   : > { %v6793_v21 = vmax.f32 %v2771_v10, %v2772_v45  ;;  %v2792_v33 = vmax.f32 %v2790_v39, %v2791_v41  ;;  %v897_v4 = vmax.f32 %v6748_v63, 0.0  ;;  %v1794_v29 = vcombine.high %v1792_v53, %v1792_v53 }
 0x1b3   : > { %v6797_v32 = vmax.f32 %v2778_v43, %v2779_v56  ;;  %v6799_v16 = vmax.f32 %v2785_v7, %v2786_v20  ;;  %v3776_v42 = vrot.slane %v3775_v11, 4  ;;  %v3782_v35 = vsel %vm2542_vm3, %v1793_v0, -inf }
 0x1b4   : > { %v2793_v15 = vrot.slane %v2792_v33, 1  ;;  %v3789_v2 = vsel %vm2542_vm3, %v1792_v53, -inf  ;;  %v1217_v58 = vcombine.high %v897_v4, %v897_v4  ;;  %v3783_v8 = vrot.slane %v3782_v35, 4 }
 0x1b5   : > { %v3777_v47 = vmax.f32 %v3775_v11, %v3776_v42  ;;  %v3790_v27 = vrot.slane %v3789_v2, 4  ;;  %v3796_v38 = vsel %vm2542_vm3, %v1794_v29, -inf  ;;  %v1224_v40 = vrot.slane %v897_v4, %v6338_v50 }
 0x1b6   : > { %v6804_v28 = vmax.f32 %v2792_v33, %v2793_v15  ;;  %v3797_v63 = vrot.slane %v3796_v38, 4  ;;  %v1231_v25 = vrot.slane %v1217_v58, %v6338_v50  ;;  %v3784_v54 = vmax.f32 %v3782_v35, %v3783_v8 }
 0x1b7   : > { %v3778_v51 = vrot.slane %v3777_v47, 2  ;;  %v3791_v55 = vmax.f32 %v3789_v2, %v3790_v27  ;;  %v6813_v60 = vsel %vm5427_vm6, %v6765_v49, %v6768_v46  ;;  %v1232_v52 = vcombine.high %v1224_v40, %v1224_v40 }
 0x1b8   : > { %v3798_v13 = vmax.f32 %v3796_v38, %v3797_v63  ;;  %v1233_v10 = vcombine.high %v1231_v25, %v1231_v25  ;;  %v2851_v39 = vsel %vm2542_vm3, %v1224_v40, -inf  ;;  %v3785_v43 = vrot.slane %v3784_v54, 2  ;;  %v6821_v38 = vpop.f32.mrb[17].mxu0 }
 0x1b9   : > { %v3779_v37 = vmax.f32 %v3777_v47, %v3778_v51  ;;  %v3792_v7 = vrot.slane %v3791_v55, 2  ;;  %v2852_v30 = vrot.slane %v2851_v39, 4  ;;  %v2858_v41 = vsel %vm2542_vm3, %v1232_v52, -inf  ;;  %v7939_v51 = vld [vmem:[#allocation2_spill] sm:$0xff] }
 0x1ba   : > { %v3799_v45 = vrot.slane %v3798_v13, 2  ;;  %v2865_v56 = vsel %vm2542_vm3, %v1231_v25, -inf  ;;  %v2872_v20 = vsel %vm2542_vm3, %v1233_v10, -inf  ;;  %v3786_v0 = vmax.f32 %v3784_v54, %v3785_v43 }
 0x1bb   : > { %v3780_v53 = vrot.slane %v3779_v37, 1  ;;  %v3793_v49 = vmax.f32 %v3791_v55, %v3792_v7  ;;  %v2853_v46 = vmax.f32 %v2851_v39, %v2852_v30  ;;  %v2859_v11 = vrot.slane %v2858_v41, 4  ;;  %v7940_v7 = vld [vmem:[#allocation3_spill] sm:$0xff] }
 0x1bc   : > { %v3800_v33 = vmax.f32 %v3798_v13, %v3799_v45  ;;  %v2866_v4 = vrot.slane %v2865_v56, 4  ;;  %v2873_v29 = vrot.slane %v2872_v20, 4  ;;  %v3787_v15 = vrot.slane %v3786_v0, 1 }
 0x1bd   : > { %v6819_v42 = vmax.f32 %v3779_v37, %v3780_v53  ;;  %v3794_v35 = vrot.slane %v3793_v49, 1  ;;  %v2854_v2 = vrot.slane %v2853_v46, 2  ;;  %v2860_v47 = vmax.f32 %v2858_v41, %v2859_v11 }
 0x1be   : > { %v3801_v58 = vrot.slane %v3800_v33, 1  ;;  %v2867_v8 = vmax.f32 %v2865_v56, %v2866_v4  ;;  %v2874_v27 = vmax.f32 %v2872_v20, %v2873_v29  ;;  %v6823_v63 = vmax.f32 %v3786_v0, %v3787_v15 }
 0x1bf   : > { %v6825_v40 = vmax.f32 %v3793_v49, %v3794_v35  ;;  %v2855_v25 = vmax.f32 %v2853_v46, %v2854_v2  ;;  %v787_v54 = vadd.f32 %v6657_v61, %v7939_v51  ;;  %v2861_v13 = vrot.slane %v2860_v47, 2  ;;  %v6851_v51 = vpop.f32.mrb[17].mxu1 }
 0x1c0   : > { %v6829_v55 = vmax.f32 %v3800_v33, %v3801_v58  ;;  %v2868_v52 = vrot.slane %v2867_v8, 2  ;;  %v2875_v10 = vrot.slane %v2874_v27, 2  ;;  %v6834_v43 = vsel %vm5427_vm6, %v6785_v22, %v6788_v3 }
 0x1c1   : > { %v2856_v39 = vrot.slane %v2855_v25, 1  ;;  %v933_v37 = vmax.f32 %v787_v54, 0.0  ;;  %v635_v30 = vadd.f32 %v6657_v61, %v7940_v7  ;;  %v2862_v45 = vmax.f32 %v2860_v47, %v2861_v13 }
 0x1c2   : > { %v2869_v41 = vmax.f32 %v2867_v8, %v2868_v52  ;;  %v2876_v56 = vmax.f32 %v2874_v27, %v2875_v10  ;;  %v6841_v20 = vsel %vm5427_vm6, %v6714_v34, %v6725_v14  ;;  %v779_v3 = vadd.f32 %v6657_v61, %v6576_v57 }
 0x1c3   : > { %v2857_v53 = vmax.f32 %v2855_v25, %v2856_v39  ;;  %v1829_v0 = vcombine.high %v933_v37, %v933_v37  ;;  %v1836_v49 = vrot.slane %v933_v37, %v6338_v50  ;;  %v895_v46 = vmax.f32 %v635_v30, 0.0 }
 0x1c4   : > { %v2863_v33 = vrot.slane %v2862_v45, 1  ;;  %v2870_v11 = vrot.slane %v2869_v41, 1  ;;  %v2877_v22 = vrot.slane %v2876_v56, 1 }
 0x1c5   : > { %v4579_v4 = vmax.f32 %v6793_v21, %v2857_v53  ;;  %v1843_v29 = vrot.slane %v1829_v0, %v6338_v50  ;;  %v1844_v15 = vcombine.high %v1836_v49, %v1836_v49  ;;  %v3859_v35 = vsel %vm2542_vm3, %v1836_v49, -inf }
 0x1c6   : > { %v2864_v34 = vmax.f32 %v2862_v45, %v2863_v33  ;;  %v2871_v14 = vmax.f32 %v2869_v41, %v2870_v11  ;;  %v2878_v2 = vmax.f32 %v2876_v56, %v2877_v22  ;;  %v3860_v58 = vrot.slane %v3859_v35, 4 }
 0x1c7   : > { %v5914_v47 = vpack.c.bf16 %v4579_v4, %v4579_v4  ;;  %v1845_v8 = vcombine.high %v1843_v29, %v1843_v29  ;;  %v3866_v27 = vsel %vm2542_vm3, %v1844_v15, -inf  ;;  %v3873_v25 = vsel %vm2542_vm3, %v1843_v29, -inf }
 0x1c8   : > { %v4580_v57 = vmax.f32 %v6797_v32, %v2864_v34  ;;  %v4581_v21 = vmax.f32 %v6799_v16, %v2871_v14  ;;  %v4582_v54 = vmax.f32 %v6804_v28, %v2878_v2  ;;  %v3861_v13 = vmax.f32 %v3859_v35, %v3860_v58 }
 0x1c9   : > { %v5299_v52 = vunpack.c.l.b16 %v5914_v47  ;;  %v3867_v10 = vrot.slane %v3866_v27, 4  ;;  %v3874_v39 = vrot.slane %v3873_v25, 4  ;;  %v3880_v37 = vsel %vm2542_vm3, %v1845_v8, -inf }
 0x1ca   : > { %v5915_v7 = vpack.c.bf16 %v4580_v57, %v4580_v57  ;;  %v5916_v30 = vpack.c.bf16 %v4581_v21, %v4581_v21  ;;  %v5917_v45 = vpack.c.bf16 %v4582_v54, %v4582_v54  ;;  %v3862_v41 = vrot.slane %v3861_v13, 2 }
 0x1cb   : > { %v5447_v56 = vsel %vm5429_vm7, %v5299_v52, %v6813_v60  ;;  %v3868_v53 = vmax.f32 %v3866_v27, %v3867_v10  ;;  %v3875_v0 = vmax.f32 %v3873_v25, %v3874_v39  ;;  %v3881_v32 = vrot.slane %v3880_v37, 4 }
 0x1cc   : > { %v5300_v49 = vunpack.c.l.b16 %v5915_v7  ;;  %v5301_v16 = vunpack.c.l.b16 %v5916_v30  ;;  %v5302_v33 = vunpack.c.l.b16 %v5917_v45  ;;  %v3863_v28 = vmax.f32 %v3861_v13, %v3862_v41 }
 0x1cd   : > { %v3869_v11 = vrot.slane %v3868_v53, 2  ;;  %v3876_v22 = vrot.slane %v3875_v0, 2  ;;  %v3882_v4 = vmax.f32 %v3880_v37, %v3881_v32  ;;  %v1183_v29 = vcombine.high %v895_v46, %v895_v46  ;;  %v6867_v37 = vpop.f32.mrb[18].mxu0 }
 0x1ce   : > { %v5448_v15 = vsel %vm5431_vm8, %v5300_v49, %v5447_v56  ;;  %v3864_v35 = vrot.slane %v3863_v28, 1  ;;  %v1190_v34 = vrot.slane %v895_v46, %v6338_v50  ;;  %v931_v14 = vmax.f32 %v779_v3, 0.0 }
 0x1cf   : > { %v5449_v2 = vsel %vm5433_vm9, %v5301_v16, %v5448_v15  ;;  %v3870_v60 = vmax.f32 %v3868_v53, %v3869_v11  ;;  %v3877_v58 = vmax.f32 %v3875_v0, %v3876_v22  ;;  %v3883_v47 = vrot.slane %v3882_v4, 2 }
 0x1d0   : > { %v5450_v8 = vsel %vm5435_vm10, %v5302_v33, %v5449_v2  ;;  %v3865_v27 = vmax.f32 %v3863_v28, %v3864_v35  ;;  %v1197_v25 = vrot.slane %v1183_v29, %v6338_v50  ;;  %v1198_v57 = vcombine.high %v1190_v34, %v1190_v34 }
 0x1d1   : > { %v5558_v21 = vpack.c.b16 %v5450_v8, %v5450_v8  ;;  %v3871_v54 = vrot.slane %v3870_v60, 1  ;;  %v3878_v13 = vrot.slane %v3877_v58, 1  ;;  %v3884_v52 = vmax.f32 %v3882_v4, %v3883_v47 }
 0x1d2   : > { %v4651_v10 = vmax.f32 %v6819_v42, %v3865_v27  ;;  %v1199_v46 = vcombine.high %v1197_v25, %v1197_v25  ;;  %v2795_v3 = vsel %vm2542_vm3, %v1190_v34, -inf  ;;  %v2802_v39 = vsel %vm2542_vm3, %v1198_v57, -inf }
 0x1d3   : > { %5594 = vst [vmem:[%s6637_s29 + $0x8] sm:$0xf] %v5558_v21  ;;  %v3872_v7 = vmax.f32 %v3870_v60, %v3871_v54  ;;  %v3879_v30 = vmax.f32 %v3877_v58, %v3878_v13  ;;  %v3885_v45 = vrot.slane %v3884_v52, 1  ;;  %v2796_v41 = vrot.slane %v2795_v3, 4 }
 0x1d4   : > { %v5986_v56 = vpack.c.bf16 %v4651_v10, %v4651_v10  ;;  %v2803_v53 = vrot.slane %v2802_v39, 4  ;;  %v2809_v0 = vsel %vm2542_vm3, %v1197_v25, -inf  ;;  %v2816_v32 = vsel %vm2542_vm3, %v1199_v46, -inf }
 0x1d5   : > { %v3886_v49 = vmax.f32 %v3884_v52, %v3885_v45  ;;  %v4652_v42 = vmax.f32 %v6823_v63, %v3872_v7  ;;  %v4653_v16 = vmax.f32 %v6825_v40, %v3879_v30  ;;  %v2797_v33 = vmax.f32 %v2795_v3, %v2796_v41 }
 0x1d6   : > { %v5371_v28 = vunpack.c.l.b16 %v5986_v56  ;;  %v2804_v11 = vmax.f32 %v2802_v39, %v2803_v53  ;;  %v2810_v22 = vrot.slane %v2809_v0, 4  ;;  %v2817_v4 = vrot.slane %v2816_v32, 4 }
 0x1d7   : > { %v4654_v29 = vmax.f32 %v6829_v55, %v3886_v49  ;;  %v5987_v15 = vpack.c.bf16 %v4652_v42, %v4652_v42  ;;  %v5988_v35 = vpack.c.bf16 %v4653_v16, %v4653_v16  ;;  %v2798_v34 = vrot.slane %v2797_v33, 2 }
 0x1d8   : > { %v5510_v2 = vsel %vm5429_vm7, %v5371_v28, %v6834_v43  ;;  %v2805_v60 = vrot.slane %v2804_v11, 2  ;;  %v2811_v58 = vmax.f32 %v2809_v0, %v2810_v22  ;;  %v2818_v47 = vmax.f32 %v2816_v32, %v2817_v4  ;;  %v6887_v4 = vpop.f32.mrb[18].mxu1 }
 0x1d9   : > { %v5989_v8 = vpack.c.bf16 %v4654_v29, %v4654_v29  ;;  %v5372_v63 = vunpack.c.l.b16 %v5987_v15  ;;  %v5373_v27 = vunpack.c.l.b16 %v5988_v35  ;;  %v2799_v40 = vmax.f32 %v2797_v33, %v2798_v34 }
 0x1da   : > { %v2806_v25 = vmax.f32 %v2804_v11, %v2805_v60  ;;  %v2812_v57 = vrot.slane %v2811_v58, 2  ;;  %v2819_v21 = vrot.slane %v2818_v47, 2  ;;  %v1795_v54 = vcombine.high %v931_v14, %v931_v14 }
 0x1db   : > { %v5374_v13 = vunpack.c.l.b16 %v5989_v8  ;;  %v5511_v55 = vsel %vm5431_vm8, %v5372_v63, %v5510_v2  ;;  %v2800_v52 = vrot.slane %v2799_v40, 1  ;;  %v1802_v10 = vrot.slane %v931_v14, %v6338_v50 }
 0x1dc   : > { %v5512_v46 = vsel %vm5433_vm9, %v5373_v27, %v5511_v55  ;;  %v2807_v43 = vrot.slane %v2806_v25, 1  ;;  %v2813_v3 = vmax.f32 %v2811_v58, %v2812_v57  ;;  %v2820_v39 = vmax.f32 %v2818_v47, %v2819_v21 }
 0x1dd   : > { %v5513_v7 = vsel %vm5435_vm10, %v5374_v13, %v5512_v46  ;;  %v2801_v30 = vmax.f32 %v2799_v40, %v2800_v52  ;;  %v1809_v45 = vrot.slane %v1795_v54, %v6338_v50  ;;  %v1810_v41 = vcombine.high %v1802_v10, %v1802_v10 }
 0x1de   : > { %v5567_v56 = vpack.c.b16 %v5513_v7, %v5513_v7  ;;  %v2808_v53 = vmax.f32 %v2806_v25, %v2807_v43  ;;  %v2814_v0 = vrot.slane %v2813_v3, 1  ;;  %v2821_v32 = vrot.slane %v2820_v39, 1 }
 0x1df   : > { %v4571_v49 = vmax.f32 %v6549_v48, %v2801_v30  ;;  %v1811_v42 = vcombine.high %v1809_v45, %v1809_v45  ;;  %v3803_v14 = vsel %vm2542_vm3, %v1802_v10, -inf  ;;  %v3810_v16 = vsel %vm2542_vm3, %v1810_v41, -inf }
 0x1e0   : > { %5603 = vst [vmem:[%s6637_s29 + $0x2c] sm:$0xf] %v5567_v56  ;;  %v2815_v33 = vmax.f32 %v2813_v3, %v2814_v0  ;;  %v2822_v28 = vmax.f32 %v2820_v39, %v2821_v32  ;;  %v4572_v11 = vmax.f32 %v6551_v12, %v2808_v53  ;;  %v3804_v22 = vrot.slane %v3803_v14, 4 }
 0x1e1   : > { %v5906_v29 = vpack.c.bf16 %v4571_v49, %v4571_v49  ;;  %v3811_v15 = vrot.slane %v3810_v16, 4  ;;  %v3817_v35 = vsel %vm2542_vm3, %v1809_v45, -inf  ;;  %v3824_v34 = vsel %vm2542_vm3, %v1811_v42, -inf }
 0x1e2   : > { %v4573_v48 = vmax.f32 %v6555_v44, %v2815_v33  ;;  %v4574_v2 = vmax.f32 %v6557_v26, %v2822_v28  ;;  %v5907_v60 = vpack.c.bf16 %v4572_v11, %v4572_v11  ;;  %v3805_v58 = vmax.f32 %v3803_v14, %v3804_v22  ;;  %v6908_v33 = vld [vmem:[%s7931_s2] ss:$0 sm:$0xff]  ;;  %v6917_v22 = vpop.f32.mrb[19].mxu0 }
 0x1e3   : > { %v5291_v47 = vunpack.c.l.b16 %v5906_v29  ;;  %v3812_v8 = vmax.f32 %v3810_v16, %v3811_v15  ;;  %v3818_v63 = vrot.slane %v3817_v35, 4  ;;  %v3825_v27 = vrot.slane %v3824_v34, 4 }
 0x1e4   : > { %v5908_v12 = vpack.c.bf16 %v4573_v48, %v4573_v48  ;;  %v5909_v40 = vpack.c.bf16 %v4574_v2, %v4574_v2  ;;  %v5292_v25 = vunpack.c.l.b16 %v5907_v60  ;;  %v3806_v57 = vrot.slane %v3805_v58, 2 }
 0x1e5   : > { %v5440_v21 = vsel %vm5429_vm7, %v5291_v47, %v6841_v20  ;;  %v3813_v54 = vrot.slane %v3812_v8, 2  ;;  %v3819_v13 = vmax.f32 %v3817_v35, %v3818_v63  ;;  %v3826_v55 = vmax.f32 %v3824_v34, %v3825_v27 }
 0x1e6   : > { %v5293_v52 = vunpack.c.l.b16 %v5908_v12  ;;  %v5294_v44 = vunpack.c.l.b16 %v5909_v40  ;;  %v5441_v26 = vsel %vm5431_vm8, %v5292_v25, %v5440_v21  ;;  %v3807_v10 = vmax.f32 %v3805_v58, %v3806_v57  ;;  %v7941_v58 = vld [vmem:[#allocation4_spill] sm:$0xff] }
 0x1e7   : > { %v3814_v46 = vmax.f32 %v3812_v8, %v3813_v54  ;;  %v3820_v43 = vrot.slane %v3819_v13, 2  ;;  %v3827_v3 = vrot.slane %v3826_v55, 2  ;;  %v5502_v39 = vsel %vm5427_vm6, %v6737_v5, %v6740_v17 }
 0x1e8   : > { %v5442_v7 = vsel %vm5433_vm9, %v5293_v52, %v5441_v26  ;;  %v3808_v30 = vrot.slane %v3807_v10, 1  ;;  %v656_v20 = vadd.f32 %v6657_v61, %v6616_v36  ;;  %v800_v45 = vadd.f32 %v6657_v61, %v6647_v18 }
 0x1e9   : > { %v5443_v41 = vsel %vm5435_vm10, %v5294_v44, %v5442_v7  ;;  %v3815_v56 = vrot.slane %v3814_v46, 1  ;;  %v3821_v53 = vmax.f32 %v3819_v13, %v3820_v43  ;;  %v3828_v0 = vmax.f32 %v3826_v55, %v3827_v3  ;;  %v6927_v13 = vpop.f32.mrb[19].mxu1 }
 0x1ea   : > { %v5557_v32 = vpack.c.b16 %v5443_v41, %v5443_v41  ;;  %v3809_v49 = vmax.f32 %v3807_v10, %v3808_v30  ;;  %v900_v42 = vmax.f32 %v656_v20, 0.0  ;;  %v936_v14 = vmax.f32 %v800_v45, 0.0 }
 0x1eb   : > { %v3816_v5 = vmax.f32 %v3814_v46, %v3815_v56  ;;  %v3822_v17 = vrot.slane %v3821_v53, 1  ;;  %v3829_v16 = vrot.slane %v3828_v0, 1  ;;  %v6912_v36 = vadd.f32 %v6908_v33, %v6671_v19 }
 0x1ec   : > { %5593 = vst [vmem:[%s6637_s29 + $0x4] sm:$0xf] %v5557_v32  ;;  %v4643_v18 = vmax.f32 %v6564_v23, %v3809_v49  ;;  %v1268_v61 = vcombine.high %v900_v42, %v900_v42  ;;  %v1275_v28 = vrot.slane %v900_v42, %v6338_v50  ;;  %v1880_v11 = vcombine.high %v936_v14, %v936_v14 }
 0x1ed   : > { %v3823_v29 = vmax.f32 %v3821_v53, %v3822_v17  ;;  %v3830_v15 = vmax.f32 %v3828_v0, %v3829_v16  ;;  %v4644_v35 = vmax.f32 %v6568_v6, %v3816_v5  ;;  %v1887_v34 = vrot.slane %v936_v14, %v6338_v50 }
 0x1ee   : > { %v5978_v48 = vpack.c.bf16 %v4643_v18, %v4643_v18  ;;  %v1282_v2 = vrot.slane %v1268_v61, %v6338_v50  ;;  %v1283_v19 = vcombine.high %v1275_v28, %v1275_v28  ;;  %v2935_v60 = vsel %vm2542_vm3, %v1275_v28, -inf }
 0x1ef   : > { %v4645_v23 = vmax.f32 %v6578_v1, %v3823_v29  ;;  %v4646_v47 = vmax.f32 %v7941_v58, %v3830_v15  ;;  %v5979_v8 = vpack.c.bf16 %v4644_v35, %v4644_v35  ;;  %v2936_v63 = vrot.slane %v2935_v60, 4 }
 0x1f0   : > { %v5363_v27 = vunpack.c.l.b16 %v5978_v48  ;;  %v1284_v12 = vcombine.high %v1282_v2, %v1282_v2  ;;  %v2942_v40 = vsel %vm2542_vm3, %v1283_v19, -inf  ;;  %v2949_v6 = vsel %vm2542_vm3, %v1282_v2, -inf }
 0x1f1   : > { %v5980_v25 = vpack.c.bf16 %v4645_v23, %v4645_v23  ;;  %v5981_v57 = vpack.c.bf16 %v4646_v47, %v4646_v47  ;;  %v5364_v21 = vunpack.c.l.b16 %v5979_v8  ;;  %v2937_v54 = vmax.f32 %v2935_v60, %v2936_v63 }
 0x1f2   : > { %v5503_v55 = vsel %vm5429_vm7, %v5363_v27, %v5502_v39  ;;  %v2943_v52 = vrot.slane %v2942_v40, 4  ;;  %v2950_v1 = vrot.slane %v2949_v6, 4  ;;  %v2956_v44 = vsel %vm2542_vm3, %v1284_v12, -inf }
 0x1f3   : > { %v5365_v26 = vunpack.c.l.b16 %v5980_v25  ;;  %v5366_v10 = vunpack.c.l.b16 %v5981_v57  ;;  %v5504_v46 = vsel %vm5431_vm8, %v5364_v21, %v5503_v55  ;;  %v2938_v43 = vrot.slane %v2937_v54, 2 }
 0x1f4   : > { %v2944_v3 = vmax.f32 %v2942_v40, %v2943_v52  ;;  %v2951_v7 = vmax.f32 %v2949_v6, %v2950_v1  ;;  %v2957_v30 = vrot.slane %v2956_v44, 4  ;;  %v1894_v20 = vrot.slane %v1880_v11, %v6338_v50  ;;  %v7942_v52 = vld [vmem:[#allocation5_spill] sm:$0xff] }
 0x1f5   : > { %v5505_v45 = vsel %vm5433_vm9, %v5365_v26, %v5504_v46  ;;  %v2939_v41 = vmax.f32 %v2937_v54, %v2938_v43  ;;  %v1895_v56 = vcombine.high %v1887_v34, %v1887_v34  ;;  %v3943_v39 = vsel %vm2542_vm3, %v1887_v34, -inf }
 0x1f6   : > { %v5506_v53 = vsel %vm5435_vm10, %v5366_v10, %v5505_v45  ;;  %v2945_v0 = vrot.slane %v2944_v3, 2  ;;  %v2952_v32 = vrot.slane %v2951_v7, 2  ;;  %v2958_v49 = vmax.f32 %v2956_v44, %v2957_v30 }
 0x1f7   : > { %v5566_v42 = vpack.c.b16 %v5506_v53, %v5506_v53  ;;  %v2940_v14 = vrot.slane %v2939_v41, 1  ;;  %v1896_v5 = vcombine.high %v1894_v20, %v1894_v20  ;;  %v3944_v17 = vrot.slane %v3943_v39, 4 }
 0x1f8   : > { %v2946_v16 = vmax.f32 %v2944_v3, %v2945_v0  ;;  %v2953_v18 = vmax.f32 %v2951_v7, %v2952_v32  ;;  %v2959_v61 = vrot.slane %v2958_v49, 2  ;;  %v3950_v28 = vsel %vm2542_vm3, %v1895_v56, -inf  ;;  %v6956_v56 = vpop.f32.mrb[20].mxu0 }
 0x1f9   : > { %5602 = vst [vmem:[%s6637_s29 + $0x28] sm:$0xf] %v5566_v42  ;;  %v6938_v11 = vmax.f32 %v2939_v41, %v2940_v14  ;;  %v3945_v29 = vmax.f32 %v3943_v39, %v3944_v17  ;;  %v3951_v15 = vrot.slane %v3950_v28, 4  ;;  %v3957_v35 = vsel %vm2542_vm3, %v1894_v20, -inf }
 0x1fa   : > { %v2947_v34 = vrot.slane %v2946_v16, 1  ;;  %v2954_v48 = vrot.slane %v2953_v18, 1  ;;  %v2960_v2 = vmax.f32 %v2958_v49, %v2959_v61  ;;  %v3958_v19 = vrot.slane %v3957_v35, 4 }
 0x1fb   : > { %v3946_v60 = vrot.slane %v3945_v29, 2  ;;  %v3952_v23 = vmax.f32 %v3950_v28, %v3951_v15  ;;  %v3964_v58 = vsel %vm2542_vm3, %v1896_v5, -inf  ;;  %v898_v47 = vmax.f32 %v6912_v36, 0.0 }
 0x1fc   : > { %v6943_v8 = vmax.f32 %v2946_v16, %v2947_v34  ;;  %v6945_v63 = vmax.f32 %v2953_v18, %v2954_v48  ;;  %v2961_v27 = vrot.slane %v2960_v2, 1  ;;  %v3959_v12 = vmax.f32 %v3957_v35, %v3958_v19  ;;  %v7943_v19 = vld [vmem:[#allocation6_spill] sm:$0xff] }
 0x1fd   : > { %v3947_v40 = vmax.f32 %v3945_v29, %v3946_v60  ;;  %v3953_v6 = vrot.slane %v3952_v23, 2  ;;  %v3965_v25 = vrot.slane %v3964_v58, 4  ;;  %v1234_v57 = vcombine.high %v898_v47, %v898_v47 }
 0x1fe   : > { %v6947_v21 = vmax.f32 %v2960_v2, %v2961_v27  ;;  %v3960_v54 = vrot.slane %v3959_v12, 2  ;;  %v1241_v55 = vrot.slane %v898_v47, %v6338_v50  ;;  %v792_v1 = vadd.f32 %v6908_v33, %v7942_v52 }
 0x1ff   : > { %v3948_v44 = vrot.slane %v3947_v40, 1  ;;  %v3954_v36 = vmax.f32 %v3952_v23, %v3953_v6  ;;  %v3966_v26 = vmax.f32 %v3964_v58, %v3965_v25  ;;  %v1248_v10 = vrot.slane %v1234_v57, %v6338_v50 }
 0x200   : > { %v3961_v46 = vmax.f32 %v3959_v12, %v3960_v54  ;;  %v1249_v43 = vcombine.high %v1241_v55, %v1241_v55  ;;  %v2879_v3 = vsel %vm2542_vm3, %v1241_v55, -inf  ;;  %v934_v7 = vmax.f32 %v792_v1, 0.0  ;;  %v6972_v1 = vpop.f32.mrb[20].mxu1 }
 0x201   : > { %v6954_v30 = vmax.f32 %v3947_v40, %v3948_v44  ;;  %v3955_v20 = vrot.slane %v3954_v36, 1  ;;  %v3967_v45 = vrot.slane %v3966_v26, 2  ;;  %v1250_v41 = vcombine.high %v1248_v10, %v1248_v10 }
 0x202   : > { %v3962_v39 = vrot.slane %v3961_v46, 1  ;;  %v2880_v53 = vrot.slane %v2879_v3, 4  ;;  %v2886_v0 = vsel %vm2542_vm3, %v1249_v43, -inf  ;;  %v2893_v32 = vsel %vm2542_vm3, %v1248_v10, -inf }
 0x203   : > { %v6960_v49 = vmax.f32 %v3954_v36, %v3955_v20  ;;  %v3968_v42 = vmax.f32 %v3966_v26, %v3967_v45  ;;  %v2887_v14 = vrot.slane %v2886_v0, 4  ;;  %v2894_v5 = vrot.slane %v2893_v32, 4 }
 0x204   : > { %v6962_v17 = vmax.f32 %v3961_v46, %v3962_v39  ;;  %v2881_v16 = vmax.f32 %v2879_v3, %v2880_v53  ;;  %v2900_v18 = vsel %vm2542_vm3, %v1250_v41, -inf  ;;  %v1846_v61 = vcombine.high %v934_v7, %v934_v7 }
 0x205   : > { %v3969_v28 = vrot.slane %v3968_v42, 1  ;;  %v2888_v29 = vmax.f32 %v2886_v0, %v2887_v14  ;;  %v2895_v15 = vmax.f32 %v2893_v32, %v2894_v5  ;;  %v2901_v35 = vrot.slane %v2900_v18, 4 }
 0x206   : > { %v2882_v34 = vrot.slane %v2881_v16, 2  ;;  %v1853_v48 = vrot.slane %v934_v7, %v6338_v50  ;;  %v1860_v2 = vrot.slane %v1846_v61, %v6338_v50  ;;  %v659_v60 = vadd.f32 %v6908_v33, %v7943_v19 }
 0x207   : > { %v6969_v23 = vmax.f32 %v3968_v42, %v3969_v28  ;;  %v2889_v58 = vrot.slane %v2888_v29, 2  ;;  %v2896_v47 = vrot.slane %v2895_v15, 2  ;;  %v2902_v27 = vmax.f32 %v2900_v18, %v2901_v35 }
 0x208   : > { %v2883_v12 = vmax.f32 %v2881_v16, %v2882_v34  ;;  %v1861_v40 = vcombine.high %v1853_v48, %v1853_v48  ;;  %v1862_v6 = vcombine.high %v1860_v2, %v1860_v2  ;;  %v3887_v25 = vsel %vm2542_vm3, %v1853_v48, -inf }
 0x209   : > { %v2890_v57 = vmax.f32 %v2888_v29, %v2889_v58  ;;  %v2897_v54 = vmax.f32 %v2895_v15, %v2896_v47  ;;  %v2903_v55 = vrot.slane %v2902_v27, 2  ;;  %v3888_v52 = vrot.slane %v3887_v25, 4 }
 0x20a   : > { %v2884_v44 = vrot.slane %v2883_v12, 1  ;;  %v3894_v36 = vsel %vm2542_vm3, %v1861_v40, -inf  ;;  %v3901_v26 = vsel %vm2542_vm3, %v1860_v2, -inf  ;;  %v3908_v10 = vsel %vm2542_vm3, %v1862_v6, -inf }
 0x20b   : > { %v2891_v46 = vrot.slane %v2890_v57, 1  ;;  %v2898_v43 = vrot.slane %v2897_v54, 1  ;;  %v2904_v3 = vmax.f32 %v2902_v27, %v2903_v55  ;;  %v3889_v7 = vmax.f32 %v3887_v25, %v3888_v52 }
 0x20c   : > { %v6977_v20 = vmax.f32 %v2883_v12, %v2884_v44  ;;  %v3895_v45 = vrot.slane %v3894_v36, 4  ;;  %v3902_v41 = vrot.slane %v3901_v26, 4  ;;  %v3909_v39 = vrot.slane %v3908_v10, 4 }
 0x20d   : > { %v6979_v53 = vmax.f32 %v2890_v57, %v2891_v46  ;;  %v6981_v0 = vmax.f32 %v2897_v54, %v2898_v43  ;;  %v2905_v32 = vrot.slane %v2904_v3, 1  ;;  %v3890_v42 = vrot.slane %v3889_v7, 2 }
 0x20e   : > { %v3896_v14 = vmax.f32 %v3894_v36, %v3895_v45  ;;  %v3903_v5 = vmax.f32 %v3901_v26, %v3902_v41  ;;  %v3910_v16 = vmax.f32 %v3908_v10, %v3909_v39  ;;  %v901_v18 = vmax.f32 %v659_v60, 0.0 }
 0x20f   : > { %v6983_v61 = vmax.f32 %v2904_v3, %v2905_v32  ;;  %v3891_v28 = vmax.f32 %v3889_v7, %v3890_v42  ;;  %v803_v29 = vadd.f32 %v6908_v33, %v6719_v24  ;;  %v651_v15 = vadd.f32 %v6908_v33, %v6735_v31 }
 0x210   : > { %v3897_v35 = vrot.slane %v3896_v14, 2  ;;  %v3904_v34 = vrot.slane %v3903_v5, 2  ;;  %v3911_v48 = vrot.slane %v3910_v16, 2  ;;  %v1285_v2 = vcombine.high %v901_v18, %v901_v18 }
 0x211   : > { %v3892_v19 = vrot.slane %v3891_v28, 1  ;;  %v1292_v58 = vrot.slane %v901_v18, %v6338_v50  ;;  %v937_v47 = vmax.f32 %v803_v29, 0.0  ;;  %v6990_v27 = vmax.f32 %v651_v15, 0.0 }
 0x212   : > { %v3898_v60 = vmax.f32 %v3896_v14, %v3897_v35  ;;  %v3905_v12 = vmax.f32 %v3903_v5, %v3904_v34  ;;  %v3912_v40 = vmax.f32 %v3910_v16, %v3911_v48  ;;  %v1299_v6 = vrot.slane %v1285_v2, %v6338_v50  ;;  %v7007_v14 = vpop.f32.mrb[21].mxu0 }
 0x213   : > { %v6993_v25 = vmax.f32 %v3891_v28, %v3892_v19  ;;  %v1300_v24 = vcombine.high %v1292_v58, %v1292_v58  ;;  %v2963_v31 = vsel %vm2542_vm3, %v1292_v58, -inf  ;;  %v1897_v57 = vcombine.high %v937_v47, %v937_v47 }
 0x214   : > { %v3899_v54 = vrot.slane %v3898_v60, 1  ;;  %v3906_v55 = vrot.slane %v3905_v12, 1  ;;  %v3913_v52 = vrot.slane %v3912_v40, 1  ;;  %v1301_v44 = vcombine.high %v1299_v6, %v1299_v6 }
 0x215   : > { %v2964_v36 = vrot.slane %v2963_v31, 4  ;;  %v2970_v26 = vsel %vm2542_vm3, %v1300_v24, -inf  ;;  %v2977_v10 = vsel %vm2542_vm3, %v1299_v6, -inf  ;;  %v1904_v46 = vrot.slane %v937_v47, %v6338_v50 }
 0x216   : > { %v6999_v43 = vmax.f32 %v3898_v60, %v3899_v54  ;;  %v7001_v3 = vmax.f32 %v3905_v12, %v3906_v55  ;;  %v7003_v7 = vmax.f32 %v3912_v40, %v3913_v52  ;;  %v2971_v45 = vrot.slane %v2970_v26, 4 }
 0x217   : > { %v2965_v41 = vmax.f32 %v2963_v31, %v2964_v36  ;;  %v2978_v39 = vrot.slane %v2977_v10, 4  ;;  %v2984_v32 = vsel %vm2542_vm3, %v1301_v44, -inf  ;;  %v1911_v42 = vrot.slane %v1897_v57, %v6338_v50 }
 0x218   : > { %v2972_v5 = vmax.f32 %v2970_v26, %v2971_v45  ;;  %v2985_v16 = vrot.slane %v2984_v32, 4  ;;  %v1912_v18 = vcombine.high %v1904_v46, %v1904_v46  ;;  %v3971_v28 = vsel %vm2542_vm3, %v1904_v46, -inf }
 0x219   : > { %v2966_v29 = vrot.slane %v2965_v41, 2  ;;  %v2979_v15 = vmax.f32 %v2977_v10, %v2978_v39  ;;  %v1913_v35 = vcombine.high %v1911_v42, %v1911_v42  ;;  %v3972_v34 = vrot.slane %v3971_v28, 4 }
 0x21a   : > { %v2973_v48 = vrot.slane %v2972_v5, 2  ;;  %v2986_v2 = vmax.f32 %v2984_v32, %v2985_v16  ;;  %v3978_v19 = vsel %vm2542_vm3, %v1912_v18, -inf  ;;  %v3985_v58 = vsel %vm2542_vm3, %v1911_v42, -inf }
 0x21b   : > { %v2967_v47 = vmax.f32 %v2965_v41, %v2966_v29  ;;  %v2980_v60 = vrot.slane %v2979_v15, 2  ;;  %v3973_v12 = vmax.f32 %v3971_v28, %v3972_v34  ;;  %v3979_v40 = vrot.slane %v3978_v19, 4 }
 0x21c   : > { %v2974_v6 = vmax.f32 %v2972_v5, %v2973_v48  ;;  %v2987_v24 = vrot.slane %v2986_v2, 2  ;;  %v3986_v31 = vrot.slane %v3985_v58, 4  ;;  %v3992_v57 = vsel %vm2542_vm3, %v1913_v35, -inf }
 0x21d   : > { %v2968_v54 = vrot.slane %v2967_v47, 1  ;;  %v2981_v55 = vmax.f32 %v2979_v15, %v2980_v60  ;;  %v3974_v52 = vrot.slane %v3973_v12, 2  ;;  %v3980_v44 = vmax.f32 %v3978_v19, %v3979_v40  ;;  %v7014_v15 = vpop.f32.mrb[21].mxu1 }
 0x21e   : > { %v2975_v36 = vrot.slane %v2974_v6, 1  ;;  %v2988_v26 = vmax.f32 %v2986_v2, %v2987_v24  ;;  %v3987_v10 = vmax.f32 %v3985_v58, %v3986_v31  ;;  %v3993_v46 = vrot.slane %v3992_v57, 4 }
 0x21f   : > { %v2969_v45 = vmax.f32 %v2967_v47, %v2968_v54  ;;  %v2982_v39 = vrot.slane %v2981_v55, 1  ;;  %v3975_v32 = vmax.f32 %v3973_v12, %v3974_v52  ;;  %v3981_v41 = vrot.slane %v3980_v44, 2 }
 0x220   : > { %v2976_v42 = vmax.f32 %v2974_v6, %v2975_v36  ;;  %v2989_v16 = vrot.slane %v2988_v26, 1  ;;  %v3988_v18 = vrot.slane %v3987_v10, 2  ;;  %v3994_v5 = vmax.f32 %v3992_v57, %v3993_v46 }
 0x221   : > { %v2983_v28 = vmax.f32 %v2981_v55, %v2982_v39  ;;  %v4583_v29 = vmax.f32 %v6977_v20, %v2969_v45  ;;  %v3976_v35 = vrot.slane %v3975_v32, 1  ;;  %v3982_v34 = vmax.f32 %v3980_v44, %v3981_v41 }
 0x222   : > { %v2990_v48 = vmax.f32 %v2988_v26, %v2989_v16  ;;  %v4584_v2 = vmax.f32 %v6979_v53, %v2976_v42  ;;  %v3989_v19 = vmax.f32 %v3987_v10, %v3988_v18  ;;  %v3995_v58 = vrot.slane %v3994_v5, 2 }
 0x223   : > { %v4585_v47 = vmax.f32 %v6981_v0, %v2983_v28  ;;  %v5918_v60 = vpack.c.bf16 %v4583_v29, %v4583_v29  ;;  %v3977_v12 = vmax.f32 %v3975_v32, %v3976_v35  ;;  %v3983_v40 = vrot.slane %v3982_v34, 1 }
 0x224   : > { %v4586_v6 = vmax.f32 %v6983_v61, %v2990_v48  ;;  %v5919_v24 = vpack.c.bf16 %v4584_v2, %v4584_v2  ;;  %v3990_v31 = vrot.slane %v3989_v19, 1  ;;  %v3996_v57 = vmax.f32 %v3994_v5, %v3995_v58 }
 0x225   : > { %v5920_v20 = vpack.c.bf16 %v4585_v47, %v4585_v47  ;;  %v5303_v54 = vunpack.c.l.b16 %v5918_v60  ;;  %v3984_v55 = vmax.f32 %v3982_v34, %v3983_v40  ;;  %v4655_v52 = vmax.f32 %v6993_v25, %v3977_v12 }
 0x226   : > { %v5921_v44 = vpack.c.bf16 %v4586_v6, %v4586_v6  ;;  %v5304_v36 = vunpack.c.l.b16 %v5919_v24  ;;  %v3991_v53 = vmax.f32 %v3989_v19, %v3990_v31  ;;  %v3997_v26 = vrot.slane %v3996_v57, 1  ;;  %v7047_v31 = vpop.f32.mrb[22].mxu0 }
 0x227   : > { %v5305_v10 = vunpack.c.l.b16 %v5920_v20  ;;  %v4656_v0 = vmax.f32 %v6999_v43, %v3984_v55  ;;  %v5990_v46 = vpack.c.bf16 %v4655_v52, %v4655_v52  ;;  %v1251_v45 = vcombine.high %v6990_v27, %v6990_v27 }
 0x228   : > { %v7023_v61 = vunpack.c.l.b16 %v5921_v44  ;;  %v5451_v39 = vsel %vm5423_vm4, %v5304_v36, %v5303_v54  ;;  %v3998_v32 = vmax.f32 %v3996_v57, %v3997_v26  ;;  %v4657_v41 = vmax.f32 %v7001_v3, %v3991_v53 }
 0x229   : > { %v7028_v25 = vsel %vm5425_vm5, %v5305_v10, %v5451_v39  ;;  %v5991_v42 = vpack.c.bf16 %v4656_v0, %v4656_v0  ;;  %v5375_v16 = vunpack.c.l.b16 %v5990_v46  ;;  %v1258_v18 = vrot.slane %v6990_v27, %v6338_v50 }
 0x22a   : > { %v4658_v43 = vmax.f32 %v7003_v7, %v3998_v32  ;;  %v5992_v5 = vpack.c.bf16 %v4657_v41, %v4657_v41  ;;  %v1265_v28 = vrot.slane %v1251_v45, %v6338_v50  ;;  %v795_v29 = vadd.f32 %v6908_v33, %v6770_v59 }
 0x22b   : > { %v5376_v35 = vunpack.c.l.b16 %v5991_v42  ;;  %v1266_v34 = vcombine.high %v1258_v18, %v1258_v18  ;;  %v2907_v3 = vsel %vm2542_vm3, %v1258_v18, -inf  ;;  %v672_v48 = vadd.f32 %v6908_v33, %v6790_v62 }
 0x22c   : > { %v5993_v2 = vpack.c.bf16 %v4658_v43, %v4658_v43  ;;  %v5377_v19 = vunpack.c.l.b16 %v5992_v5  ;;  %v1267_v58 = vcombine.high %v1265_v28, %v1265_v28  ;;  %v2908_v47 = vrot.slane %v2907_v3, 4 }
 0x22d   : > { %v5514_v27 = vsel %vm5423_vm4, %v5376_v35, %v5375_v16  ;;  %v2914_v7 = vsel %vm2542_vm3, %v1266_v34, -inf  ;;  %v2921_v60 = vsel %vm2542_vm3, %v1265_v28, -inf  ;;  %v935_v12 = vmax.f32 %v795_v29, 0.0  ;;  %v7055_v35 = vpop.f32.mrb[22].mxu1 }
 0x22e   : > { %v7042_v40 = vunpack.c.l.b16 %v5993_v2  ;;  %v7045_v59 = vsel %vm5425_vm5, %v5377_v19, %v5514_v27  ;;  %v2909_v6 = vmax.f32 %v2907_v3, %v2908_v47  ;;  %v2915_v24 = vrot.slane %v2914_v7, 4  ;;  %7944 = vst [vmem:[#allocation2_spill] sm:$0xff] %v7055_v35 }
 0x22f   : > { %v2922_v62 = vrot.slane %v2921_v60, 4  ;;  %v2928_v57 = vsel %vm2542_vm3, %v1267_v58, -inf  ;;  %v1863_v20 = vcombine.high %v935_v12, %v935_v12  ;;  %v1870_v54 = vrot.slane %v935_v12, %v6338_v50 }
 0x230   : > { %v2910_v55 = vrot.slane %v2909_v6, 2  ;;  %v2916_v52 = vmax.f32 %v2914_v7, %v2915_v24  ;;  %v2929_v44 = vrot.slane %v2928_v57, 4  ;;  %v904_v36 = vmax.f32 %v672_v48, 0.0 }
 0x231   : > { %v2923_v53 = vmax.f32 %v2921_v60, %v2922_v62  ;;  %v1877_v26 = vrot.slane %v1863_v20, %v6338_v50  ;;  %v1878_v10 = vcombine.high %v1870_v54, %v1870_v54  ;;  %v3915_v0 = vsel %vm2542_vm3, %v1870_v54, -inf }
 0x232   : > { %v2911_v46 = vmax.f32 %v2909_v6, %v2910_v55  ;;  %v2917_v45 = vrot.slane %v2916_v52, 2  ;;  %v2930_v39 = vmax.f32 %v2928_v57, %v2929_v44  ;;  %v3916_v32 = vrot.slane %v3915_v0, 4 }
 0x233   : > { %v2924_v41 = vrot.slane %v2923_v53, 2  ;;  %v1879_v42 = vcombine.high %v1877_v26, %v1877_v26  ;;  %v3922_v16 = vsel %vm2542_vm3, %v1878_v10, -inf  ;;  %v3929_v18 = vsel %vm2542_vm3, %v1877_v26, -inf }
 0x234   : > { %v2912_v43 = vrot.slane %v2911_v46, 1  ;;  %v2918_v5 = vmax.f32 %v2916_v52, %v2917_v45  ;;  %v2931_v28 = vrot.slane %v2930_v39, 2  ;;  %v3917_v29 = vmax.f32 %v3915_v0, %v3916_v32 }
 0x235   : > { %v2925_v34 = vmax.f32 %v2923_v53, %v2924_v41  ;;  %v3923_v3 = vrot.slane %v3922_v16, 4  ;;  %v3930_v48 = vrot.slane %v3929_v18, 4  ;;  %v3936_v2 = vsel %vm2542_vm3, %v1879_v42, -inf }
 0x236   : > { %v7058_v19 = vmax.f32 %v2911_v46, %v2912_v43  ;;  %v2919_v58 = vrot.slane %v2918_v5, 1  ;;  %v2932_v47 = vmax.f32 %v2930_v39, %v2931_v28  ;;  %v3918_v27 = vrot.slane %v3917_v29, 2 }
 0x237   : > { %v2926_v7 = vrot.slane %v2925_v34, 1  ;;  %v3924_v60 = vmax.f32 %v3922_v16, %v3923_v3  ;;  %v3931_v12 = vmax.f32 %v3929_v18, %v3930_v48  ;;  %v3937_v6 = vrot.slane %v3936_v2, 4 }
 0x238   : > { %v7060_v24 = vmax.f32 %v2918_v5, %v2919_v58  ;;  %v2933_v62 = vrot.slane %v2932_v47, 1  ;;  %v3919_v57 = vmax.f32 %v3917_v29, %v3918_v27  ;;  %v1336_v20 = vcombine.high %v904_v36, %v904_v36 }
 0x239   : > { %v7062_v54 = vmax.f32 %v2925_v34, %v2926_v7  ;;  %v3925_v55 = vrot.slane %v3924_v60, 2  ;;  %v3932_v52 = vrot.slane %v3931_v12, 2  ;;  %v3938_v44 = vmax.f32 %v3936_v2, %v3937_v6  ;;  %v7080_v6 = vpop.f32.mrb[23].mxu0 }
 0x23a   : > { %v7064_v53 = vmax.f32 %v2932_v47, %v2933_v62  ;;  %v3920_v26 = vrot.slane %v3919_v57, 1  ;;  %v1343_v10 = vrot.slane %v904_v36, %v6338_v50  ;;  %v1350_v0 = vrot.slane %v1336_v20, %v6338_v50  ;;  %7945 = vst [vmem:[#allocation3_spill] sm:$0xff] %v7080_v6 }
 0x23b   : > { %v3926_v46 = vmax.f32 %v3924_v60, %v3925_v55  ;;  %v3933_v45 = vmax.f32 %v3931_v12, %v3932_v52  ;;  %v3939_v39 = vrot.slane %v3938_v44, 2  ;;  %v816_v32 = vadd.f32 %v6908_v33, %v6808_v9 }
 0x23c   : > { %v7070_v41 = vmax.f32 %v3919_v57, %v3920_v26  ;;  %v1351_v42 = vcombine.high %v1343_v10, %v1343_v10  ;;  %v1352_v16 = vcombine.high %v1350_v0, %v1350_v0  ;;  %v3047_v18 = vsel %vm2542_vm3, %v1343_v10, -inf }
 0x23d   : > { %v3927_v43 = vrot.slane %v3926_v46, 1  ;;  %v3934_v5 = vrot.slane %v3933_v45, 1  ;;  %v3940_v28 = vmax.f32 %v3938_v44, %v3939_v39  ;;  %v3048_v29 = vrot.slane %v3047_v18, 4 }
 0x23e   : > { %v3054_v36 = vsel %vm2542_vm3, %v1351_v42, -inf  ;;  %v3061_v34 = vsel %vm2542_vm3, %v1350_v0, -inf  ;;  %v3068_v3 = vsel %vm2542_vm3, %v1352_v16, -inf  ;;  %v940_v48 = vmax.f32 %v816_v32, 0.0 }
 0x23f   : > { %v7076_v2 = vmax.f32 %v3926_v46, %v3927_v43  ;;  %v7078_v9 = vmax.f32 %v3933_v45, %v3934_v5  ;;  %v3941_v58 = vrot.slane %v3940_v28, 1  ;;  %v3049_v47 = vmax.f32 %v3047_v18, %v3048_v29 }
 0x240   : > { %v3055_v27 = vrot.slane %v3054_v36, 4  ;;  %v3062_v7 = vrot.slane %v3061_v34, 4  ;;  %v3069_v60 = vrot.slane %v3068_v3, 4  ;;  %v1948_v12 = vcombine.high %v940_v48, %v940_v48 }
 0x241   : > { %v7082_v62 = vmax.f32 %v3940_v28, %v3941_v58  ;;  %v3050_v57 = vrot.slane %v3049_v47, 2  ;;  %v1955_v20 = vrot.slane %v940_v48, %v6338_v50  ;;  %v664_v55 = vadd.f32 %v6908_v33, %v6821_v38 }
 0x242   : > { %v3056_v52 = vmax.f32 %v3054_v36, %v3055_v27  ;;  %v3063_v44 = vmax.f32 %v3061_v34, %v3062_v7  ;;  %v3070_v26 = vmax.f32 %v3068_v3, %v3069_v60  ;;  %v1962_v10 = vrot.slane %v1948_v12, %v6338_v50 }
 0x243   : > { %v3051_v0 = vmax.f32 %v3049_v47, %v3050_v57  ;;  %v1963_v46 = vcombine.high %v1955_v20, %v1955_v20  ;;  %v4055_v45 = vsel %vm2542_vm3, %v1955_v20, -inf  ;;  %v902_v39 = vmax.f32 %v664_v55, 0.0 }
 0x244   : > { %v3057_v32 = vrot.slane %v3056_v52, 2  ;;  %v3064_v42 = vrot.slane %v3063_v44, 2  ;;  %v3071_v16 = vrot.slane %v3070_v26, 2  ;;  %v1964_v18 = vcombine.high %v1962_v10, %v1962_v10 }
 0x245   : > { %v3052_v43 = vrot.slane %v3051_v0, 1  ;;  %v4056_v5 = vrot.slane %v4055_v45, 4  ;;  %v4062_v28 = vsel %vm2542_vm3, %v1963_v46, -inf  ;;  %v4069_v38 = vsel %vm2542_vm3, %v1962_v10, -inf }
 0x246   : > { %v3058_v29 = vmax.f32 %v3056_v52, %v3057_v32  ;;  %v3065_v36 = vmax.f32 %v3063_v44, %v3064_v42  ;;  %v3072_v34 = vmax.f32 %v3070_v26, %v3071_v16  ;;  %v4063_v3 = vrot.slane %v4062_v28, 4 }
 0x247   : > { %v7091_v48 = vmax.f32 %v3051_v0, %v3052_v43  ;;  %v4057_v58 = vmax.f32 %v4055_v45, %v4056_v5  ;;  %v4070_v47 = vrot.slane %v4069_v38, 4  ;;  %v4076_v27 = vsel %vm2542_vm3, %v1964_v18, -inf }
 0x248   : > { %v3059_v7 = vrot.slane %v3058_v29, 1  ;;  %v3066_v60 = vrot.slane %v3065_v36, 1  ;;  %v3073_v12 = vrot.slane %v3072_v34, 1  ;;  %v4064_v57 = vmax.f32 %v4062_v28, %v4063_v3 }
 0x249   : > { %v4058_v20 = vrot.slane %v4057_v58, 2  ;;  %v4071_v55 = vmax.f32 %v4069_v38, %v4070_v47  ;;  %v4077_v6 = vrot.slane %v4076_v27, 4  ;;  %v1302_v46 = vcombine.high %v902_v39, %v902_v39 }
 0x24a   : > { %v7094_v35 = vmax.f32 %v3058_v29, %v3059_v7  ;;  %v7096_v52 = vmax.f32 %v3065_v36, %v3066_v60  ;;  %v7098_v44 = vmax.f32 %v3072_v34, %v3073_v12  ;;  %v4065_v26 = vrot.slane %v4064_v57, 2  ;;  %v7117_v60 = vpop.f32.mrb[23].mxu1 }
 0x24b   : > { %v4059_v10 = vmax.f32 %v4057_v58, %v4058_v20  ;;  %v4072_v0 = vrot.slane %v4071_v55, 2  ;;  %v4078_v45 = vmax.f32 %v4076_v27, %v4077_v6  ;;  %v1309_v32 = vrot.slane %v902_v39, %v6338_v50 }
 0x24c   : > { %v4066_v42 = vmax.f32 %v4064_v57, %v4065_v26  ;;  %v1316_v16 = vrot.slane %v1302_v46, %v6338_v50  ;;  %v7105_v18 = vsel %vm5427_vm6, %v7023_v61, %v7028_v25  ;;  %v808_v43 = vadd.f32 %v6908_v33, %v6851_v51 }
 0x24d   : > { %v4060_v5 = vrot.slane %v4059_v10, 1  ;;  %v4073_v28 = vmax.f32 %v4071_v55, %v4072_v0  ;;  %v4079_v38 = vrot.slane %v4078_v45, 2  ;;  %v1317_v29 = vcombine.high %v1309_v32, %v1309_v32 }
 0x24e   : > { %v4067_v36 = vrot.slane %v4066_v42, 1  ;;  %v1318_v34 = vcombine.high %v1316_v16, %v1316_v16  ;;  %v2991_v6 = vsel %vm2542_vm3, %v1309_v32, -inf  ;;  %v3005_v39 = vsel %vm2542_vm3, %v1316_v16, -inf }
 0x24f   : > { %v7111_v3 = vmax.f32 %v4059_v10, %v4060_v5  ;;  %v4074_v58 = vrot.slane %v4073_v28, 1  ;;  %v4080_v47 = vmax.f32 %v4078_v45, %v4079_v38  ;;  %v2992_v27 = vrot.slane %v2991_v6, 4 }
 0x250   : > { %v7113_v61 = vmax.f32 %v4066_v42, %v4067_v36  ;;  %v2998_v25 = vsel %vm2542_vm3, %v1317_v29, -inf  ;;  %v3006_v51 = vrot.slane %v3005_v39, 4  ;;  %v3012_v7 = vsel %vm2542_vm3, %v1318_v34, -inf }
 0x251   : > { %v7119_v12 = vmax.f32 %v4073_v28, %v4074_v58  ;;  %v4081_v57 = vrot.slane %v4080_v47, 1  ;;  %v2993_v20 = vmax.f32 %v2991_v6, %v2992_v27  ;;  %v2999_v55 = vrot.slane %v2998_v25, 4 }
 0x252   : > { %v3007_v46 = vmax.f32 %v3005_v39, %v3006_v51  ;;  %v3013_v26 = vrot.slane %v3012_v7, 4  ;;  %v938_v10 = vmax.f32 %v808_v43, 0.0  ;;  %v7124_v0 = vsel %vm5427_vm6, %v7042_v40, %v7045_v59 }
 0x253   : > { %v7126_v45 = vmax.f32 %v4080_v47, %v4081_v57  ;;  %v2994_v32 = vrot.slane %v2993_v20, 2  ;;  %v3000_v42 = vmax.f32 %v2998_v25, %v2999_v55  ;;  %v675_v16 = vadd.f32 %v6908_v33, %v6867_v37 }
 0x254   : > { %v3008_v5 = vrot.slane %v3007_v46, 2  ;;  %v3014_v28 = vmax.f32 %v3012_v7, %v3013_v26  ;;  %v1914_v38 = vcombine.high %v938_v10, %v938_v10  ;;  %v1921_v29 = vrot.slane %v938_v10, %v6338_v50 }
 0x255   : > { %7946 = vst [vmem:[#allocation4_spill] sm:$0xff] %v7126_v45  ;;  %v2995_v36 = vmax.f32 %v2993_v20, %v2994_v32  ;;  %v3001_v34 = vrot.slane %v3000_v42, 2  ;;  %v905_v43 = vmax.f32 %v675_v16, 0.0  ;;  %v7133_v6 = vadd.f32 %v6908_v33, %v6887_v4 }
 0x256   : > { %v3009_v40 = vmax.f32 %v3007_v46, %v3008_v5  ;;  %v3015_v59 = vrot.slane %v3014_v28, 2  ;;  %v1928_v39 = vrot.slane %v1914_v38, %v6338_v50  ;;  %v1929_v58 = vcombine.high %v1921_v29, %v1921_v29 }
 0x257   : > { %v2996_v47 = vrot.slane %v2995_v36, 1  ;;  %v3002_v27 = vmax.f32 %v3000_v42, %v3001_v34  ;;  %v3999_v37 = vsel %vm2542_vm3, %v1921_v29, -inf  ;;  %v1353_v25 = vcombine.high %v905_v43, %v905_v43 }
 0x258   : > { %v3010_v51 = vrot.slane %v3009_v40, 1  ;;  %v3016_v7 = vmax.f32 %v3014_v28, %v3015_v59  ;;  %v1930_v57 = vcombine.high %v1928_v39, %v1928_v39  ;;  %v4000_v20 = vrot.slane %v3999_v37, 4 }
 0x259   : > { %v2997_v55 = vmax.f32 %v2995_v36, %v2996_v47  ;;  %v3003_v26 = vrot.slane %v3002_v27, 1  ;;  %v4006_v10 = vsel %vm2542_vm3, %v1929_v58, -inf  ;;  %v4013_v4 = vsel %vm2542_vm3, %v1928_v39, -inf }
 0x25a   : > { %v3011_v33 = vmax.f32 %v3009_v40, %v3010_v51  ;;  %v3017_v46 = vrot.slane %v3016_v7, 1  ;;  %v4001_v32 = vmax.f32 %v3999_v37, %v4000_v20  ;;  %v4007_v16 = vrot.slane %v4006_v10, 4  ;;  %v7143_v40 = vpop.f32.mrb[24].mxu0 }
 0x25b   : > { %v3004_v5 = vmax.f32 %v3002_v27, %v3003_v26  ;;  %v4587_v42 = vmax.f32 %v7058_v19, %v2997_v55  ;;  %v4014_v38 = vrot.slane %v4013_v4, 4  ;;  %v4020_v29 = vsel %vm2542_vm3, %v1930_v57, -inf }
 0x25c   : > { %v3018_v34 = vmax.f32 %v3016_v7, %v3017_v46  ;;  %v4589_v28 = vmax.f32 %v7062_v54, %v3011_v33  ;;  %v4002_v59 = vrot.slane %v4001_v32, 2  ;;  %v4008_v36 = vmax.f32 %v4006_v10, %v4007_v16 }
 0x25d   : > { %v4588_v47 = vmax.f32 %v7060_v24, %v3004_v5  ;;  %v5922_v58 = vpack.c.bf16 %v4587_v42, %v4587_v42  ;;  %v4015_v45 = vmax.f32 %v4013_v4, %v4014_v38  ;;  %v4021_v39 = vrot.slane %v4020_v29, 4 }
 0x25e   : > { %v4590_v37 = vmax.f32 %v7064_v53, %v3018_v34  ;;  %v5924_v27 = vpack.c.bf16 %v4589_v28, %v4589_v28  ;;  %v4003_v51 = vmax.f32 %v4001_v32, %v4002_v59  ;;  %v4009_v19 = vrot.slane %v4008_v36, 2 }
 0x25f   : > { %v5923_v20 = vpack.c.bf16 %v4588_v47, %v4588_v47  ;;  %v5307_v55 = vunpack.c.l.b16 %v5922_v58  ;;  %v4016_v57 = vrot.slane %v4015_v45, 2  ;;  %v4022_v7 = vmax.f32 %v4020_v29, %v4021_v39 }
 0x260   : > { %v5925_v26 = vpack.c.bf16 %v4590_v37, %v4590_v37  ;;  %v5309_v54 = vunpack.c.l.b16 %v5924_v27  ;;  %v4004_v33 = vrot.slane %v4003_v51, 1  ;;  %v4010_v10 = vmax.f32 %v4008_v36, %v4009_v19 }
 0x261   : > { %v5308_v46 = vunpack.c.l.b16 %v5923_v20  ;;  %v5454_v24 = vsel %vm5429_vm7, %v5307_v55, %v7105_v18  ;;  %v4017_v4 = vmax.f32 %v4015_v45, %v4016_v57  ;;  %v4023_v16 = vrot.slane %v4022_v7, 2 }
 0x262   : > { %v5310_v5 = vunpack.c.l.b16 %v5925_v26  ;;  %v4005_v42 = vmax.f32 %v4003_v51, %v4004_v33  ;;  %v4011_v53 = vrot.slane %v4010_v10, 1  ;;  %v1360_v32 = vrot.slane %v905_v43, %v6338_v50 }
 0x263   : > { %v5455_v38 = vsel %vm5431_vm8, %v5308_v46, %v5454_v24  ;;  %v4018_v34 = vrot.slane %v4017_v4, 1  ;;  %v4024_v28 = vmax.f32 %v4022_v7, %v4023_v16  ;;  %v1367_v29 = vrot.slane %v1353_v25, %v6338_v50 }
 0x264   : > { %v5456_v59 = vsel %vm5433_vm9, %v5309_v54, %v5455_v38  ;;  %v4012_v36 = vmax.f32 %v4010_v10, %v4011_v53  ;;  %v4659_v47 = vmax.f32 %v7070_v41, %v4005_v42  ;;  %v1368_v18 = vcombine.high %v1360_v32, %v1360_v32  ;;  %v7164_v38 = vpop.f32.mrb[24].mxu1 }
 0x265   : > { %v5457_v45 = vsel %vm5435_vm10, %v5310_v5, %v5456_v59  ;;  %v4019_v58 = vmax.f32 %v4017_v4, %v4018_v34  ;;  %v4025_v39 = vrot.slane %v4024_v28, 1  ;;  %v1369_v37 = vcombine.high %v1367_v29, %v1367_v29 }
 0x266   : > { %v5559_v27 = vpack.c.b16 %v5457_v45, %v5457_v45  ;;  %v4660_v43 = vmax.f32 %v7076_v2, %v4012_v36  ;;  %v5994_v51 = vpack.c.bf16 %v4659_v47, %v4659_v47  ;;  %v3075_v19 = vsel %vm2542_vm3, %v1360_v32, -inf }
 0x267   : > { %v4026_v20 = vmax.f32 %v4024_v28, %v4025_v39  ;;  %v4661_v25 = vmax.f32 %v7078_v9, %v4019_v58  ;;  %v3076_v55 = vrot.slane %v3075_v19, 4  ;;  %v3082_v57 = vsel %vm2542_vm3, %v1368_v18, -inf }
 0x268   : > { %5595 = vst [vmem:[%s6637_s29 + $0xc] sm:$0xf] %v5559_v27  ;;  %v5995_v41 = vpack.c.bf16 %v4660_v43, %v4660_v43  ;;  %v5379_v7 = vunpack.c.l.b16 %v5994_v51  ;;  %v3083_v26 = vrot.slane %v3082_v57, 4  ;;  %v3089_v54 = vsel %vm2542_vm3, %v1367_v29, -inf  ;;  %v7174_v51 = vld [vmem:[%s7931_s2] ss:$0 sm:$0xff] }
 0x269   : > { %v4662_v33 = vmax.f32 %v7082_v62, %v4026_v20  ;;  %v5996_v10 = vpack.c.bf16 %v4661_v25, %v4661_v25  ;;  %v3077_v46 = vmax.f32 %v3075_v19, %v3076_v55  ;;  %v3090_v2 = vrot.slane %v3089_v54, 4 }
 0x26a   : > { %v5380_v24 = vunpack.c.l.b16 %v5995_v41  ;;  %v5517_v4 = vsel %vm5429_vm7, %v5379_v7, %v7124_v0  ;;  %v3084_v16 = vmax.f32 %v3082_v57, %v3083_v26  ;;  %v3096_v9 = vsel %vm2542_vm3, %v1369_v37, -inf }
 0x26b   : > { %v5997_v5 = vpack.c.bf16 %v4662_v33, %v4662_v33  ;;  %v5381_v42 = vunpack.c.l.b16 %v5996_v10  ;;  %v3078_v53 = vrot.slane %v3077_v46, 2  ;;  %v3091_v32 = vmax.f32 %v3089_v54, %v3090_v2 }
 0x26c   : > { %v5518_v34 = vsel %vm5431_vm8, %v5380_v24, %v5517_v4  ;;  %v3085_v28 = vrot.slane %v3084_v16, 2  ;;  %v3097_v62 = vrot.slane %v3096_v9, 4  ;;  %v941_v29 = vmax.f32 %v7133_v6, 0.0 }
 0x26d   : > { %v5382_v59 = vunpack.c.l.b16 %v5997_v5  ;;  %v5519_v36 = vsel %vm5433_vm9, %v5381_v42, %v5518_v34  ;;  %v3079_v47 = vmax.f32 %v3077_v46, %v3078_v53  ;;  %v3092_v0 = vrot.slane %v3091_v32, 2  ;;  %v7189_v53 = vpop.f32.mrb[25].mxu0 }
 0x26e   : > { %v3086_v18 = vmax.f32 %v3084_v16, %v3085_v28  ;;  %v3098_v45 = vmax.f32 %v3096_v9, %v3097_v62  ;;  %v1965_v58 = vcombine.high %v941_v29, %v941_v29  ;;  %v1972_v39 = vrot.slane %v941_v29, %v6338_v50 }
 0x26f   : > { %v5520_v37 = vsel %vm5435_vm10, %v5382_v59, %v5519_v36  ;;  %v3080_v27 = vrot.slane %v3079_v47, 1  ;;  %v3093_v43 = vmax.f32 %v3091_v32, %v3092_v0  ;;  %v667_v6 = vadd.f32 %v7174_v51, %v6917_v22 }
 0x270   : > { %v5568_v19 = vpack.c.b16 %v5520_v37, %v5520_v37  ;;  %v3087_v20 = vrot.slane %v3086_v18, 1  ;;  %v3099_v25 = vrot.slane %v3098_v45, 2  ;;  %v1979_v55 = vrot.slane %v1965_v58, %v6338_v50 }
 0x271   : > { %v7179_v57 = vmax.f32 %v3079_v47, %v3080_v27  ;;  %v3094_v41 = vrot.slane %v3093_v43, 1  ;;  %v1980_v7 = vcombine.high %v1972_v39, %v1972_v39  ;;  %v4083_v26 = vsel %vm2542_vm3, %v1972_v39, -inf }
 0x272   : > { %5604 = vst [vmem:[%s6637_s29 + $0x30] sm:$0xf] %v5568_v19  ;;  %v7183_v54 = vmax.f32 %v3086_v18, %v3087_v20  ;;  %v3100_v33 = vmax.f32 %v3098_v45, %v3099_v25  ;;  %v1981_v10 = vcombine.high %v1979_v55, %v1979_v55  ;;  %v4084_v46 = vrot.slane %v4083_v26, 4 }
 0x273   : > { %v7185_v2 = vmax.f32 %v3093_v43, %v3094_v41  ;;  %v4090_v22 = vsel %vm2542_vm3, %v1980_v7, -inf  ;;  %v4097_v24 = vsel %vm2542_vm3, %v1979_v55, -inf  ;;  %v903_v4 = vmax.f32 %v667_v6, 0.0 }
 0x274   : > { %v3101_v16 = vrot.slane %v3100_v33, 1  ;;  %v4085_v9 = vmax.f32 %v4083_v26, %v4084_v46  ;;  %v4091_v5 = vrot.slane %v4090_v22, 4  ;;  %v4098_v42 = vrot.slane %v4097_v24, 4 }
 0x275   : > { %v4104_v32 = vsel %vm2542_vm3, %v1981_v10, -inf  ;;  %v1319_v34 = vcombine.high %v903_v4, %v903_v4  ;;  %v1326_v28 = vrot.slane %v903_v4, %v6338_v50  ;;  %v811_v62 = vadd.f32 %v7174_v51, %v6927_v13 }
 0x276   : > { %v7195_v29 = vmax.f32 %v3100_v33, %v3101_v16  ;;  %v4086_v59 = vrot.slane %v4085_v9, 2  ;;  %v4092_v36 = vmax.f32 %v4090_v22, %v4091_v5  ;;  %v4099_v47 = vmax.f32 %v4097_v24, %v4098_v42 }
 0x277   : > { %v4105_v0 = vrot.slane %v4104_v32, 4  ;;  %v1333_v18 = vrot.slane %v1319_v34, %v6338_v50  ;;  %v1334_v45 = vcombine.high %v1326_v28, %v1326_v28  ;;  %v3019_v58 = vsel %vm2542_vm3, %v1326_v28, -inf }
 0x278   : > { %v4087_v39 = vmax.f32 %v4085_v9, %v4086_v59  ;;  %v4093_v37 = vrot.slane %v4092_v36, 2  ;;  %v4100_v27 = vrot.slane %v4099_v47, 2  ;;  %v3020_v43 = vrot.slane %v3019_v58, 4  ;;  %v7204_v9 = vpop.f32.mrb[25].mxu1 }
 0x279   : > { %v4106_v6 = vmax.f32 %v4104_v32, %v4105_v0  ;;  %v1335_v19 = vcombine.high %v1333_v18, %v1333_v18  ;;  %v3026_v20 = vsel %vm2542_vm3, %v1334_v45, -inf  ;;  %v3033_v13 = vsel %vm2542_vm3, %v1333_v18, -inf }
 0x27a   : > { %v4088_v25 = vrot.slane %v4087_v39, 1  ;;  %v4094_v55 = vmax.f32 %v4092_v36, %v4093_v37  ;;  %v4101_v41 = vmax.f32 %v4099_v47, %v4100_v27  ;;  %v3021_v7 = vmax.f32 %v3019_v58, %v3020_v43 }
 0x27b   : > { %v4107_v26 = vrot.slane %v4106_v6, 2  ;;  %v3027_v33 = vrot.slane %v3026_v20, 4  ;;  %v3034_v10 = vrot.slane %v3033_v13, 4  ;;  %v3040_v46 = vsel %vm2542_vm3, %v1335_v19, -inf }
 0x27c   : > { %v7202_v22 = vmax.f32 %v4087_v39, %v4088_v25  ;;  %v4095_v24 = vrot.slane %v4094_v55, 1  ;;  %v4102_v4 = vrot.slane %v4101_v41, 1  ;;  %v3022_v16 = vrot.slane %v3021_v7, 2 }
 0x27d   : > { %v4108_v5 = vmax.f32 %v4106_v6, %v4107_v26  ;;  %v3028_v42 = vmax.f32 %v3026_v20, %v3027_v33  ;;  %v3035_v32 = vmax.f32 %v3033_v13, %v3034_v10  ;;  %v3041_v34 = vrot.slane %v3040_v46, 4 }
 0x27e   : > { %v7206_v28 = vmax.f32 %v4094_v55, %v4095_v24  ;;  %v7208_v59 = vmax.f32 %v4101_v41, %v4102_v4  ;;  %v3023_v36 = vmax.f32 %v3021_v7, %v3022_v16  ;;  %v939_v47 = vmax.f32 %v811_v62, 0.0 }
 0x27f   : > { %v4109_v0 = vrot.slane %v4108_v5, 1  ;;  %v3029_v18 = vrot.slane %v3028_v42, 2  ;;  %v3036_v45 = vrot.slane %v3035_v32, 2  ;;  %v3042_v58 = vmax.f32 %v3040_v46, %v3041_v34 }
 0x280   : > { %v3024_v39 = vrot.slane %v3023_v36, 1  ;;  %v1931_v37 = vcombine.high %v939_v47, %v939_v47  ;;  %v1938_v27 = vrot.slane %v939_v47, %v6338_v50  ;;  %v688_v43 = vadd.f32 %v7174_v51, %v6956_v56 }
 0x281   : > { %v7213_v6 = vmax.f32 %v4108_v5, %v4109_v0  ;;  %v3030_v19 = vmax.f32 %v3028_v42, %v3029_v18  ;;  %v3037_v20 = vmax.f32 %v3035_v32, %v3036_v45  ;;  %v3043_v13 = vrot.slane %v3042_v58, 2  ;;  %v7221_v18 = vpop.f32.mrb[26].mxu0 }
 0x282   : > { %v3025_v25 = vmax.f32 %v3023_v36, %v3024_v39  ;;  %v1945_v55 = vrot.slane %v1931_v37, %v6338_v50  ;;  %v1946_v62 = vcombine.high %v1938_v27, %v1938_v27  ;;  %v4027_v41 = vsel %vm2542_vm3, %v1938_v27, -inf }
 0x283   : > { %v3031_v7 = vrot.slane %v3030_v19, 1  ;;  %v3038_v26 = vrot.slane %v3037_v20, 1  ;;  %v3044_v33 = vmax.f32 %v3042_v58, %v3043_v13  ;;  %v4028_v10 = vrot.slane %v4027_v41, 4 }
 0x284   : > { %v4591_v46 = vmax.f32 %v6938_v11, %v3025_v25  ;;  %v1947_v24 = vcombine.high %v1945_v55, %v1945_v55  ;;  %v4034_v56 = vsel %vm2542_vm3, %v1946_v62, -inf  ;;  %v4041_v4 = vsel %vm2542_vm3, %v1945_v55, -inf }
 0x285   : > { %v3032_v16 = vmax.f32 %v3030_v19, %v3031_v7  ;;  %v3039_v5 = vmax.f32 %v3037_v20, %v3038_v26  ;;  %v3045_v42 = vrot.slane %v3044_v33, 1  ;;  %v4029_v32 = vmax.f32 %v4027_v41, %v4028_v10 }
 0x286   : > { %v5926_v34 = vpack.c.bf16 %v4591_v46, %v4591_v46  ;;  %v4035_v36 = vrot.slane %v4034_v56, 4  ;;  %v4042_v47 = vrot.slane %v4041_v4, 4  ;;  %v4048_v0 = vsel %vm2542_vm3, %v1947_v24, -inf }
 0x287   : > { %v3046_v45 = vmax.f32 %v3044_v33, %v3045_v42  ;;  %v4592_v58 = vmax.f32 %v6943_v8, %v3032_v16  ;;  %v4593_v11 = vmax.f32 %v6945_v63, %v3039_v5  ;;  %v4030_v39 = vrot.slane %v4029_v32, 2 }
 0x288   : > { %v5311_v37 = vunpack.c.l.b16 %v5926_v34  ;;  %v4036_v27 = vmax.f32 %v4034_v56, %v4035_v36  ;;  %v4043_v13 = vmax.f32 %v4041_v4, %v4042_v47  ;;  %v4049_v19 = vrot.slane %v4048_v0, 4  ;;  %v7226_v56 = vpop.f32.mrb[26].mxu1 }
 0x289   : > { %v4594_v20 = vmax.f32 %v6947_v21, %v3046_v45  ;;  %v5927_v25 = vpack.c.bf16 %v4592_v58, %v4592_v58  ;;  %v5928_v55 = vpack.c.bf16 %v4593_v11, %v4593_v11  ;;  %v4031_v62 = vmax.f32 %v4029_v32, %v4030_v39 }
 0x28a   : > { %v4037_v41 = vrot.slane %v4036_v27, 2  ;;  %v4044_v7 = vrot.slane %v4043_v13, 2  ;;  %v4050_v26 = vmax.f32 %v4048_v0, %v4049_v19  ;;  %v908_v10 = vmax.f32 %v688_v43, 0.0 }
 0x28b   : > { %v5929_v46 = vpack.c.bf16 %v4594_v20, %v4594_v20  ;;  %v5312_v33 = vunpack.c.l.b16 %v5927_v25  ;;  %v5313_v24 = vunpack.c.l.b16 %v5928_v55  ;;  %v4032_v8 = vrot.slane %v4031_v62, 1 }
 0x28c   : > { %v4038_v16 = vmax.f32 %v4036_v27, %v4037_v41  ;;  %v4045_v63 = vmax.f32 %v4043_v13, %v4044_v7  ;;  %v4051_v5 = vrot.slane %v4050_v26, 2  ;;  %v1404_v42 = vcombine.high %v908_v10, %v908_v10 }
 0x28d   : > { %v7228_v4 = vunpack.c.l.b16 %v5929_v46  ;;  %v5458_v21 = vsel %vm5423_vm4, %v5312_v33, %v5311_v37  ;;  %v4033_v34 = vmax.f32 %v4031_v62, %v4032_v8  ;;  %v1411_v32 = vrot.slane %v908_v10, %v6338_v50 }
 0x28e   : > { %v7233_v36 = vsel %vm5425_vm5, %v5313_v24, %v5458_v21  ;;  %v4039_v43 = vrot.slane %v4038_v16, 1  ;;  %v4046_v47 = vrot.slane %v4045_v63, 1  ;;  %v4052_v0 = vmax.f32 %v4050_v26, %v4051_v5 }
 0x28f   : > { %v4663_v45 = vmax.f32 %v6954_v30, %v4033_v34  ;;  %v1418_v58 = vrot.slane %v1404_v42, %v6338_v50  ;;  %v1419_v11 = vcombine.high %v1411_v32, %v1411_v32  ;;  %v3159_v39 = vsel %vm2542_vm3, %v1411_v32, -inf }
 0x290   : > { %v4040_v27 = vmax.f32 %v4038_v16, %v4039_v43  ;;  %v4047_v13 = vmax.f32 %v4045_v63, %v4046_v47  ;;  %v4053_v19 = vrot.slane %v4052_v0, 1  ;;  %v3160_v37 = vrot.slane %v3159_v39, 4 }
 0x291   : > { %v5998_v20 = vpack.c.bf16 %v4663_v45, %v4663_v45  ;;  %v1420_v25 = vcombine.high %v1418_v58, %v1418_v58  ;;  %v3166_v55 = vsel %vm2542_vm3, %v1419_v11, -inf  ;;  %v3173_v62 = vsel %vm2542_vm3, %v1418_v58, -inf }
 0x292   : > { %v4054_v41 = vmax.f32 %v4052_v0, %v4053_v19  ;;  %v4664_v7 = vmax.f32 %v6960_v49, %v4040_v27  ;;  %v4665_v30 = vmax.f32 %v6962_v17, %v4047_v13  ;;  %v3161_v26 = vmax.f32 %v3159_v39, %v3160_v37  ;;  %v7251_v19 = vpop.f32.mrb[27].mxu0 }
 0x293   : > { %v5383_v10 = vunpack.c.l.b16 %v5998_v20  ;;  %v3167_v46 = vrot.slane %v3166_v55, 4  ;;  %v3174_v33 = vrot.slane %v3173_v62, 4  ;;  %v3180_v24 = vsel %vm2542_vm3, %v1420_v25, -inf }
 0x294   : > { %v4666_v8 = vmax.f32 %v6969_v23, %v4054_v41  ;;  %v5999_v16 = vpack.c.bf16 %v4664_v7, %v4664_v7  ;;  %v6000_v63 = vpack.c.bf16 %v4665_v30, %v4665_v30  ;;  %v3162_v5 = vrot.slane %v3161_v26, 2 }
 0x295   : > { %v3168_v42 = vmax.f32 %v3166_v55, %v3167_v46  ;;  %v3175_v21 = vmax.f32 %v3173_v62, %v3174_v33  ;;  %v3181_v34 = vrot.slane %v3180_v24, 4  ;;  %v832_v32 = vadd.f32 %v7174_v51, %v6972_v1 }
 0x296   : > { %v6001_v49 = vpack.c.bf16 %v4666_v8, %v4666_v8  ;;  %v5384_v43 = vunpack.c.l.b16 %v5999_v16  ;;  %v5385_v17 = vunpack.c.l.b16 %v6000_v63  ;;  %v3163_v47 = vmax.f32 %v3161_v26, %v3162_v5 }
 0x297   : > { %v3169_v0 = vrot.slane %v3168_v42, 2  ;;  %v3176_v45 = vrot.slane %v3175_v21, 2  ;;  %v3182_v58 = vmax.f32 %v3180_v24, %v3181_v34  ;;  %v944_v11 = vmax.f32 %v832_v32, 0.0 }
 0x298   : > { %v7246_v39 = vunpack.c.l.b16 %v6001_v49  ;;  %v5521_v23 = vsel %vm5423_vm4, %v5384_v43, %v5383_v10  ;;  %v3164_v27 = vrot.slane %v3163_v47, 1  ;;  %v680_v13 = vadd.f32 %v7174_v51, %v7007_v14 }
 0x299   : > { %v7254_v1 = vsel %vm5425_vm5, %v5385_v17, %v5521_v23  ;;  %v3170_v37 = vmax.f32 %v3168_v42, %v3169_v0  ;;  %v3177_v20 = vmax.f32 %v3175_v21, %v3176_v45  ;;  %v3183_v25 = vrot.slane %v3182_v58, 2 }
 0x29a   : > { %v3165_v55 = vmax.f32 %v3163_v47, %v3164_v27  ;;  %v2016_v62 = vcombine.high %v944_v11, %v944_v11  ;;  %v2023_v41 = vrot.slane %v944_v11, %v6338_v50  ;;  %v906_v7 = vmax.f32 %v680_v13, 0.0 }
 0x29b   : > { %v3171_v30 = vrot.slane %v3170_v37, 1  ;;  %v3178_v26 = vrot.slane %v3177_v20, 1  ;;  %v3184_v10 = vmax.f32 %v3182_v58, %v3183_v25  ;;  %v7259_v46 = vadd.f32 %v7174_v51, %v7014_v15 }
 0x29c   : > { %v4599_v14 = vmax.f32 %v7179_v57, %v3165_v55  ;;  %v2030_v33 = vrot.slane %v2016_v62, %v6338_v50  ;;  %v2031_v24 = vcombine.high %v2023_v41, %v2023_v41  ;;  %v4167_v8 = vsel %vm2542_vm3, %v2023_v41, -inf }
 0x29d   : > { %v3172_v16 = vmax.f32 %v3170_v37, %v3171_v30  ;;  %v3179_v63 = vmax.f32 %v3177_v20, %v3178_v26  ;;  %v3185_v5 = vrot.slane %v3184_v10, 1  ;;  %v4168_v42 = vrot.slane %v4167_v8, 4 }
 0x29e   : > { %v5934_v21 = vpack.c.bf16 %v4599_v14, %v4599_v14  ;;  %v2032_v34 = vcombine.high %v2030_v33, %v2030_v33  ;;  %v4174_v32 = vsel %vm2542_vm3, %v2031_v24, -inf  ;;  %v4181_v49 = vsel %vm2542_vm3, %v2030_v33, -inf  ;;  %v7271_v33 = vpop.f32.mrb[27].mxu1 }
 0x29f   : > { %v3186_v43 = vmax.f32 %v3184_v10, %v3185_v5  ;;  %v4600_v15 = vmax.f32 %v7183_v54, %v3172_v16  ;;  %v4601_v57 = vmax.f32 %v7185_v2, %v3179_v63  ;;  %v4169_v17 = vmax.f32 %v4167_v8, %v4168_v42 }
 0x2a0   : > { %v5319_v47 = vunpack.c.l.b16 %v5934_v21  ;;  %v4175_v0 = vrot.slane %v4174_v32, 4  ;;  %v4182_v45 = vrot.slane %v4181_v49, 4  ;;  %v4188_v58 = vsel %vm2542_vm3, %v2032_v34, -inf }
 0x2a1   : > { %v4602_v11 = vmax.f32 %v7195_v29, %v3186_v43  ;;  %v5935_v23 = vpack.c.bf16 %v4600_v15, %v4600_v15  ;;  %v5936_v27 = vpack.c.bf16 %v4601_v57, %v4601_v57  ;;  %v4170_v13 = vrot.slane %v4169_v17, 2 }
 0x2a2   : > { %v4176_v37 = vmax.f32 %v4174_v32, %v4175_v0  ;;  %v4183_v20 = vmax.f32 %v4181_v49, %v4182_v45  ;;  %v4189_v25 = vrot.slane %v4188_v58, 4  ;;  %v1370_v55 = vcombine.high %v906_v7, %v906_v7 }
 0x2a3   : > { %v5937_v62 = vpack.c.bf16 %v4602_v11, %v4602_v11  ;;  %v5320_v41 = vunpack.c.l.b16 %v5935_v23  ;;  %v5321_v54 = vunpack.c.l.b16 %v5936_v27  ;;  %v4171_v30 = vmax.f32 %v4169_v17, %v4170_v13 }
 0x2a4   : > { %v4177_v2 = vrot.slane %v4176_v37, 2  ;;  %v4184_v26 = vrot.slane %v4183_v20, 2  ;;  %v4190_v10 = vmax.f32 %v4188_v58, %v4189_v25  ;;  %v1377_v14 = vrot.slane %v906_v7, %v6338_v50 }
 0x2a5   : > { %v7273_v24 = vunpack.c.l.b16 %v5937_v62  ;;  %v5465_v29 = vsel %vm5423_vm4, %v5320_v41, %v5319_v47  ;;  %v4172_v8 = vrot.slane %v4171_v30, 1  ;;  %v1384_v16 = vrot.slane %v1370_v55, %v6338_v50 }
 0x2a6   : > { %v7278_v63 = vsel %vm5425_vm5, %v5321_v54, %v5465_v29  ;;  %v4178_v5 = vmax.f32 %v4176_v37, %v4177_v2  ;;  %v4185_v42 = vmax.f32 %v4183_v20, %v4184_v26  ;;  %v4191_v21 = vrot.slane %v4190_v10, 2 }
 0x2a7   : > { %v4173_v34 = vmax.f32 %v4171_v30, %v4172_v8  ;;  %v1385_v32 = vcombine.high %v1377_v14, %v1377_v14  ;;  %v1386_v49 = vcombine.high %v1384_v16, %v1384_v16  ;;  %v3103_v7 = vsel %vm2542_vm3, %v1377_v14, -inf }
 0x2a8   : > { %v4179_v43 = vrot.slane %v4178_v5, 1  ;;  %v4186_v15 = vrot.slane %v4185_v42, 1  ;;  %v4192_v57 = vmax.f32 %v4190_v10, %v4191_v21  ;;  %v3104_v17 = vrot.slane %v3103_v7, 4 }
 0x2a9   : > { %v4671_v47 = vmax.f32 %v7202_v22, %v4173_v34  ;;  %v3110_v0 = vsel %vm2542_vm3, %v1385_v32, -inf  ;;  %v3117_v45 = vsel %vm2542_vm3, %v1384_v16, -inf  ;;  %v3124_v58 = vsel %vm2542_vm3, %v1386_v49, -inf }
 0x2aa   : > { %v4180_v11 = vmax.f32 %v4178_v5, %v4179_v43  ;;  %v4187_v23 = vmax.f32 %v4185_v42, %v4186_v15  ;;  %v4193_v27 = vrot.slane %v4192_v57, 1  ;;  %v3105_v13 = vmax.f32 %v3103_v7, %v3104_v17 }
 0x2ab   : > { %v6006_v37 = vpack.c.bf16 %v4671_v47, %v4671_v47  ;;  %v3111_v20 = vrot.slane %v3110_v0, 4  ;;  %v3118_v25 = vrot.slane %v3117_v45, 4  ;;  %v3125_v55 = vrot.slane %v3124_v58, 4 }
 0x2ac   : > { %v4194_v62 = vmax.f32 %v4192_v57, %v4193_v27  ;;  %v4672_v41 = vmax.f32 %v7206_v28, %v4180_v11  ;;  %v4673_v54 = vmax.f32 %v7208_v59, %v4187_v23  ;;  %v3106_v22 = vrot.slane %v3105_v13, 2 }
 0x2ad   : > { %v5391_v30 = vunpack.c.l.b16 %v6006_v37  ;;  %v3112_v2 = vmax.f32 %v3110_v0, %v3111_v20  ;;  %v3119_v26 = vmax.f32 %v3117_v45, %v3118_v25  ;;  %v3126_v10 = vmax.f32 %v3124_v58, %v3125_v55 }
 0x2ae   : > { %v4674_v14 = vmax.f32 %v7213_v6, %v4194_v62  ;;  %v6007_v29 = vpack.c.bf16 %v4672_v41, %v4672_v41  ;;  %v6008_v8 = vpack.c.bf16 %v4673_v54, %v4673_v54  ;;  %v3107_v16 = vmax.f32 %v3105_v13, %v3106_v22  ;;  %v7308_v41 = vpop.f32.mrb[28].mxu0 }
 0x2af   : > { %v3113_v5 = vrot.slane %v3112_v2, 2  ;;  %v3120_v42 = vrot.slane %v3119_v26, 2  ;;  %v3127_v21 = vrot.slane %v3126_v10, 2  ;;  %v942_v34 = vmax.f32 %v7259_v46, 0.0 }
 0x2b0   : > { %v6009_v32 = vpack.c.bf16 %v4674_v14, %v4674_v14  ;;  %v5392_v49 = vunpack.c.l.b16 %v6007_v29  ;;  %v5393_v28 = vunpack.c.l.b16 %v6008_v8  ;;  %v3108_v7 = vrot.slane %v3107_v16, 1 }
 0x2b1   : > { %v3114_v59 = vmax.f32 %v3112_v2, %v3113_v5  ;;  %v3121_v43 = vmax.f32 %v3119_v26, %v3120_v42  ;;  %v3128_v15 = vmax.f32 %v3126_v10, %v3127_v21  ;;  %v1982_v57 = vcombine.high %v942_v34, %v942_v34  ;;  %v7312_v26 = vpop.f32.mrb[28].mxu1  ;;  %v7947_v42 = vld [vmem:[#allocation2_spill] sm:$0xff] }
 0x2b2   : > { %v7289_v17 = vunpack.c.l.b16 %v6009_v32  ;;  %v5528_v6 = vsel %vm5423_vm4, %v5392_v49, %v5391_v30  ;;  %v7292_v47 = vmax.f32 %v3107_v16, %v3108_v7  ;;  %v1989_v0 = vrot.slane %v942_v34, %v6338_v50 }
 0x2b3   : > { %v7296_v45 = vsel %vm5425_vm5, %v5393_v28, %v5528_v6  ;;  %v3115_v46 = vrot.slane %v3114_v59, 1  ;;  %v3122_v58 = vrot.slane %v3121_v43, 1  ;;  %v3129_v11 = vrot.slane %v3128_v15, 1 }
 0x2b4   : > { %v1996_v23 = vrot.slane %v1982_v57, %v6338_v50  ;;  %v1997_v27 = vcombine.high %v1989_v0, %v1989_v0  ;;  %v4111_v13 = vsel %vm2542_vm3, %v1989_v0, -inf  ;;  %v691_v37 = vadd.f32 %v7174_v51, %v7047_v31 }
 0x2b5   : > { %v7302_v20 = vmax.f32 %v3114_v59, %v3115_v46  ;;  %v7304_v25 = vmax.f32 %v3121_v43, %v3122_v58  ;;  %v7306_v55 = vmax.f32 %v3128_v15, %v3129_v11  ;;  %v4112_v62 = vrot.slane %v4111_v13, 4 }
 0x2b6   : > { %v1998_v54 = vcombine.high %v1996_v23, %v1996_v23  ;;  %v4118_v22 = vsel %vm2542_vm3, %v1997_v27, -inf  ;;  %v4125_v30 = vsel %vm2542_vm3, %v1996_v23, -inf  ;;  %v909_v2 = vmax.f32 %v691_v37, 0.0 }
 0x2b7   : > { %v4113_v10 = vmax.f32 %v4111_v13, %v4112_v62  ;;  %v4119_v14 = vrot.slane %v4118_v22, 4  ;;  %v4126_v31 = vrot.slane %v4125_v30, 4  ;;  %v7317_v29 = vsel %vm5427_vm6, %v7273_v24, %v7278_v63 }
 0x2b8   : > { %v4132_v8 = vsel %vm2542_vm3, %v1998_v54, -inf  ;;  %v1421_v16 = vcombine.high %v909_v2, %v909_v2  ;;  %v1428_v5 = vrot.slane %v909_v2, %v6338_v50  ;;  %v835_v21 = vadd.f32 %v7174_v51, %v7947_v42 }
 0x2b9   : > { %v4114_v34 = vrot.slane %v4113_v10, 2  ;;  %v4120_v32 = vmax.f32 %v4118_v22, %v4119_v14  ;;  %v4127_v49 = vmax.f32 %v4125_v30, %v4126_v31  ;;  %v4133_v28 = vrot.slane %v4132_v8, 4 }
 0x2ba   : > { %v1435_v7 = vrot.slane %v1421_v16, %v6338_v50  ;;  %v1436_v59 = vcombine.high %v1428_v5, %v1428_v5  ;;  %v3187_v43 = vsel %vm2542_vm3, %v1428_v5, -inf  ;;  %v945_v15 = vmax.f32 %v835_v21, 0.0 }
 0x2bb   : > { %v4115_v24 = vmax.f32 %v4113_v10, %v4114_v34  ;;  %v4121_v63 = vrot.slane %v4120_v32, 2  ;;  %v4128_v57 = vrot.slane %v4127_v49, 2  ;;  %v4134_v6 = vmax.f32 %v4132_v8, %v4133_v28 }
 0x2bc   : > { %v1437_v0 = vcombine.high %v1435_v7, %v1435_v7  ;;  %v3188_v46 = vrot.slane %v3187_v43, 4  ;;  %v3194_v58 = vsel %vm2542_vm3, %v1436_v59, -inf  ;;  %v3201_v11 = vsel %vm2542_vm3, %v1435_v7, -inf }
 0x2bd   : > { %v4116_v23 = vrot.slane %v4115_v24, 1  ;;  %v4122_v27 = vmax.f32 %v4120_v32, %v4121_v63  ;;  %v4129_v13 = vmax.f32 %v4127_v49, %v4128_v57  ;;  %v4135_v37 = vrot.slane %v4134_v6, 2  ;;  %v7334_v63 = vpop.f32.mrb[29].mxu0 }
 0x2be   : > { %v3189_v62 = vmax.f32 %v3187_v43, %v3188_v46  ;;  %v3195_v54 = vrot.slane %v3194_v58, 4  ;;  %v3202_v22 = vrot.slane %v3201_v11, 4  ;;  %v3208_v30 = vsel %vm2542_vm3, %v1437_v0, -inf }
 0x2bf   : > { %v7328_v2 = vmax.f32 %v4115_v24, %v4116_v23  ;;  %v4123_v10 = vrot.slane %v4122_v27, 1  ;;  %v4130_v14 = vrot.slane %v4129_v13, 1  ;;  %v4136_v31 = vmax.f32 %v4134_v6, %v4135_v37 }
 0x2c0   : > { %v3190_v8 = vrot.slane %v3189_v62, 2  ;;  %v3196_v16 = vmax.f32 %v3194_v58, %v3195_v54  ;;  %v3203_v5 = vmax.f32 %v3201_v11, %v3202_v22  ;;  %v3209_v42 = vrot.slane %v3208_v30, 4 }
 0x2c1   : > { %v7330_v21 = vmax.f32 %v4122_v27, %v4123_v10  ;;  %v7332_v34 = vmax.f32 %v4129_v13, %v4130_v14  ;;  %v4137_v32 = vrot.slane %v4136_v31, 1  ;;  %v2033_v49 = vcombine.high %v945_v15, %v945_v15 }
 0x2c2   : > { %v3191_v28 = vmax.f32 %v3189_v62, %v3190_v8  ;;  %v3197_v7 = vrot.slane %v3196_v16, 2  ;;  %v3204_v59 = vrot.slane %v3203_v5, 2  ;;  %v3210_v43 = vmax.f32 %v3208_v30, %v3209_v42 }
 0x2c3   : > { %v7336_v24 = vmax.f32 %v4136_v31, %v4137_v32  ;;  %v2040_v57 = vrot.slane %v945_v15, %v6338_v50  ;;  %v2047_v6 = vrot.slane %v2033_v49, %v6338_v50  ;;  %v7343_v0 = vsel %vm5427_vm6, %v7289_v17, %v7296_v45  ;;  %v7349_v45 = vpop.f32.mrb[29].mxu1 }
 0x2c4   : > { %v3192_v46 = vrot.slane %v3191_v28, 1  ;;  %v3198_v58 = vmax.f32 %v3196_v16, %v3197_v7  ;;  %v3205_v11 = vmax.f32 %v3203_v5, %v3204_v59  ;;  %v3211_v23 = vrot.slane %v3210_v43, 2 }
 0x2c5   : > { %v2048_v27 = vcombine.high %v2040_v57, %v2040_v57  ;;  %v2049_v13 = vcombine.high %v2047_v6, %v2047_v6  ;;  %v4195_v37 = vsel %vm2542_vm3, %v2040_v57, -inf  ;;  %v4209_v62 = vsel %vm2542_vm3, %v2047_v6, -inf }
 0x2c6   : > { %v3193_v54 = vmax.f32 %v3191_v28, %v3192_v46  ;;  %v3199_v22 = vrot.slane %v3198_v58, 1  ;;  %v3206_v15 = vrot.slane %v3205_v11, 1  ;;  %v3212_v30 = vmax.f32 %v3210_v43, %v3211_v23 }
 0x2c7   : > { %v4196_v10 = vrot.slane %v4195_v37, 4  ;;  %v4202_v14 = vsel %vm2542_vm3, %v2048_v27, -inf  ;;  %v4210_v31 = vrot.slane %v4209_v62, 4  ;;  %v4216_v17 = vsel %vm2542_vm3, %v2049_v13, -inf }
 0x2c8   : > { %v3200_v8 = vmax.f32 %v3198_v58, %v3199_v22  ;;  %v3207_v16 = vmax.f32 %v3205_v11, %v3206_v15  ;;  %v3213_v5 = vrot.slane %v3212_v30, 1  ;;  %v4603_v42 = vmax.f32 %v7292_v47, %v3193_v54 }
 0x2c9   : > { %v4197_v32 = vmax.f32 %v4195_v37, %v4196_v10  ;;  %v4203_v49 = vrot.slane %v4202_v14, 4  ;;  %v4211_v7 = vmax.f32 %v4209_v62, %v4210_v31  ;;  %v4217_v28 = vrot.slane %v4216_v17, 4 }
 0x2ca   : > { %v3214_v59 = vmax.f32 %v3212_v30, %v3213_v5  ;;  %v4604_v43 = vmax.f32 %v7302_v20, %v3200_v8  ;;  %v4605_v57 = vmax.f32 %v7304_v25, %v3207_v16  ;;  %v5938_v6 = vpack.c.bf16 %v4603_v42, %v4603_v42  ;;  %v7948_v5 = vld [vmem:[#allocation3_spill] sm:$0xff] }
 0x2cb   : > { %v4198_v46 = vrot.slane %v4197_v32, 2  ;;  %v4204_v23 = vmax.f32 %v4202_v14, %v4203_v49  ;;  %v4212_v27 = vrot.slane %v4211_v7, 2  ;;  %v4218_v13 = vmax.f32 %v4216_v17, %v4217_v28 }
 0x2cc   : > { %v4606_v58 = vmax.f32 %v7306_v55, %v3214_v59  ;;  %v5939_v11 = vpack.c.bf16 %v4604_v43, %v4604_v43  ;;  %v5940_v22 = vpack.c.bf16 %v4605_v57, %v4605_v57  ;;  %v5323_v15 = vunpack.c.l.b16 %v5938_v6 }
 0x2cd   : > { %v4199_v47 = vmax.f32 %v4197_v32, %v4198_v46  ;;  %v4205_v37 = vrot.slane %v4204_v23, 2  ;;  %v4213_v54 = vmax.f32 %v4211_v7, %v4212_v27  ;;  %v4219_v62 = vrot.slane %v4218_v13, 2 }
 0x2ce   : > { %v5941_v10 = vpack.c.bf16 %v4606_v58, %v4606_v58  ;;  %v5324_v30 = vunpack.c.l.b16 %v5939_v11  ;;  %v5325_v31 = vunpack.c.l.b16 %v5940_v22  ;;  %v5468_v20 = vsel %vm5429_vm7, %v5323_v15, %v7317_v29 }
 0x2cf   : > { %v4200_v25 = vrot.slane %v4199_v47, 1  ;;  %v4206_v8 = vmax.f32 %v4204_v23, %v4205_v37  ;;  %v4214_v14 = vrot.slane %v4213_v54, 1  ;;  %v4220_v16 = vmax.f32 %v4218_v13, %v4219_v62  ;;  %v7379_v37 = vpop.f32.mrb[30].mxu0 }
 0x2d0   : > { %v5326_v17 = vunpack.c.l.b16 %v5941_v10  ;;  %v5469_v55 = vsel %vm5431_vm8, %v5324_v30, %v5468_v20  ;;  %v683_v42 = vadd.f32 %v7174_v51, %v7948_v5  ;;  %v7363_v32 = vsel %vm5427_vm6, %v7228_v4, %v7233_v36 }
 0x2d1   : > { %v5470_v49 = vsel %vm5433_vm9, %v5325_v31, %v5469_v55  ;;  %v4201_v7 = vmax.f32 %v4199_v47, %v4200_v25  ;;  %v4207_v29 = vrot.slane %v4206_v8, 1  ;;  %v4215_v28 = vmax.f32 %v4213_v54, %v4214_v14 }
 0x2d2   : > { %v5471_v59 = vsel %vm5435_vm10, %v5326_v17, %v5470_v49  ;;  %v4221_v43 = vrot.slane %v4220_v16, 1  ;;  %v907_v57 = vmax.f32 %v683_v42, 0.0  ;;  %v827_v6 = vadd.f32 %v7174_v51, %v7117_v60 }
 0x2d3   : > { %v5561_v46 = vpack.c.b16 %v5471_v59, %v5471_v59  ;;  %v4208_v23 = vmax.f32 %v4206_v8, %v4207_v29  ;;  %v4675_v27 = vmax.f32 %v7328_v2, %v4201_v7  ;;  %v4677_v4 = vmax.f32 %v7332_v34, %v4215_v28 }
 0x2d4   : > { %v4222_v36 = vmax.f32 %v4220_v16, %v4221_v43  ;;  %v1387_v13 = vcombine.high %v907_v57, %v907_v57  ;;  %v1394_v58 = vrot.slane %v907_v57, %v6338_v50  ;;  %v943_v11 = vmax.f32 %v827_v6, 0.0 }
 0x2d5   : > { %5597 = vst [vmem:[%s6637_s29 + $0x14] sm:$0xf] %v5561_v46  ;;  %v4676_v22 = vmax.f32 %v7330_v21, %v4208_v23  ;;  %v6010_v15 = vpack.c.bf16 %v4675_v27, %v4675_v27  ;;  %v6012_v47 = vpack.c.bf16 %v4677_v4, %v4677_v4  ;;  %v7377_v60 = vsel %vm5427_vm6, %v7246_v39, %v7254_v1 }
 0x2d6   : > { %v4678_v2 = vmax.f32 %v7336_v24, %v4222_v36  ;;  %v1401_v34 = vrot.slane %v1387_v13, %v6338_v50  ;;  %v1402_v54 = vcombine.high %v1394_v58, %v1394_v58  ;;  %v3131_v62 = vsel %vm2542_vm3, %v1394_v58, -inf }
 0x2d7   : > { %v6011_v10 = vpack.c.bf16 %v4676_v22, %v4676_v22  ;;  %v5395_v30 = vunpack.c.l.b16 %v6010_v15  ;;  %v5397_v31 = vunpack.c.l.b16 %v6012_v47  ;;  %v3132_v21 = vrot.slane %v3131_v62, 4 }
 0x2d8   : > { %v6013_v20 = vpack.c.bf16 %v4678_v2, %v4678_v2  ;;  %v1403_v25 = vcombine.high %v1401_v34, %v1401_v34  ;;  %v3138_v8 = vsel %vm2542_vm3, %v1402_v54, -inf  ;;  %v3145_v39 = vsel %vm2542_vm3, %v1401_v34, -inf }
 0x2d9   : > { %v5396_v1 = vunpack.c.l.b16 %v6011_v10  ;;  %v5531_v14 = vsel %vm5429_vm7, %v5395_v30, %v7343_v0  ;;  %v3133_v24 = vmax.f32 %v3131_v62, %v3132_v21  ;;  %v3139_v16 = vrot.slane %v3138_v8, 4 }
 0x2da   : > { %v5398_v17 = vunpack.c.l.b16 %v6013_v20  ;;  %v3146_v55 = vrot.slane %v3145_v39, 4  ;;  %v3152_v5 = vsel %vm2542_vm3, %v1403_v25, -inf  ;;  %v1999_v42 = vcombine.high %v943_v11, %v943_v11  ;;  %v7398_v20 = vpop.f32.mrb[30].mxu1 }
 0x2db   : > { %v5532_v49 = vsel %vm5431_vm8, %v5396_v1, %v5531_v14  ;;  %v3134_v7 = vrot.slane %v3133_v24, 2  ;;  %v3140_v29 = vmax.f32 %v3138_v8, %v3139_v16  ;;  %v3153_v28 = vrot.slane %v3152_v5, 4 }
 0x2dc   : > { %v5533_v59 = vsel %vm5433_vm9, %v5397_v31, %v5532_v49  ;;  %v3147_v43 = vmax.f32 %v3145_v39, %v3146_v55  ;;  %v2006_v57 = vrot.slane %v943_v11, %v6338_v50  ;;  %v2013_v0 = vrot.slane %v1999_v42, %v6338_v50 }
 0x2dd   : > { %v5534_v6 = vsel %vm5435_vm10, %v5398_v17, %v5533_v59  ;;  %v3135_v46 = vmax.f32 %v3133_v24, %v3134_v7  ;;  %v3141_v23 = vrot.slane %v3140_v29, 2  ;;  %v3154_v27 = vmax.f32 %v3152_v5, %v3153_v28 }
 0x2de   : > { %v5570_v4 = vpack.c.b16 %v5534_v6, %v5534_v6  ;;  %v3148_v36 = vrot.slane %v3147_v43, 2  ;;  %v2014_v13 = vcombine.high %v2006_v57, %v2006_v57  ;;  %v2015_v58 = vcombine.high %v2013_v0, %v2013_v0 }
 0x2df   : > { %v3136_v22 = vrot.slane %v3135_v46, 1  ;;  %v3142_v15 = vmax.f32 %v3140_v29, %v3141_v23  ;;  %v3155_v47 = vrot.slane %v3154_v27, 2  ;;  %v4139_v2 = vsel %vm2542_vm3, %v2006_v57, -inf }
 0x2e0   : > { %5606 = vst [vmem:[%s6637_s29 + $0x38] sm:$0xf] %v5570_v4  ;;  %v3149_v34 = vmax.f32 %v3147_v43, %v3148_v36  ;;  %v4140_v54 = vrot.slane %v4139_v2, 4  ;;  %v4146_v11 = vsel %vm2542_vm3, %v2014_v13, -inf  ;;  %v4153_v62 = vsel %vm2542_vm3, %v2013_v0, -inf }
 0x2e1   : > { %v3137_v10 = vmax.f32 %v3135_v46, %v3136_v22  ;;  %v3143_v30 = vrot.slane %v3142_v15, 1  ;;  %v3156_v31 = vmax.f32 %v3154_v27, %v3155_v47  ;;  %v4147_v21 = vrot.slane %v4146_v11, 4 }
 0x2e2   : > { %v3150_v25 = vrot.slane %v3149_v34, 1  ;;  %v4141_v8 = vmax.f32 %v4139_v2, %v4140_v54  ;;  %v4154_v39 = vrot.slane %v4153_v62, 4  ;;  %v4160_v1 = vsel %vm2542_vm3, %v2015_v58, -inf }
 0x2e3   : > { %v3144_v14 = vmax.f32 %v3142_v15, %v3143_v30  ;;  %v3157_v24 = vrot.slane %v3156_v31, 1  ;;  %v4595_v16 = vmax.f32 %v7091_v48, %v3137_v10  ;;  %v4148_v17 = vmax.f32 %v4146_v11, %v4147_v21 }
 0x2e4   : > { %v3151_v55 = vmax.f32 %v3149_v34, %v3150_v25  ;;  %v4142_v5 = vrot.slane %v4141_v8, 2  ;;  %v4155_v42 = vmax.f32 %v4153_v62, %v4154_v39  ;;  %v4161_v49 = vrot.slane %v4160_v1, 4 }
 0x2e5   : > { %v3158_v7 = vmax.f32 %v3156_v31, %v3157_v24  ;;  %v4596_v29 = vmax.f32 %v7094_v35, %v3144_v14  ;;  %v5930_v28 = vpack.c.bf16 %v4595_v16, %v4595_v16  ;;  %v4149_v59 = vrot.slane %v4148_v17, 2 }
 0x2e6   : > { %v4597_v43 = vmax.f32 %v7096_v52, %v3151_v55  ;;  %v4143_v57 = vmax.f32 %v4141_v8, %v4142_v5  ;;  %v4156_v0 = vrot.slane %v4155_v42, 2  ;;  %v4162_v6 = vmax.f32 %v4160_v1, %v4161_v49  ;;  %v7417_v1 = vld [vmem:[%s7931_s2] ss:$0 sm:$0xff]  ;;  %v7949_v5 = vld [vmem:[#allocation4_spill] sm:$0xff] }
 0x2e7   : > { %v4598_v46 = vmax.f32 %v7098_v44, %v3158_v7  ;;  %v5931_v23 = vpack.c.bf16 %v4596_v29, %v4596_v29  ;;  %v5315_v27 = vunpack.c.l.b16 %v5930_v28  ;;  %v4150_v48 = vmax.f32 %v4148_v17, %v4149_v59  ;;  %v7422_v17 = vpop.f32.mrb[31].mxu0 }
 0x2e8   : > { %v5932_v4 = vpack.c.bf16 %v4597_v43, %v4597_v43  ;;  %v4144_v36 = vrot.slane %v4143_v57, 1  ;;  %v4157_v13 = vmax.f32 %v4155_v42, %v4156_v0  ;;  %v4163_v58 = vrot.slane %v4162_v6, 2 }
 0x2e9   : > { %v5933_v22 = vpack.c.bf16 %v4598_v46, %v4598_v46  ;;  %v5316_v15 = vunpack.c.l.b16 %v5931_v23  ;;  %v5461_v35 = vsel %vm5429_vm7, %v5315_v27, %v7363_v32  ;;  %v4151_v47 = vrot.slane %v4150_v48, 1 }
 0x2ea   : > { %v5317_v2 = vunpack.c.l.b16 %v5932_v4  ;;  %v4145_v52 = vmax.f32 %v4143_v57, %v4144_v36  ;;  %v4158_v34 = vrot.slane %v4157_v13, 1  ;;  %v4164_v54 = vmax.f32 %v4162_v6, %v4163_v58 }
 0x2eb   : > { %v5318_v11 = vunpack.c.l.b16 %v5933_v22  ;;  %v5462_v44 = vsel %vm5431_vm8, %v5316_v15, %v5461_v35  ;;  %v4152_v62 = vmax.f32 %v4150_v48, %v4151_v47  ;;  %v704_v10 = vadd.f32 %v7174_v51, %v7143_v40  ;;  %v7435_v22 = vpop.f32.mrb[31].mxu1 }
 0x2ec   : > { %v5463_v30 = vsel %vm5433_vm9, %v5317_v2, %v5462_v44  ;;  %v4159_v31 = vmax.f32 %v4157_v13, %v4158_v34  ;;  %v4165_v21 = vrot.slane %v4164_v54, 1  ;;  %v4667_v25 = vmax.f32 %v7111_v3, %v4145_v52 }
 0x2ed   : > { %v5464_v32 = vsel %vm5435_vm10, %v5318_v11, %v5463_v30  ;;  %v4668_v8 = vmax.f32 %v7113_v61, %v4152_v62  ;;  %v912_v39 = vmax.f32 %v704_v10, 0.0  ;;  %v848_v40 = vadd.f32 %v7417_v1, %v7164_v38 }
 0x2ee   : > { %v5560_v51 = vpack.c.b16 %v5464_v32, %v5464_v32  ;;  %v4166_v14 = vmax.f32 %v4164_v54, %v4165_v21  ;;  %v4669_v24 = vmax.f32 %v7119_v12, %v4159_v31  ;;  %v6002_v16 = vpack.c.bf16 %v4667_v25, %v4667_v25 }
 0x2ef   : > { %v6003_v3 = vpack.c.bf16 %v4668_v8, %v4668_v8  ;;  %v1472_v55 = vcombine.high %v912_v39, %v912_v39  ;;  %v1479_v61 = vrot.slane %v912_v39, %v6338_v50  ;;  %v948_v29 = vmax.f32 %v848_v40, 0.0 }
 0x2f0   : > { %5596 = vst [vmem:[%s6637_s29 + $0x10] sm:$0xf] %v5560_v51  ;;  %v4670_v42 = vmax.f32 %v7949_v5, %v4166_v14  ;;  %v6004_v49 = vpack.c.bf16 %v4669_v24, %v4669_v24  ;;  %v5387_v7 = vunpack.c.l.b16 %v6002_v16  ;;  %v696_v51 = vadd.f32 %v7417_v1, %v7189_v53 }
 0x2f1   : > { %v5388_v28 = vunpack.c.l.b16 %v6003_v3  ;;  %v1486_v38 = vrot.slane %v1472_v55, %v6338_v50  ;;  %v1487_v59 = vcombine.high %v1479_v61, %v1479_v61  ;;  %v3271_v43 = vsel %vm2542_vm3, %v1479_v61, -inf }
 0x2f2   : > { %v6005_v12 = vpack.c.bf16 %v4670_v42, %v4670_v42  ;;  %v5389_v57 = vunpack.c.l.b16 %v6004_v49  ;;  %v5524_v0 = vsel %vm5429_vm7, %v5387_v7, %v7377_v60  ;;  %v3272_v6 = vrot.slane %v3271_v43, 4 }
 0x2f3   : > { %v5525_v46 = vsel %vm5431_vm8, %v5388_v28, %v5524_v0  ;;  %v1488_v23 = vcombine.high %v1486_v38, %v1486_v38  ;;  %v3278_v27 = vsel %vm2542_vm3, %v1487_v59, -inf  ;;  %v3285_v48 = vsel %vm2542_vm3, %v1486_v38, -inf }
 0x2f4   : > { %v5390_v4 = vunpack.c.l.b16 %v6005_v12  ;;  %v5526_v36 = vsel %vm5433_vm9, %v5389_v57, %v5525_v46  ;;  %v3273_v13 = vmax.f32 %v3271_v43, %v3272_v6  ;;  %v3279_v58 = vrot.slane %v3278_v27, 4 }
 0x2f5   : > { %v3286_v15 = vrot.slane %v3285_v48, 4  ;;  %v3292_v35 = vsel %vm2542_vm3, %v1488_v23, -inf  ;;  %v2084_v60 = vcombine.high %v948_v29, %v948_v29  ;;  %v2091_v47 = vrot.slane %v948_v29, %v6338_v50 }
 0x2f6   : > { %v5527_v2 = vsel %vm5435_vm10, %v5390_v4, %v5526_v36  ;;  %v3274_v52 = vrot.slane %v3273_v13, 2  ;;  %v3280_v34 = vmax.f32 %v3278_v27, %v3279_v58  ;;  %v3293_v54 = vrot.slane %v3292_v35, 4 }
 0x2f7   : > { %v5569_v11 = vpack.c.b16 %v5527_v2, %v5527_v2  ;;  %v3287_v44 = vmax.f32 %v3285_v48, %v3286_v15  ;;  %v2098_v62 = vrot.slane %v2084_v60, %v6338_v50  ;;  %v2099_v10 = vcombine.high %v2091_v47, %v2091_v47  ;;  %v7465_v2 = vpop.f32.mrb[32].mxu0 }
 0x2f8   : > { %v3275_v30 = vmax.f32 %v3273_v13, %v3274_v52  ;;  %v3281_v31 = vrot.slane %v3280_v34, 2  ;;  %v3294_v21 = vmax.f32 %v3292_v35, %v3293_v54  ;;  %v4279_v25 = vsel %vm2542_vm3, %v2091_v47, -inf }
 0x2f9   : > { %5605 = vst [vmem:[%s6637_s29 + $0x34] sm:$0xf] %v5569_v11  ;;  %v3288_v32 = vrot.slane %v3287_v44, 2  ;;  %v2100_v8 = vcombine.high %v2098_v62, %v2098_v62  ;;  %v4280_v39 = vrot.slane %v4279_v25, 4  ;;  %v4286_v40 = vsel %vm2542_vm3, %v2099_v10, -inf }
 0x2fa   : > { %v3282_v14 = vmax.f32 %v3280_v34, %v3281_v31  ;;  %v4287_v24 = vrot.slane %v4286_v40, 4  ;;  %v4293_v16 = vsel %vm2542_vm3, %v2098_v62, -inf  ;;  %v3295_v3 = vrot.slane %v3294_v21, 2 }
 0x2fb   : > { %v4300_v55 = vsel %vm2542_vm3, %v2100_v8, -inf  ;;  %v3276_v61 = vrot.slane %v3275_v30, 1  ;;  %v7448_v5 = vmax.f32 %v3287_v44, %v3288_v32  ;;  %v4281_v42 = vmax.f32 %v4279_v25, %v4280_v39 }
 0x2fc   : > { %v4294_v49 = vrot.slane %v4293_v16, 4  ;;  %v910_v7 = vmax.f32 %v696_v51, 0.0  ;;  %v3283_v29 = vrot.slane %v3282_v14, 1  ;;  %v4288_v28 = vmax.f32 %v4286_v40, %v4287_v24 }
 0x2fd   : > { %v4301_v38 = vrot.slane %v4300_v55, 4  ;;  %v7450_v59 = vmax.f32 %v3294_v21, %v3295_v3  ;;  %v7453_v12 = vmax.f32 %v3275_v30, %v3276_v61  ;;  %v3290_v57 = vrot.slane %v7448_v5, 1 }
 0x2fe   : > { %v1438_v43 = vcombine.high %v910_v7, %v910_v7  ;;  %v1445_v53 = vrot.slane %v910_v7, %v6338_v50  ;;  %v4282_v0 = vrot.slane %v4281_v42, 2  ;;  %v4295_v6 = vmax.f32 %v4293_v16, %v4294_v49 }
 0x2ff   : > { %v840_v48 = vadd.f32 %v7417_v1, %v7204_v9  ;;  %v7460_v4 = vmax.f32 %v3282_v14, %v3283_v29  ;;  %v4289_v36 = vrot.slane %v4288_v28, 2  ;;  %v4302_v13 = vmax.f32 %v4300_v55, %v4301_v38 }
 0x300   : > { %v1452_v46 = vrot.slane %v1438_v43, %v6338_v50  ;;  %v1453_v23 = vcombine.high %v1445_v53, %v1445_v53  ;;  %v3215_v27 = vsel %vm2542_vm3, %v1445_v53, -inf  ;;  %v3297_v15 = vrot.slane %v7450_v59, 1 }
 0x301   : > { %v3216_v58 = vrot.slane %v3215_v27, 4  ;;  %v7467_v52 = vmax.f32 %v4281_v42, %v4282_v0  ;;  %v4296_v34 = vrot.slane %v4295_v6, 2  ;;  %v946_v62 = vmax.f32 %v840_v48, 0.0  ;;  %v7481_v0 = vpop.f32.mrb[32].mxu1 }
 0x302   : > { %v1454_v35 = vcombine.high %v1452_v46, %v1452_v46  ;;  %v3222_v60 = vsel %vm2542_vm3, %v1453_v23, -inf  ;;  %v3229_v47 = vsel %vm2542_vm3, %v1452_v46, -inf  ;;  %v707_v10 = vadd.f32 %v7417_v1, %v7221_v18 }
 0x303   : > { %v3217_v54 = vmax.f32 %v3215_v27, %v3216_v58  ;;  %v3223_v11 = vrot.slane %v3222_v60, 4  ;;  %v3230_v9 = vrot.slane %v3229_v47, 4  ;;  %v7472_v30 = vmax.f32 %v4288_v28, %v4289_v36 }
 0x304   : > { %v3236_v44 = vsel %vm2542_vm3, %v1454_v35, -inf  ;;  %v4303_v31 = vrot.slane %v4302_v13, 2  ;;  %v2050_v39 = vcombine.high %v946_v62, %v946_v62  ;;  %v2057_v40 = vrot.slane %v946_v62, %v6338_v50 }
 0x305   : > { %v3218_v21 = vrot.slane %v3217_v54, 2  ;;  %v3224_v25 = vmax.f32 %v3222_v60, %v3223_v11  ;;  %v3231_v32 = vmax.f32 %v3229_v47, %v3230_v9  ;;  %v3237_v8 = vrot.slane %v3236_v44, 4 }
 0x306   : > { %v7475_v51 = vmax.f32 %v4295_v6, %v4296_v34  ;;  %v913_v16 = vmax.f32 %v707_v10, 0.0  ;;  %v2064_v61 = vrot.slane %v2050_v39, %v6338_v50  ;;  %v2065_v18 = vcombine.high %v2057_v40, %v2057_v40 }
 0x307   : > { %v3219_v14 = vmax.f32 %v3217_v54, %v3218_v21  ;;  %v3225_v24 = vrot.slane %v3224_v25, 2  ;;  %v3232_v3 = vrot.slane %v3231_v32, 2  ;;  %v3238_v55 = vmax.f32 %v3236_v44, %v3237_v8 }
 0x308   : > { %v7478_v42 = vmax.f32 %v4302_v13, %v4303_v31  ;;  %v4223_v29 = vsel %vm2542_vm3, %v2057_v40, -inf  ;;  %v2066_v43 = vcombine.high %v2064_v61, %v2064_v61  ;;  %v4230_v46 = vsel %vm2542_vm3, %v2065_v18, -inf }
 0x309   : > { %v3220_v49 = vrot.slane %v3219_v14, 1  ;;  %v3226_v7 = vmax.f32 %v3224_v25, %v3225_v24  ;;  %v3233_v28 = vmax.f32 %v3231_v32, %v3232_v3  ;;  %v3239_v38 = vrot.slane %v3238_v55, 2 }
 0x30a   : > { %v4224_v53 = vrot.slane %v4223_v29, 4  ;;  %v4237_v23 = vsel %vm2542_vm3, %v2064_v61, -inf  ;;  %v1489_v27 = vcombine.high %v913_v16, %v913_v16  ;;  %v4231_v13 = vrot.slane %v4230_v46, 4 }
 0x30b   : > { %v3227_v6 = vrot.slane %v3226_v7, 1  ;;  %v3240_v48 = vmax.f32 %v3238_v55, %v3239_v38  ;;  %v851_v58 = vadd.f32 %v7417_v1, %v7226_v56  ;;  %v7487_v35 = vmax.f32 %v3219_v14, %v3220_v49 }
 0x30c   : > { %v4225_v36 = vmax.f32 %v4223_v29, %v4224_v53  ;;  %v4238_v60 = vrot.slane %v4237_v23, 4  ;;  %v4244_v47 = vsel %vm2542_vm3, %v2066_v43, -inf  ;;  %v1496_v34 = vrot.slane %v913_v16, %v6338_v50 }
 0x30d   : > { %v7491_v54 = vmax.f32 %v3226_v7, %v3227_v6  ;;  %v3234_v11 = vrot.slane %v3233_v28, 1  ;;  %v4232_v44 = vmax.f32 %v4230_v46, %v4231_v13  ;;  %v4245_v10 = vrot.slane %v4244_v47, 4 }
 0x30e   : > { %v4226_v9 = vrot.slane %v4225_v36, 2  ;;  %v4239_v62 = vmax.f32 %v4237_v23, %v4238_v60  ;;  %v1503_v31 = vrot.slane %v1489_v27, %v6338_v50  ;;  %v1504_v21 = vcombine.high %v1496_v34, %v1496_v34 }
 0x30f   : > { %v3241_v25 = vrot.slane %v3240_v48, 1  ;;  %v4233_v56 = vrot.slane %v4232_v44, 2  ;;  %v3299_v8 = vsel %vm2542_vm3, %v1496_v34, -inf  ;;  %v4246_v40 = vmax.f32 %v4244_v47, %v4245_v10 }
 0x310   : > { %v4227_v32 = vmax.f32 %v4225_v36, %v4226_v9  ;;  %v4240_v39 = vrot.slane %v4239_v62, 2  ;;  %v1505_v14 = vcombine.high %v1503_v31, %v1503_v31  ;;  %v3300_v24 = vrot.slane %v3299_v8, 4 }
 0x311   : > { %v4234_v3 = vmax.f32 %v4232_v44, %v4233_v56  ;;  %v3306_v55 = vsel %vm2542_vm3, %v1504_v21, -inf  ;;  %v3313_v61 = vsel %vm2542_vm3, %v1503_v31, -inf  ;;  %v4247_v49 = vrot.slane %v4246_v40, 2  ;;  %v7508_v21 = vpop.f32.mrb[33].mxu0 }
 0x312   : > { %v4228_v16 = vrot.slane %v4227_v32, 1  ;;  %v7497_v18 = vmax.f32 %v4239_v62, %v4240_v39  ;;  %v3301_v7 = vmax.f32 %v3299_v8, %v3300_v24  ;;  %v3307_v29 = vrot.slane %v3306_v55, 4 }
 0x313   : > { %v3235_v38 = vmax.f32 %v3233_v28, %v3234_v11  ;;  %v4235_v43 = vrot.slane %v4234_v3, 1  ;;  %v3314_v53 = vrot.slane %v3313_v61, 4  ;;  %v3320_v6 = vsel %vm2542_vm3, %v1505_v14, -inf }
 0x314   : > { %v3242_v46 = vmax.f32 %v3240_v48, %v3241_v25  ;;  %v7500_v23 = vmax.f32 %v4246_v40, %v4247_v49  ;;  %v3302_v27 = vrot.slane %v3301_v7, 2  ;;  %v3308_v36 = vmax.f32 %v3306_v55, %v3307_v29 }
 0x315   : > { %v7502_v13 = vmax.f32 %v4227_v32, %v4228_v16  ;;  %v3315_v60 = vmax.f32 %v3313_v61, %v3314_v53  ;;  %v3321_v47 = vrot.slane %v3320_v6, 4  ;;  %v949_v34 = vmax.f32 %v851_v58, 0.0 }
 0x316   : > { %v7504_v9 = vmax.f32 %v4234_v3, %v4235_v43  ;;  %v4242_v44 = vrot.slane %v7497_v18, 1  ;;  %v3303_v62 = vmax.f32 %v3301_v7, %v3302_v27  ;;  %v3309_v28 = vrot.slane %v3308_v36, 2 }
 0x317   : > { %v3316_v11 = vrot.slane %v3315_v60, 2  ;;  %v3322_v10 = vmax.f32 %v3320_v6, %v3321_v47  ;;  %v2101_v31 = vcombine.high %v949_v34, %v949_v34  ;;  %v2108_v48 = vrot.slane %v949_v34, %v6338_v50 }
 0x318   : > { %v4249_v25 = vrot.slane %v7500_v23, 1  ;;  %v3304_v32 = vrot.slane %v3303_v62, 1  ;;  %v3310_v56 = vmax.f32 %v3308_v36, %v3309_v28  ;;  %v699_v58 = vadd.f32 %v7417_v1, %v7251_v19 }
 0x319   : > { %v3317_v8 = vmax.f32 %v3315_v60, %v3316_v11  ;;  %v3323_v39 = vrot.slane %v3322_v10, 2  ;;  %v2115_v40 = vrot.slane %v2101_v31, %v6338_v50  ;;  %v2116_v14 = vcombine.high %v2108_v48, %v2108_v48 }
 0x31a   : > { %v3305_v24 = vmax.f32 %v3303_v62, %v3304_v32  ;;  %v3311_v16 = vrot.slane %v3310_v56, 1  ;;  %v4307_v3 = vsel %vm2542_vm3, %v2108_v48, -inf  ;;  %v911_v55 = vmax.f32 %v699_v58, 0.0 }
 0x31b   : > { %v3318_v61 = vrot.slane %v3317_v8, 1  ;;  %v3324_v49 = vmax.f32 %v3322_v10, %v3323_v39  ;;  %v2117_v7 = vcombine.high %v2115_v40, %v2115_v40  ;;  %v4308_v29 = vrot.slane %v4307_v3, 4 }
 0x31c   : > { %v3312_v43 = vmax.f32 %v3310_v56, %v3311_v16  ;;  %v4607_v53 = vmax.f32 %v7487_v35, %v3305_v24  ;;  %v4314_v6 = vsel %vm2542_vm3, %v2116_v14, -inf  ;;  %v4321_v19 = vsel %vm2542_vm3, %v2115_v40, -inf  ;;  %v7520_v56 = vpop.f32.mrb[33].mxu1 }
 0x31d   : > { %v3319_v27 = vmax.f32 %v3317_v8, %v3318_v61  ;;  %v3325_v36 = vrot.slane %v3324_v49, 1  ;;  %v4309_v60 = vmax.f32 %v4307_v3, %v4308_v29  ;;  %v4315_v47 = vrot.slane %v4314_v6, 4 }
 0x31e   : > { %v4608_v34 = vmax.f32 %v7491_v54, %v3312_v43  ;;  %v5942_v62 = vpack.c.bf16 %v4607_v53, %v4607_v53  ;;  %v4322_v28 = vrot.slane %v4321_v19, 4  ;;  %v4328_v11 = vsel %vm2542_vm3, %v2117_v7, -inf }
 0x31f   : > { %v3326_v10 = vmax.f32 %v3324_v49, %v3325_v36  ;;  %v4609_v31 = vmax.f32 %v3235_v38, %v3319_v27  ;;  %v4310_v48 = vrot.slane %v4309_v60, 2  ;;  %v4316_v32 = vmax.f32 %v4314_v6, %v4315_v47 }
 0x320   : > { %v5943_v35 = vpack.c.bf16 %v4608_v34, %v4608_v34  ;;  %v5327_v58 = vunpack.c.l.b16 %v5942_v62  ;;  %v4323_v39 = vmax.f32 %v4321_v19, %v4322_v28  ;;  %v4329_v40 = vrot.slane %v4328_v11, 4 }
 0x321   : > { %v7522_v8 = vmax.f32 %v3242_v46, %v3326_v10  ;;  %v5944_v14 = vpack.c.bf16 %v4609_v31, %v4609_v31  ;;  %v4311_v24 = vmax.f32 %v4309_v60, %v4310_v48  ;;  %v4317_v16 = vrot.slane %v4316_v32, 2 }
 0x322   : > { %v5328_v54 = vunpack.c.l.b16 %v5943_v35  ;;  %v4324_v3 = vrot.slane %v4323_v39, 2  ;;  %v4330_v61 = vmax.f32 %v4328_v11, %v4329_v40  ;;  %v1455_v29 = vcombine.high %v911_v55, %v911_v55 }
 0x323   : > { %v4243_v49 = vmax.f32 %v7497_v18, %v4242_v44  ;;  %v5329_v38 = vunpack.c.l.b16 %v5944_v14  ;;  %v4312_v7 = vrot.slane %v4311_v24, 1  ;;  %v4318_v43 = vmax.f32 %v4316_v32, %v4317_v16 }
 0x324   : > { %v5472_v53 = vsel %vm5423_vm4, %v5328_v54, %v5327_v58  ;;  %v4325_v6 = vmax.f32 %v4323_v39, %v4324_v3  ;;  %v4331_v27 = vrot.slane %v4330_v61, 2  ;;  %v1462_v19 = vrot.slane %v911_v55, %v6338_v50 }
 0x325   : > { %v4250_v46 = vmax.f32 %v7500_v23, %v4249_v25  ;;  %v7529_v36 = vsel %vm5425_vm5, %v5329_v38, %v5472_v53  ;;  %v4313_v60 = vmax.f32 %v4311_v24, %v4312_v7  ;;  %v4319_v47 = vrot.slane %v4318_v43, 1 }
 0x326   : > { %v4326_v34 = vrot.slane %v4325_v6, 1  ;;  %v4332_v62 = vmax.f32 %v4330_v61, %v4331_v27  ;;  %v1469_v18 = vrot.slane %v1455_v29, %v6338_v50  ;;  %v1470_v44 = vcombine.high %v1462_v19, %v1462_v19 }
 0x327   : > { %v4320_v28 = vmax.f32 %v4318_v43, %v4319_v47  ;;  %v4679_v11 = vmax.f32 %v7502_v13, %v4313_v60  ;;  %v3243_v10 = vsel %vm2542_vm3, %v1462_v19, -inf  ;;  %v843_v55 = vadd.f32 %v7417_v1, %v7271_v33 }
 0x328   : > { %v4327_v31 = vmax.f32 %v4325_v6, %v4326_v34  ;;  %v4333_v23 = vrot.slane %v4332_v62, 1  ;;  %v1471_v25 = vcombine.high %v1469_v18, %v1469_v18  ;;  %v3244_v48 = vrot.slane %v3243_v10, 4 }
 0x329   : > { %v4680_v32 = vmax.f32 %v7504_v9, %v4320_v28  ;;  %v6014_v35 = vpack.c.bf16 %v4679_v11, %v4679_v11  ;;  %v3250_v58 = vsel %vm2542_vm3, %v1470_v44, -inf  ;;  %v3257_v39 = vsel %vm2542_vm3, %v1469_v18, -inf  ;;  %v7557_v18 = vpop.f32.mrb[34].mxu0 }
 0x32a   : > { %v4334_v40 = vmax.f32 %v4332_v62, %v4333_v23  ;;  %v4681_v14 = vmax.f32 %v4243_v49, %v4327_v31  ;;  %v3245_v24 = vmax.f32 %v3243_v10, %v3244_v48  ;;  %v3251_v13 = vrot.slane %v3250_v58, 4 }
 0x32b   : > { %v4284_v16 = vrot.slane %v7467_v52, 1  ;;  %v4291_v54 = vrot.slane %v7472_v30, 1  ;;  %v6015_v33 = vpack.c.bf16 %v4680_v32, %v4680_v32  ;;  %v5399_v3 = vunpack.c.l.b16 %v6014_v35  ;;  %v7582_v35 = vpop.f32.mrb[34].mxu1 }
 0x32c   : > { %v7541_v61 = vmax.f32 %v4250_v46, %v4334_v40  ;;  %v6016_v29 = vpack.c.bf16 %v4681_v14, %v4681_v14  ;;  %v3258_v38 = vrot.slane %v3257_v39, 4  ;;  %v3264_v9 = vsel %vm2542_vm3, %v1471_v25, -inf }
 0x32d   : > { %v5400_v7 = vunpack.c.l.b16 %v6015_v33  ;;  %v3246_v43 = vrot.slane %v3245_v24, 2  ;;  %v3252_v53 = vmax.f32 %v3250_v58, %v3251_v13  ;;  %v947_v6 = vmax.f32 %v843_v55, 0.0 }
 0x32e   : > { %v7547_v49 = vmax.f32 %v7448_v5, %v3290_v57  ;;  %v4298_v27 = vrot.slane %v7475_v51, 1  ;;  %v4305_v19 = vrot.slane %v7478_v42, 1  ;;  %v5401_v60 = vunpack.c.l.b16 %v6016_v29 }
 0x32f   : > { %v7554_v46 = vmax.f32 %v7450_v59, %v3297_v15  ;;  %v5535_v47 = vsel %vm5423_vm4, %v5400_v7, %v5399_v3  ;;  %v3265_v34 = vrot.slane %v3264_v9, 4  ;;  %v2067_v62 = vcombine.high %v947_v6, %v947_v6 }
 0x330   : > { %v7560_v44 = vmax.f32 %v7467_v52, %v4284_v16  ;;  %v7563_v5 = vmax.f32 %v7472_v30, %v4291_v54  ;;  %v7566_v57 = vsel %vm5425_vm5, %v5401_v60, %v5535_v47  ;;  %v3259_v28 = vmax.f32 %v3257_v39, %v3258_v38 }
 0x331   : > { %v3247_v11 = vmax.f32 %v3245_v24, %v3246_v43  ;;  %v3253_v10 = vrot.slane %v3252_v53, 2  ;;  %v2074_v59 = vrot.slane %v947_v6, %v6338_v50  ;;  %v2081_v15 = vrot.slane %v2067_v62, %v6338_v50 }
 0x332   : > { %v7571_v55 = vmax.f32 %v7475_v51, %v4298_v27  ;;  %v7574_v31 = vmax.f32 %v7478_v42, %v4305_v19  ;;  %v5945_v52 = vpack.c.bf16 %v7522_v8, %v7522_v8  ;;  %v720_v30 = vadd.f32 %v7417_v1, %v7308_v41 }
 0x333   : > { %v6017_v23 = vpack.c.bf16 %v7541_v61, %v7541_v61  ;;  %v3266_v25 = vmax.f32 %v3264_v9, %v3265_v34  ;;  %v2082_v48 = vcombine.high %v2074_v59, %v2074_v59  ;;  %v2083_v32 = vcombine.high %v2081_v15, %v2081_v15 }
 0x334   : > { %v3260_v58 = vrot.slane %v3259_v28, 2  ;;  %v4251_v51 = vsel %vm2542_vm3, %v2074_v59, -inf  ;;  %v4265_v42 = vsel %vm2542_vm3, %v2081_v15, -inf  ;;  %v916_v39 = vmax.f32 %v720_v30, 0.0 }
 0x335   : > { %v3248_v40 = vrot.slane %v3247_v11, 1  ;;  %v3254_v14 = vmax.f32 %v3252_v53, %v3253_v10  ;;  %v4252_v8 = vrot.slane %v4251_v51, 4  ;;  %v4258_v24 = vsel %vm2542_vm3, %v2082_v48, -inf }
 0x336   : > { %v4259_v41 = vrot.slane %v4258_v24, 4  ;;  %v4266_v13 = vrot.slane %v4265_v42, 4  ;;  %v4272_v16 = vsel %vm2542_vm3, %v2083_v32, -inf  ;;  %v1540_v54 = vcombine.high %v916_v39, %v916_v39 }
 0x337   : > { %v3267_v33 = vrot.slane %v3266_v25, 2  ;;  %v4253_v3 = vmax.f32 %v4251_v51, %v4252_v8  ;;  %v4273_v61 = vrot.slane %v4272_v16, 4  ;;  %v1547_v29 = vrot.slane %v916_v39, %v6338_v50 }
 0x338   : > { %v4260_v38 = vmax.f32 %v4258_v24, %v4259_v41  ;;  %v4267_v9 = vmax.f32 %v4265_v42, %v4266_v13  ;;  %v1554_v7 = vrot.slane %v1540_v54, %v6338_v50  ;;  %v864_v43 = vadd.f32 %v7417_v1, %v7312_v26 }
 0x339   : > { %v4254_v53 = vrot.slane %v4253_v3, 2  ;;  %v4274_v6 = vmax.f32 %v4272_v16, %v4273_v61  ;;  %v1555_v27 = vcombine.high %v1547_v29, %v1547_v29  ;;  %v3383_v19 = vsel %vm2542_vm3, %v1547_v29, -inf }
 0x33a   : > { %v3261_v60 = vmax.f32 %v3259_v28, %v3260_v58  ;;  %v4261_v47 = vrot.slane %v4260_v38, 2  ;;  %v1556_v34 = vcombine.high %v1554_v7, %v1554_v7  ;;  %v3384_v62 = vrot.slane %v3383_v19, 4 }
 0x33b   : > { %v3255_v10 = vrot.slane %v3254_v14, 1  ;;  %v4268_v59 = vrot.slane %v4267_v9, 2  ;;  %v3390_v15 = vsel %vm2542_vm3, %v1555_v27, -inf  ;;  %v3397_v30 = vsel %vm2542_vm3, %v1554_v7, -inf }
 0x33c   : > { %v3268_v48 = vmax.f32 %v3266_v25, %v3267_v33  ;;  %v4255_v32 = vmax.f32 %v4253_v3, %v4254_v53  ;;  %v3391_v51 = vrot.slane %v3390_v15, 4  ;;  %v952_v42 = vmax.f32 %v864_v43, 0.0  ;;  %v7602_v43 = vpop.f32.mrb[35].mxu0 }
 0x33d   : > { %v4275_v26 = vrot.slane %v4274_v6, 2  ;;  %v3385_v39 = vmax.f32 %v3383_v19, %v3384_v62  ;;  %v3398_v8 = vrot.slane %v3397_v30, 4  ;;  %v3404_v24 = vsel %vm2542_vm3, %v1556_v34, -inf  ;;  %7950 = vst [vmem:[#allocation5_spill] sm:$0xff] %v7602_v43 }
 0x33e   : > { %v5330_v41 = vunpack.c.l.b16 %v5945_v52  ;;  %v7596_v28 = vunpack.c.l.b16 %v6017_v23  ;;  %v4262_v58 = vmax.f32 %v4260_v38, %v4261_v47  ;;  %v3392_v13 = vmax.f32 %v3390_v15, %v3391_v51 }
 0x33f   : > { %v7598_v16 = vmax.f32 %v3247_v11, %v3248_v40  ;;  %v4269_v54 = vmax.f32 %v4267_v9, %v4268_v59  ;;  %v3399_v61 = vmax.f32 %v3397_v30, %v3398_v8  ;;  %v3405_v29 = vrot.slane %v3404_v24, 4 }
 0x340   : > { %v7600_v7 = vmax.f32 %v3254_v14, %v3255_v10  ;;  %v3262_v25 = vrot.slane %v3261_v60, 1  ;;  %v3269_v33 = vrot.slane %v3268_v48, 1  ;;  %v4256_v3 = vrot.slane %v4255_v32, 1 }
 0x341   : > { %v4276_v53 = vmax.f32 %v4274_v6, %v4275_v26  ;;  %v3386_v27 = vrot.slane %v3385_v39, 2  ;;  %v3406_v19 = vmax.f32 %v3404_v24, %v3405_v29  ;;  %v2152_v52 = vcombine.high %v952_v42, %v952_v42 }
 0x342   : > { %v4263_v23 = vrot.slane %v4262_v58, 1  ;;  %v3393_v34 = vrot.slane %v3392_v13, 2  ;;  %v2159_v38 = vrot.slane %v952_v42, %v6338_v50  ;;  %v712_v11 = vadd.f32 %v7417_v1, %v7334_v63 }
 0x343   : > { %v4270_v40 = vrot.slane %v4269_v54, 1  ;;  %v3400_v9 = vrot.slane %v3399_v61, 2  ;;  %v2166_v14 = vrot.slane %v2152_v52, %v6338_v50  ;;  %v7610_v47 = vsel %vm5427_vm6, %v5330_v41, %v7529_v36 }
 0x344   : > { %v7612_v62 = vmax.f32 %v3261_v60, %v3262_v25  ;;  %v3407_v6 = vrot.slane %v3406_v19, 2  ;;  %v2167_v10 = vcombine.high %v2159_v38, %v2159_v38  ;;  %v4391_v59 = vsel %vm2542_vm3, %v2159_v38, -inf }
 0x345   : > { %v7615_v15 = vmax.f32 %v3268_v48, %v3269_v33  ;;  %v4277_v30 = vrot.slane %v4276_v53, 1  ;;  %v3387_v51 = vmax.f32 %v3385_v39, %v3386_v27  ;;  %v4392_v42 = vrot.slane %v4391_v59, 4 }
 0x346   : > { %v7617_v63 = vmax.f32 %v4255_v32, %v4256_v3  ;;  %v3394_v26 = vmax.f32 %v3392_v13, %v3393_v34  ;;  %v4398_v8 = vsel %vm2542_vm3, %v2167_v10, -inf  ;;  %v914_v24 = vmax.f32 %v712_v11, 0.0 }
 0x347   : > { %v7620_v29 = vmax.f32 %v4262_v58, %v4263_v23  ;;  %v7622_v36 = vmax.f32 %v4269_v54, %v4270_v40  ;;  %v3401_v60 = vmax.f32 %v3399_v61, %v3400_v9  ;;  %v2168_v41 = vcombine.high %v2166_v14, %v2166_v14 }
 0x348   : > { %v3408_v25 = vmax.f32 %v3406_v19, %v3407_v6  ;;  %v4405_v52 = vsel %vm2542_vm3, %v2166_v14, -inf  ;;  %v1506_v48 = vcombine.high %v914_v24, %v914_v24  ;;  %v1513_v33 = vrot.slane %v914_v24, %v6338_v50 }
 0x349   : > { %v7626_v39 = vmax.f32 %v4276_v53, %v4277_v30  ;;  %v3388_v32 = vrot.slane %v3387_v51, 1  ;;  %v4393_v3 = vmax.f32 %v4391_v59, %v4392_v42  ;;  %v4399_v13 = vrot.slane %v4398_v8, 4  ;;  %v7637_v30 = vpop.f32.mrb[35].mxu1 }
 0x34a   : > { %v3395_v27 = vrot.slane %v3394_v26, 1  ;;  %v1520_v34 = vrot.slane %v1506_v48, %v6338_v50  ;;  %v1521_v58 = vcombine.high %v1513_v33, %v1513_v33  ;;  %v3327_v54 = vsel %vm2542_vm3, %v1513_v33, -inf }
 0x34b   : > { %v3402_v23 = vrot.slane %v3401_v60, 1  ;;  %v4406_v61 = vrot.slane %v4405_v52, 4  ;;  %v4412_v19 = vsel %vm2542_vm3, %v2168_v41, -inf  ;;  %v3328_v38 = vrot.slane %v3327_v54, 4 }
 0x34c   : > { %v3409_v11 = vrot.slane %v3408_v25, 1  ;;  %v1522_v40 = vcombine.high %v1520_v34, %v1520_v34  ;;  %v3334_v9 = vsel %vm2542_vm3, %v1521_v58, -inf  ;;  %v3341_v53 = vsel %vm2542_vm3, %v1520_v34, -inf }
 0x34d   : > { %v7633_v14 = vmax.f32 %v3387_v51, %v3388_v32  ;;  %v4394_v6 = vrot.slane %v4393_v3, 2  ;;  %v7635_v10 = vmax.f32 %v4398_v8, %v4399_v13  ;;  %v3329_v59 = vmax.f32 %v3327_v54, %v3328_v38 }
 0x34e   : > { %v4413_v42 = vrot.slane %v4412_v19, 4  ;;  %v3335_v24 = vrot.slane %v3334_v9, 4  ;;  %v3342_v48 = vrot.slane %v3341_v53, 4  ;;  %v3348_v41 = vsel %vm2542_vm3, %v1522_v40, -inf }
 0x34f   : > { %7951 = vst [vmem:[#allocation6_spill] sm:$0xff] %v7633_v14  ;;  %v7640_v33 = vmax.f32 %v3394_v26, %v3395_v27  ;;  %v7642_v43 = vmax.f32 %v3401_v60, %v3402_v23  ;;  %v7644_v58 = vmax.f32 %v4405_v52, %v4406_v61  ;;  %v3330_v34 = vrot.slane %v3329_v59, 2 }
 0x350   : > { %v7646_v51 = vmax.f32 %v3408_v25, %v3409_v11  ;;  %v3336_v32 = vmax.f32 %v3334_v9, %v3335_v24  ;;  %v3343_v8 = vmax.f32 %v3341_v53, %v3342_v48  ;;  %v3349_v13 = vrot.slane %v3348_v41, 4 }
 0x351   : > { %v7648_v54 = vmax.f32 %v4393_v3, %v4394_v6  ;;  %v4401_v38 = vrot.slane %v7635_v10, 2  ;;  %v3331_v14 = vmax.f32 %v3329_v59, %v3330_v34  ;;  %v856_v40 = vadd.f32 %v7417_v1, %v7349_v45 }
 0x352   : > { %v7653_v26 = vmax.f32 %v4412_v19, %v4413_v42  ;;  %v3337_v60 = vrot.slane %v3336_v32, 2  ;;  %v3344_v27 = vrot.slane %v3343_v8, 2  ;;  %v3350_v52 = vmax.f32 %v3348_v41, %v3349_v13 }
 0x353   : > { %v4408_v23 = vrot.slane %v7644_v58, 2  ;;  %v3332_v25 = vrot.slane %v3331_v14, 1  ;;  %v950_v61 = vmax.f32 %v856_v40, 0.0  ;;  %v7659_v3 = vsel %vm5427_vm6, %v7596_v28, %v7566_v57 }
 0x354   : > { %v3338_v11 = vmax.f32 %v3336_v32, %v3337_v60  ;;  %v3345_v9 = vmax.f32 %v3343_v8, %v3344_v27  ;;  %v3351_v53 = vrot.slane %v3350_v52, 2  ;;  %v723_v45 = vadd.f32 %v7417_v1, %v7379_v37 }
 0x355   : > { %v3333_v19 = vmax.f32 %v3331_v14, %v3332_v25  ;;  %v2118_v6 = vcombine.high %v950_v61, %v950_v61  ;;  %v2125_v59 = vrot.slane %v950_v61, %v6338_v50  ;;  %v7666_v42 = vadd.f32 %v7417_v1, %v7398_v20 }
 0x356   : > { %v3339_v24 = vrot.slane %v3338_v11, 1  ;;  %v3346_v48 = vrot.slane %v3345_v9, 1  ;;  %v3352_v41 = vmax.f32 %v3350_v52, %v3351_v53  ;;  %v917_v34 = vmax.f32 %v723_v45, 0.0 }
 0x357   : > { %v4611_v57 = vmax.f32 %v7598_v16, %v3333_v19  ;;  %v2132_v28 = vrot.slane %v2118_v6, %v6338_v50  ;;  %v2133_v32 = vcombine.high %v2125_v59, %v2125_v59  ;;  %v4335_v8 = vsel %vm2542_vm3, %v2125_v59, -inf }
 0x358   : > { %v3340_v37 = vmax.f32 %v3338_v11, %v3339_v24  ;;  %v3347_v14 = vmax.f32 %v3345_v9, %v3346_v48  ;;  %v3353_v13 = vrot.slane %v3352_v41, 1  ;;  %v4336_v40 = vrot.slane %v4335_v8, 4 }
 0x359   : > { %v5946_v60 = vpack.c.bf16 %v4611_v57, %v4611_v57  ;;  %v2134_v27 = vcombine.high %v2132_v28, %v2132_v28  ;;  %v4342_v20 = vsel %vm2542_vm3, %v2133_v32, -inf  ;;  %v4349_v1 = vsel %vm2542_vm3, %v2132_v28, -inf }
 0x35a   : > { %v3354_v25 = vmax.f32 %v3352_v41, %v3353_v13  ;;  %v4612_v52 = vmax.f32 %v7600_v7, %v3340_v37  ;;  %v4613_v16 = vmax.f32 %v7612_v62, %v3347_v14  ;;  %v4337_v61 = vmax.f32 %v4335_v8, %v4336_v40 }
 0x35b   : > { %v5331_v53 = vunpack.c.l.b16 %v5946_v60  ;;  %v4343_v45 = vrot.slane %v4342_v20, 4  ;;  %v4350_v19 = vrot.slane %v4349_v1, 4  ;;  %v4356_v11 = vsel %vm2542_vm3, %v2134_v27, -inf }
 0x35c   : > { %v4614_v9 = vmax.f32 %v7615_v15, %v3354_v25  ;;  %v5947_v6 = vpack.c.bf16 %v4612_v52, %v4612_v52  ;;  %v5948_v59 = vpack.c.bf16 %v4613_v16, %v4613_v16  ;;  %v4338_v24 = vrot.slane %v4337_v61, 2 }
 0x35d   : > { %v5475_v48 = vsel %vm5429_vm7, %v5331_v53, %v7610_v47  ;;  %v4344_v57 = vmax.f32 %v4342_v20, %v4343_v45  ;;  %v4351_v41 = vmax.f32 %v4349_v1, %v4350_v19  ;;  %v4357_v28 = vrot.slane %v4356_v11, 4 }
 0x35e   : > { %v5949_v7 = vpack.c.bf16 %v4614_v9, %v4614_v9  ;;  %v5332_v32 = vunpack.c.l.b16 %v5947_v6  ;;  %v5333_v62 = vunpack.c.l.b16 %v5948_v59  ;;  %v4339_v8 = vmax.f32 %v4337_v61, %v4338_v24 }
 0x35f   : > { %v4345_v37 = vrot.slane %v4344_v57, 2  ;;  %v4352_v14 = vrot.slane %v4351_v41, 2  ;;  %v4358_v13 = vmax.f32 %v4356_v11, %v4357_v28  ;;  %v1557_v40 = vcombine.high %v917_v34, %v917_v34 }
 0x360   : > { %v5334_v60 = vunpack.c.l.b16 %v5949_v7  ;;  %v5476_v15 = vsel %vm5431_vm8, %v5332_v32, %v5475_v48  ;;  %v4340_v27 = vrot.slane %v4339_v8, 1  ;;  %v1564_v25 = vrot.slane %v917_v34, %v6338_v50 }
 0x361   : > { %v5477_v52 = vsel %vm5433_vm9, %v5333_v62, %v5476_v15  ;;  %v4346_v47 = vmax.f32 %v4344_v57, %v4345_v37  ;;  %v4353_v20 = vmax.f32 %v4351_v41, %v4352_v14  ;;  %v4359_v1 = vrot.slane %v4358_v13, 2 }
 0x362   : > { %v5478_v16 = vsel %vm5435_vm10, %v5334_v60, %v5477_v52  ;;  %v4341_v53 = vmax.f32 %v4339_v8, %v4340_v27  ;;  %v1571_v61 = vrot.slane %v1557_v40, %v6338_v50  ;;  %v1572_v45 = vcombine.high %v1564_v25, %v1564_v25 }
 0x363   : > { %v5562_v19 = vpack.c.b16 %v5478_v16, %v5478_v16  ;;  %v4347_v11 = vrot.slane %v4346_v47, 1  ;;  %v4354_v9 = vrot.slane %v4353_v20, 1  ;;  %v4360_v6 = vmax.f32 %v4358_v13, %v4359_v1 }
 0x364   : > { %v4683_v59 = vmax.f32 %v7617_v63, %v4341_v53  ;;  %v1573_v24 = vcombine.high %v1571_v61, %v1571_v61  ;;  %v3411_v34 = vsel %vm2542_vm3, %v1564_v25, -inf  ;;  %v3418_v48 = vsel %vm2542_vm3, %v1572_v45, -inf }
 0x365   : > { %5598 = vst [vmem:[%s6637_s29 + $0x18] sm:$0xf] %v5562_v19  ;;  %v4348_v57 = vmax.f32 %v4346_v47, %v4347_v11  ;;  %v4355_v41 = vmax.f32 %v4353_v20, %v4354_v9  ;;  %v4361_v28 = vrot.slane %v4360_v6, 1  ;;  %v3412_v7 = vrot.slane %v3411_v34, 4 }
 0x366   : > { %v6018_v32 = vpack.c.bf16 %v4683_v59, %v4683_v59  ;;  %v3419_v62 = vrot.slane %v3418_v48, 4  ;;  %v3425_v8 = vsel %vm2542_vm3, %v1571_v61, -inf  ;;  %v3432_v37 = vsel %vm2542_vm3, %v1573_v24, -inf }
 0x367   : > { %v4362_v14 = vmax.f32 %v4360_v6, %v4361_v28  ;;  %v4684_v13 = vmax.f32 %v7620_v29, %v4348_v57  ;;  %v4685_v63 = vmax.f32 %v7622_v36, %v4355_v41  ;;  %v3413_v40 = vmax.f32 %v3411_v34, %v3412_v7 }
 0x368   : > { %v5403_v60 = vunpack.c.l.b16 %v6018_v32  ;;  %v3420_v15 = vmax.f32 %v3418_v48, %v3419_v62  ;;  %v3426_v27 = vrot.slane %v3425_v8, 4  ;;  %v3433_v25 = vrot.slane %v3432_v37, 4 }
 0x369   : > { %v4686_v52 = vmax.f32 %v7626_v39, %v4362_v14  ;;  %v6019_v47 = vpack.c.bf16 %v4684_v13, %v4684_v13  ;;  %v6020_v20 = vpack.c.bf16 %v4685_v63, %v4685_v63  ;;  %v3414_v1 = vrot.slane %v3413_v40, 2 }
 0x36a   : > { %v5538_v16 = vsel %vm5429_vm7, %v5403_v60, %v7659_v3  ;;  %v3421_v53 = vrot.slane %v3420_v15, 2  ;;  %v3427_v61 = vmax.f32 %v3425_v8, %v3426_v27  ;;  %v3434_v45 = vmax.f32 %v3432_v37, %v3433_v25  ;;  %v7700_v3 = vld [vmem:[%s7931_s2] ss:$0 sm:$0xff] }
 0x36b   : > { %v6021_v19 = vpack.c.bf16 %v4686_v52, %v4686_v52  ;;  %v5404_v29 = vunpack.c.l.b16 %v6019_v47  ;;  %v5405_v11 = vunpack.c.l.b16 %v6020_v20  ;;  %v3415_v36 = vmax.f32 %v3413_v40, %v3414_v1 }
 0x36c   : > { %v3422_v9 = vmax.f32 %v3420_v15, %v3421_v53  ;;  %v3428_v6 = vrot.slane %v3427_v61, 2  ;;  %v3435_v59 = vrot.slane %v3434_v45, 2  ;;  %v953_v24 = vmax.f32 %v7666_v42, 0.0 }
 0x36d   : > { %v5406_v34 = vunpack.c.l.b16 %v6021_v19  ;;  %v5539_v39 = vsel %vm5431_vm8, %v5404_v29, %v5538_v16  ;;  %v3416_v48 = vrot.slane %v3415_v36, 1  ;;  %v715_v57 = vadd.f32 %v7700_v3, %v7422_v17 }
 0x36e   : > { %v5540_v41 = vsel %vm5433_vm9, %v5405_v11, %v5539_v39  ;;  %v3423_v28 = vrot.slane %v3422_v9, 1  ;;  %v3429_v7 = vmax.f32 %v3427_v61, %v3428_v6  ;;  %v3436_v32 = vmax.f32 %v3434_v45, %v3435_v59 }
 0x36f   : > { %v5541_v42 = vsel %vm5435_vm10, %v5406_v34, %v5540_v41  ;;  %v7706_v62 = vmax.f32 %v3415_v36, %v3416_v48  ;;  %v2169_v8 = vcombine.high %v953_v24, %v953_v24  ;;  %v2176_v37 = vrot.slane %v953_v24, %v6338_v50 }
 0x370   : > { %v5571_v14 = vpack.c.b16 %v5541_v42, %v5541_v42  ;;  %v7709_v13 = vmax.f32 %v3422_v9, %v3423_v28  ;;  %v3430_v63 = vrot.slane %v3429_v7, 1  ;;  %v3437_v40 = vrot.slane %v3436_v32, 1 }
 0x371   : > { %v2183_v17 = vrot.slane %v2169_v8, %v6338_v50  ;;  %v2184_v60 = vcombine.high %v2176_v37, %v2176_v37  ;;  %v4419_v15 = vsel %vm2542_vm3, %v2176_v37, -inf  ;;  %v915_v27 = vmax.f32 %v715_v57, 0.0 }
 0x372   : > { %5607 = vst [vmem:[%s6637_s29 + $0x3c] sm:$0xf] %v5571_v14  ;;  %v7714_v25 = vmax.f32 %v3429_v7, %v3430_v63  ;;  %v7716_v52 = vmax.f32 %v3436_v32, %v3437_v40  ;;  %v4420_v47 = vrot.slane %v4419_v15, 4  ;;  %v859_v20 = vadd.f32 %v7700_v3, %v7435_v22 }
 0x373   : > { %v2185_v1 = vcombine.high %v2183_v17, %v2183_v17  ;;  %v4426_v16 = vsel %vm2542_vm3, %v2184_v60, -inf  ;;  %v4433_v53 = vsel %vm2542_vm3, %v2183_v17, -inf  ;;  %v1523_v61 = vcombine.high %v915_v27, %v915_v27 }
 0x374   : > { %v4421_v45 = vmax.f32 %v4419_v15, %v4420_v47  ;;  %v4427_v19 = vrot.slane %v4426_v16, 4  ;;  %v4434_v29 = vrot.slane %v4433_v53, 4  ;;  %v1530_v11 = vrot.slane %v915_v27, %v6338_v50 }
 0x375   : > { %v4440_v36 = vsel %vm2542_vm3, %v2185_v1, -inf  ;;  %v1537_v9 = vrot.slane %v1523_v61, %v6338_v50  ;;  %v951_v6 = vmax.f32 %v859_v20, 0.0  ;;  %v736_v59 = vadd.f32 %v7700_v3, %v7465_v2 }
 0x376   : > { %v4422_v22 = vrot.slane %v4421_v45, 2  ;;  %v4428_v24 = vmax.f32 %v4426_v16, %v4427_v19  ;;  %v4435_v34 = vmax.f32 %v4433_v53, %v4434_v29  ;;  %v4441_v39 = vrot.slane %v4440_v36, 4 }
 0x377   : > { %v1538_v48 = vcombine.high %v1530_v11, %v1530_v11  ;;  %v1539_v57 = vcombine.high %v1537_v9, %v1537_v9  ;;  %v3355_v41 = vsel %vm2542_vm3, %v1530_v11, -inf  ;;  %v3369_v28 = vsel %vm2542_vm3, %v1537_v9, -inf }
 0x378   : > { %v4423_v7 = vmax.f32 %v4421_v45, %v4422_v22  ;;  %v4429_v32 = vrot.slane %v4428_v24, 2  ;;  %v4436_v42 = vrot.slane %v4435_v34, 2  ;;  %v4442_v8 = vmax.f32 %v4440_v36, %v4441_v39 }
 0x379   : > { %v3356_v37 = vrot.slane %v3355_v41, 4  ;;  %v3362_v14 = vsel %vm2542_vm3, %v1538_v48, -inf  ;;  %v3370_v63 = vrot.slane %v3369_v28, 4  ;;  %v3376_v2 = vsel %vm2542_vm3, %v1539_v57, -inf }
 0x37a   : > { %v4424_v40 = vrot.slane %v4423_v7, 1  ;;  %v4430_v17 = vmax.f32 %v4428_v24, %v4429_v32  ;;  %v4437_v60 = vmax.f32 %v4435_v34, %v4436_v42  ;;  %v4443_v15 = vrot.slane %v4442_v8, 2 }
 0x37b   : > { %v3357_v27 = vmax.f32 %v3355_v41, %v3356_v37  ;;  %v3363_v47 = vrot.slane %v3362_v14, 4  ;;  %v3371_v20 = vmax.f32 %v3369_v28, %v3370_v63  ;;  %v3377_v1 = vrot.slane %v3376_v2, 4 }
 0x37c   : > { %v7731_v16 = vmax.f32 %v4423_v7, %v4424_v40  ;;  %v4431_v53 = vrot.slane %v4430_v17, 1  ;;  %v4438_v61 = vrot.slane %v4437_v60, 1  ;;  %v4444_v45 = vmax.f32 %v4442_v8, %v4443_v15 }
 0x37d   : > { %v3358_v19 = vrot.slane %v3357_v27, 2  ;;  %v3364_v29 = vmax.f32 %v3362_v14, %v3363_v47  ;;  %v3372_v11 = vrot.slane %v3371_v20, 2  ;;  %v3378_v36 = vmax.f32 %v3376_v2, %v3377_v1 }
 0x37e   : > { %v7733_v9 = vmax.f32 %v4430_v17, %v4431_v53  ;;  %v7735_v22 = vmax.f32 %v4437_v60, %v4438_v61  ;;  %v4445_v24 = vrot.slane %v4444_v45, 1  ;;  %v2135_v34 = vcombine.high %v951_v6, %v951_v6 }
 0x37f   : > { %v3359_v39 = vmax.f32 %v3357_v27, %v3358_v19  ;;  %v3365_v48 = vrot.slane %v3364_v29, 2  ;;  %v3373_v57 = vmax.f32 %v3371_v20, %v3372_v11  ;;  %v3379_v41 = vrot.slane %v3378_v36, 2 }
 0x380   : > { %v7737_v28 = vmax.f32 %v4444_v45, %v4445_v24  ;;  %v2142_v7 = vrot.slane %v951_v6, %v6338_v50  ;;  %v2149_v32 = vrot.slane %v2135_v34, %v6338_v50  ;;  %v920_v42 = vmax.f32 %v736_v59, 0.0 }
 0x381   : > { %v3360_v8 = vrot.slane %v3359_v39, 1  ;;  %v3366_v37 = vmax.f32 %v3364_v29, %v3365_v48  ;;  %v3374_v14 = vrot.slane %v3373_v57, 1  ;;  %v3380_v63 = vmax.f32 %v3378_v36, %v3379_v41 }
 0x382   : > { %v2150_v2 = vcombine.high %v2142_v7, %v2142_v7  ;;  %v2151_v40 = vcombine.high %v2149_v32, %v2149_v32  ;;  %v4363_v17 = vsel %vm2542_vm3, %v2142_v7, -inf  ;;  %v4377_v60 = vsel %vm2542_vm3, %v2149_v32, -inf }
 0x383   : > { %v3361_v15 = vmax.f32 %v3359_v39, %v3360_v8  ;;  %v3367_v27 = vrot.slane %v3366_v37, 1  ;;  %v3375_v47 = vmax.f32 %v3373_v57, %v3374_v14  ;;  %v3381_v20 = vrot.slane %v3380_v63, 1 }
 0x384   : > { %v4364_v1 = vrot.slane %v4363_v17, 4  ;;  %v4370_v6 = vsel %vm2542_vm3, %v2150_v2, -inf  ;;  %v4378_v53 = vrot.slane %v4377_v60, 4  ;;  %v4384_v59 = vsel %vm2542_vm3, %v2151_v40, -inf }
 0x385   : > { %v3368_v61 = vmax.f32 %v3366_v37, %v3367_v27  ;;  %v3382_v45 = vmax.f32 %v3380_v63, %v3381_v20  ;;  %v4615_v19 = vmax.f32 %v7453_v12, %v3361_v15  ;;  %v4617_v29 = vmax.f32 %v7547_v49, %v3375_v47 }
 0x386   : > { %v4365_v11 = vmax.f32 %v4363_v17, %v4364_v1  ;;  %v4371_v36 = vrot.slane %v4370_v6, 4  ;;  %v4379_v24 = vmax.f32 %v4377_v60, %v4378_v53  ;;  %v4385_v34 = vrot.slane %v4384_v59, 4 }
 0x387   : > { %v4616_v39 = vmax.f32 %v7460_v4, %v3368_v61  ;;  %v4618_v48 = vmax.f32 %v7554_v46, %v3382_v45  ;;  %v5950_v57 = vpack.c.bf16 %v4615_v19, %v4615_v19  ;;  %v5952_v41 = vpack.c.bf16 %v4617_v29, %v4617_v29 }
 0x388   : > { %v4366_v7 = vrot.slane %v4365_v11, 2  ;;  %v4372_v32 = vmax.f32 %v4370_v6, %v4371_v36  ;;  %v4380_v8 = vrot.slane %v4379_v24, 2  ;;  %v4386_v14 = vmax.f32 %v4384_v59, %v4385_v34 }
 0x389   : > { %v5951_v37 = vpack.c.bf16 %v4616_v39, %v4616_v39  ;;  %v5953_v63 = vpack.c.bf16 %v4618_v48, %v4618_v48  ;;  %v5335_v2 = vunpack.c.l.b16 %v5950_v57  ;;  %v5337_v12 = vunpack.c.l.b16 %v5952_v41 }
 0x38a   : > { %v4367_v40 = vmax.f32 %v4365_v11, %v4366_v7  ;;  %v4373_v49 = vrot.slane %v4372_v32, 2  ;;  %v4381_v17 = vmax.f32 %v4379_v24, %v4380_v8  ;;  %v4387_v15 = vrot.slane %v4386_v14, 2 }
 0x38b   : > { %v5336_v60 = vunpack.c.l.b16 %v5951_v37  ;;  %v7749_v27 = vunpack.c.l.b16 %v5953_v63  ;;  %v1608_v4 = vcombine.high %v920_v42, %v920_v42  ;;  %v1615_v46 = vrot.slane %v920_v42, %v6338_v50 }
 0x38c   : > { %v4368_v47 = vrot.slane %v4367_v40, 1  ;;  %v4374_v20 = vmax.f32 %v4372_v32, %v4373_v49  ;;  %v4382_v1 = vrot.slane %v4381_v17, 1  ;;  %v4388_v6 = vmax.f32 %v4386_v14, %v4387_v15 }
 0x38d   : > { %v5479_v53 = vsel %vm5423_vm4, %v5336_v60, %v5335_v2  ;;  %v1622_v59 = vrot.slane %v1608_v4, %v6338_v50  ;;  %v1623_v61 = vcombine.high %v1615_v46, %v1615_v46  ;;  %v3495_v45 = vsel %vm2542_vm3, %v1615_v46, -inf }
 0x38e   : > { %v7756_v19 = vsel %vm5425_vm5, %v5337_v12, %v5479_v53  ;;  %v4369_v29 = vmax.f32 %v4367_v40, %v4368_v47  ;;  %v4375_v11 = vrot.slane %v4374_v20, 1  ;;  %v4383_v36 = vmax.f32 %v4381_v17, %v4382_v1 }
 0x38f   : > { %v4389_v24 = vrot.slane %v4388_v6, 1  ;;  %v1624_v34 = vcombine.high %v1622_v59, %v1622_v59  ;;  %v3496_v42 = vrot.slane %v3495_v45, 4  ;;  %v3502_v39 = vsel %vm2542_vm3, %v1623_v61, -inf }
 0x390   : > { %v4376_v48 = vmax.f32 %v4374_v20, %v4375_v11  ;;  %v4687_v57 = vmax.f32 %v7560_v44, %v4369_v29  ;;  %v4689_v41 = vmax.f32 %v7571_v55, %v4383_v36  ;;  %v3503_v7 = vrot.slane %v3502_v39, 4 }
 0x391   : > { %v4390_v32 = vmax.f32 %v4388_v6, %v4389_v24  ;;  %v3497_v8 = vmax.f32 %v3495_v45, %v3496_v42  ;;  %v3509_v14 = vsel %vm2542_vm3, %v1622_v59, -inf  ;;  %v3516_v37 = vsel %vm2542_vm3, %v1624_v34, -inf }
 0x392   : > { %v4688_v63 = vmax.f32 %v7563_v5, %v4376_v48  ;;  %v6022_v2 = vpack.c.bf16 %v4687_v57, %v4687_v57  ;;  %v6024_v12 = vpack.c.bf16 %v4689_v41, %v4689_v41  ;;  %v3504_v40 = vmax.f32 %v3502_v39, %v3503_v7 }
 0x393   : > { %v4690_v49 = vmax.f32 %v7574_v31, %v4390_v32  ;;  %v3498_v17 = vrot.slane %v3497_v8, 2  ;;  %v3510_v15 = vrot.slane %v3509_v14, 4  ;;  %v3517_v60 = vrot.slane %v3516_v37, 4 }
 0x394   : > { %v6023_v44 = vpack.c.bf16 %v4688_v63, %v4688_v63  ;;  %v5407_v4 = vunpack.c.l.b16 %v6022_v2  ;;  %v5409_v55 = vunpack.c.l.b16 %v6024_v12  ;;  %v3505_v46 = vrot.slane %v3504_v40, 2 }
 0x395   : > { %v6025_v47 = vpack.c.bf16 %v4690_v49, %v4690_v49  ;;  %v3499_v20 = vmax.f32 %v3497_v8, %v3498_v17  ;;  %v3511_v1 = vmax.f32 %v3509_v14, %v3510_v15  ;;  %v3518_v6 = vmax.f32 %v3516_v37, %v3517_v60 }
 0x396   : > { %v5408_v53 = vunpack.c.l.b16 %v6023_v44  ;;  %v3506_v59 = vmax.f32 %v3504_v40, %v3505_v46  ;;  %v880_v5 = vadd.f32 %v7700_v3, %v7481_v0  ;;  %v728_v61 = vadd.f32 %v7700_v3, %v7508_v21 }
 0x397   : > { %v7769_v31 = vunpack.c.l.b16 %v6025_v47  ;;  %v3500_v45 = vrot.slane %v3499_v20, 1  ;;  %v3512_v29 = vrot.slane %v3511_v1, 2  ;;  %v3519_v11 = vrot.slane %v3518_v6, 2 }
 0x398   : > { %v5542_v36 = vsel %vm5423_vm4, %v5408_v53, %v5407_v4  ;;  %v3507_v24 = vrot.slane %v3506_v59, 1  ;;  %v956_v34 = vmax.f32 %v880_v5, 0.0  ;;  %v918_v42 = vmax.f32 %v728_v61, 0.0 }
 0x399   : > { %v7773_v39 = vsel %vm5425_vm5, %v5409_v55, %v5542_v36  ;;  %v3501_v48 = vmax.f32 %v3499_v20, %v3500_v45  ;;  %v3513_v57 = vmax.f32 %v3511_v1, %v3512_v29  ;;  %v3520_v41 = vmax.f32 %v3518_v6, %v3519_v11 }
 0x39a   : > { %v3508_v0 = vmax.f32 %v3506_v59, %v3507_v24  ;;  %v2220_v7 = vcombine.high %v956_v34, %v956_v34  ;;  %v2227_v21 = vrot.slane %v956_v34, %v6338_v50  ;;  %v1574_v32 = vcombine.high %v918_v42, %v918_v42 }
 0x39b   : > { %v3514_v8 = vrot.slane %v3513_v57, 1  ;;  %v3521_v14 = vrot.slane %v3520_v41, 1  ;;  %v4623_v37 = vmax.f32 %v7706_v62, %v3501_v48  ;;  %v1581_v63 = vrot.slane %v918_v42, %v6338_v50 }
 0x39c   : > { %v4624_v2 = vmax.f32 %v7709_v13, %v3508_v0  ;;  %v2234_v12 = vrot.slane %v2220_v7, %v6338_v50  ;;  %v2235_v40 = vcombine.high %v2227_v21, %v2227_v21  ;;  %v4503_v49 = vsel %vm2542_vm3, %v2227_v21, -inf }
 0x39d   : > { %v3515_v17 = vmax.f32 %v3513_v57, %v3514_v8  ;;  %v3522_v15 = vmax.f32 %v3520_v41, %v3521_v14  ;;  %v5958_v60 = vpack.c.bf16 %v4623_v37, %v4623_v37  ;;  %v4504_v44 = vrot.slane %v4503_v49, 4 }
 0x39e   : > { %v5959_v4 = vpack.c.bf16 %v4624_v2, %v4624_v2  ;;  %v2236_v55 = vcombine.high %v2234_v12, %v2234_v12  ;;  %v4510_v46 = vsel %vm2542_vm3, %v2235_v40, -inf  ;;  %v4517_v47 = vsel %vm2542_vm3, %v2234_v12, -inf }
 0x39f   : > { %v4625_v62 = vmax.f32 %v7714_v25, %v3515_v17  ;;  %v4626_v20 = vmax.f32 %v7716_v52, %v3522_v15  ;;  %v5343_v13 = vunpack.c.l.b16 %v5958_v60  ;;  %v4505_v1 = vmax.f32 %v4503_v49, %v4504_v44 }
 0x3a0   : > { %v5344_v6 = vunpack.c.l.b16 %v5959_v4  ;;  %v4511_v53 = vrot.slane %v4510_v46, 4  ;;  %v4518_v59 = vrot.slane %v4517_v47, 4  ;;  %v4524_v5 = vsel %vm2542_vm3, %v2236_v55, -inf }
 0x3a1   : > { %v5960_v61 = vpack.c.bf16 %v4625_v62, %v4625_v62  ;;  %v5961_v45 = vpack.c.bf16 %v4626_v20, %v4626_v20  ;;  %v4506_v29 = vrot.slane %v4505_v1, 2  ;;  %v4525_v11 = vrot.slane %v4524_v5, 4 }
 0x3a2   : > { %v5486_v36 = vsel %vm5423_vm4, %v5344_v6, %v5343_v13  ;;  %v4512_v24 = vmax.f32 %v4510_v46, %v4511_v53  ;;  %v4519_v34 = vmax.f32 %v4517_v47, %v4518_v59  ;;  %v1588_v42 = vrot.slane %v1574_v32, %v6338_v50 }
 0x3a3   : > { %v5345_v25 = vunpack.c.l.b16 %v5960_v61  ;;  %v7788_v48 = vunpack.c.l.b16 %v5961_v45  ;;  %v4507_v52 = vmax.f32 %v4505_v1, %v4506_v29  ;;  %v4526_v57 = vmax.f32 %v4524_v5, %v4525_v11 }
 0x3a4   : > { %v4513_v41 = vrot.slane %v4512_v24, 2  ;;  %v4520_v0 = vrot.slane %v4519_v34, 2  ;;  %v1589_v7 = vcombine.high %v1581_v63, %v1581_v63  ;;  %v1590_v21 = vcombine.high %v1588_v42, %v1588_v42 }
 0x3a5   : > { %v5487_v8 = vsel %vm5425_vm5, %v5345_v25, %v5486_v36  ;;  %v4508_v14 = vrot.slane %v4507_v52, 1  ;;  %v4527_v37 = vrot.slane %v4526_v57, 2  ;;  %v3439_v2 = vsel %vm2542_vm3, %v1581_v63, -inf }
 0x3a6   : > { %v4514_v12 = vmax.f32 %v4512_v24, %v4513_v41  ;;  %v4521_v40 = vmax.f32 %v4519_v34, %v4520_v0  ;;  %v3440_v49 = vrot.slane %v3439_v2, 4  ;;  %v3446_v32 = vsel %vm2542_vm3, %v1589_v7, -inf }
 0x3a7   : > { %v4509_v17 = vmax.f32 %v4507_v52, %v4508_v14  ;;  %v4528_v15 = vmax.f32 %v4526_v57, %v4527_v37  ;;  %v3447_v60 = vrot.slane %v3446_v32, 4  ;;  %v3453_v44 = vsel %vm2542_vm3, %v1588_v42, -inf }
 0x3a8   : > { %v4515_v4 = vrot.slane %v4514_v12, 1  ;;  %v4522_v55 = vrot.slane %v4521_v40, 1  ;;  %v3441_v46 = vmax.f32 %v3439_v2, %v3440_v49  ;;  %v3454_v47 = vrot.slane %v3453_v44, 4 }
 0x3a9   : > { %v4529_v62 = vrot.slane %v4528_v15, 1  ;;  %v4695_v20 = vmax.f32 %v7731_v16, %v4509_v17  ;;  %v3448_v13 = vmax.f32 %v3446_v32, %v3447_v60  ;;  %v3460_v63 = vsel %vm2542_vm3, %v1590_v21, -inf }
 0x3aa   : > { %v4516_v1 = vmax.f32 %v4514_v12, %v4515_v4  ;;  %v4523_v6 = vmax.f32 %v4521_v40, %v4522_v55  ;;  %v3442_v53 = vrot.slane %v3441_v46, 2  ;;  %v3455_v59 = vmax.f32 %v3453_v44, %v3454_v47 }
 0x3ab   : > { %v4530_v5 = vmax.f32 %v4528_v15, %v4529_v62  ;;  %v6030_v61 = vpack.c.bf16 %v4695_v20, %v4695_v20  ;;  %v3449_v45 = vrot.slane %v3448_v13, 2  ;;  %v3461_v29 = vrot.slane %v3460_v63, 4 }
 0x3ac   : > { %v4696_v11 = vmax.f32 %v7733_v9, %v4516_v1  ;;  %v4697_v36 = vmax.f32 %v7735_v22, %v4523_v6  ;;  %v3443_v24 = vmax.f32 %v3441_v46, %v3442_v53  ;;  %v3456_v34 = vrot.slane %v3455_v59, 2 }
 0x3ad   : > { %v4698_v42 = vmax.f32 %v7737_v28, %v4530_v5  ;;  %v5415_v16 = vunpack.c.l.b16 %v6030_v61  ;;  %v3450_v25 = vmax.f32 %v3448_v13, %v3449_v45  ;;  %v3462_v52 = vmax.f32 %v3460_v63, %v3461_v29  ;;  %v7952_v63 = vld [vmem:[#allocation5_spill] sm:$0xff] }
 0x3ae   : > { %v6031_v57 = vpack.c.bf16 %v4696_v11, %v4696_v11  ;;  %v6032_v41 = vpack.c.bf16 %v4697_v36, %v4697_v36  ;;  %v3444_v0 = vrot.slane %v3443_v24, 1  ;;  %v3457_v7 = vmax.f32 %v3455_v59, %v3456_v34 }
 0x3af   : > { %v6033_v21 = vpack.c.bf16 %v4698_v42, %v4698_v42  ;;  %v3451_v14 = vrot.slane %v3450_v25, 1  ;;  %v3463_v37 = vrot.slane %v3462_v52, 2  ;;  %v872_v2 = vadd.f32 %v7700_v3, %v7520_v56 }
 0x3b0   : > { %v5416_v9 = vunpack.c.l.b16 %v6031_v57  ;;  %v5417_v12 = vunpack.c.l.b16 %v6032_v41  ;;  %v7801_v22 = vmax.f32 %v3443_v24, %v3444_v0  ;;  %v3458_v40 = vrot.slane %v3457_v7, 1 }
 0x3b1   : > { %v5418_v49 = vunpack.c.l.b16 %v6033_v21  ;;  %v7803_v28 = vmax.f32 %v3450_v25, %v3451_v14  ;;  %v3464_v32 = vmax.f32 %v3462_v52, %v3463_v37  ;;  %v954_v17 = vmax.f32 %v872_v2, 0.0 }
 0x3b2   : > { %v5549_v15 = vsel %vm5423_vm4, %v5416_v9, %v5415_v16  ;;  %v7806_v60 = vmax.f32 %v3457_v7, %v3458_v40  ;;  %v739_v44 = vadd.f32 %v7700_v3, %v7557_v18  ;;  %v7812_v56 = vsel %vm5427_vm6, %v7788_v48, %v5487_v8 }
 0x3b3   : > { %v5550_v4 = vsel %vm5425_vm5, %v5417_v12, %v5549_v15  ;;  %v3465_v55 = vrot.slane %v3464_v32, 1  ;;  %v2186_v46 = vcombine.high %v954_v17, %v954_v17  ;;  %v2193_v47 = vrot.slane %v954_v17, %v6338_v50 }
 0x3b4   : > { %v921_v62 = vmax.f32 %v739_v44, 0.0  ;;  %v883_v20 = vadd.f32 %v7700_v3, %v7582_v35  ;;  %v7819_v13 = vsel %vm5427_vm6, %v5418_v49, %v5550_v4  ;;  %v731_v18 = vadd.f32 %v7700_v3, %v7952_v63 }
 0x3b5   : > { %v7823_v1 = vmax.f32 %v3464_v32, %v3465_v55  ;;  %v2200_v48 = vrot.slane %v2186_v46, %v6338_v50  ;;  %v2201_v8 = vcombine.high %v2193_v47, %v2193_v47  ;;  %v4447_v6 = vsel %vm2542_vm3, %v2193_v47, -inf }
 0x3b6   : > { %v4448_v53 = vrot.slane %v4447_v6, 4  ;;  %v1625_v59 = vcombine.high %v921_v62, %v921_v62  ;;  %v1632_v5 = vrot.slane %v921_v62, %v6338_v50  ;;  %v957_v61 = vmax.f32 %v883_v20, 0.0 }
 0x3b7   : > { %v2202_v45 = vcombine.high %v2200_v48, %v2200_v48  ;;  %v4454_v35 = vsel %vm2542_vm3, %v2201_v8, -inf  ;;  %v4461_v29 = vsel %vm2542_vm3, %v2200_v48, -inf  ;;  %v7830_v11 = vmax.f32 %v731_v18, 0.0 }
 0x3b8   : > { %v4449_v36 = vmax.f32 %v4447_v6, %v4448_v53  ;;  %v4455_v24 = vrot.slane %v4454_v35, 4  ;;  %v4462_v34 = vrot.slane %v4461_v29, 4  ;;  %v1639_v42 = vrot.slane %v1625_v59, %v6338_v50 }
 0x3b9   : > { %v4468_v16 = vsel %vm2542_vm3, %v2202_v45, -inf  ;;  %v1640_v25 = vcombine.high %v1632_v5, %v1632_v5  ;;  %v3523_v52 = vsel %vm2542_vm3, %v1632_v5, -inf  ;;  %v2237_v57 = vcombine.high %v957_v61, %v957_v61 }
 0x3ba   : > { %v4450_v41 = vrot.slane %v4449_v36, 2  ;;  %v4456_v0 = vmax.f32 %v4454_v35, %v4455_v24  ;;  %v4463_v7 = vmax.f32 %v4461_v29, %v4462_v34  ;;  %v4469_v21 = vrot.slane %v4468_v16, 4 }
 0x3bb   : > { %v1641_v14 = vcombine.high %v1639_v42, %v1639_v42  ;;  %v3524_v37 = vrot.slane %v3523_v52, 4  ;;  %v3530_v2 = vsel %vm2542_vm3, %v1640_v25, -inf  ;;  %v3537_v9 = vsel %vm2542_vm3, %v1639_v42, -inf }
 0x3bc   : > { %v4451_v12 = vmax.f32 %v4449_v36, %v4450_v41  ;;  %v4457_v40 = vrot.slane %v4456_v0, 2  ;;  %v4464_v49 = vrot.slane %v4463_v7, 2  ;;  %v4470_v32 = vmax.f32 %v4468_v16, %v4469_v21 }
 0x3bd   : > { %v3525_v17 = vmax.f32 %v3523_v52, %v3524_v37  ;;  %v3531_v15 = vrot.slane %v3530_v2, 4  ;;  %v3538_v44 = vrot.slane %v3537_v9, 4  ;;  %v3544_v4 = vsel %vm2542_vm3, %v1641_v14, -inf }
 0x3be   : > { %v4452_v55 = vrot.slane %v4451_v12, 1  ;;  %v4458_v46 = vmax.f32 %v4456_v0, %v4457_v40  ;;  %v4465_v47 = vmax.f32 %v4463_v7, %v4464_v49  ;;  %v4471_v62 = vrot.slane %v4470_v32, 2 }
 0x3bf   : > { %v3526_v20 = vrot.slane %v3525_v17, 2  ;;  %v3532_v63 = vmax.f32 %v3530_v2, %v3531_v15  ;;  %v3539_v18 = vmax.f32 %v3537_v9, %v3538_v44  ;;  %v3545_v48 = vrot.slane %v3544_v4, 4 }
 0x3c0   : > { %v7838_v8 = vmax.f32 %v4451_v12, %v4452_v55  ;;  %v4459_v6 = vrot.slane %v4458_v46, 1  ;;  %v4466_v53 = vrot.slane %v4465_v47, 1  ;;  %v4472_v59 = vmax.f32 %v4470_v32, %v4471_v62 }
 0x3c1   : > { %v3527_v5 = vmax.f32 %v3525_v17, %v3526_v20  ;;  %v3533_v45 = vrot.slane %v3532_v63, 2  ;;  %v3540_v35 = vrot.slane %v3539_v18, 2  ;;  %v3546_v29 = vmax.f32 %v3544_v4, %v3545_v48 }
 0x3c2   : > { %v7840_v36 = vmax.f32 %v4458_v46, %v4459_v6  ;;  %v7842_v24 = vmax.f32 %v4465_v47, %v4466_v53  ;;  %v4473_v34 = vrot.slane %v4472_v59, 1  ;;  %v2244_v42 = vrot.slane %v957_v61, %v6338_v50 }
 0x3c3   : > { %v3528_v16 = vrot.slane %v3527_v5, 1  ;;  %v3534_v25 = vmax.f32 %v3532_v63, %v3533_v45  ;;  %v3541_v52 = vmax.f32 %v3539_v18, %v3540_v35  ;;  %v3547_v41 = vrot.slane %v3546_v29, 2 }
 0x3c4   : > { %v7845_v0 = vmax.f32 %v4472_v59, %v4473_v34  ;;  %v2251_v7 = vrot.slane %v2237_v57, %v6338_v50  ;;  %v2252_v21 = vcombine.high %v2244_v42, %v2244_v42  ;;  %v4531_v14 = vsel %vm2542_vm3, %v2244_v42, -inf }
 0x3c5   : > { %v3529_v37 = vmax.f32 %v3527_v5, %v3528_v16  ;;  %v3535_v2 = vrot.slane %v3534_v25, 1  ;;  %v3542_v9 = vrot.slane %v3541_v52, 1  ;;  %v3548_v12 = vmax.f32 %v3546_v29, %v3547_v41 }
 0x3c6   : > { %v2253_v40 = vcombine.high %v2251_v7, %v2251_v7  ;;  %v4532_v49 = vrot.slane %v4531_v14, 4  ;;  %v4538_v32 = vsel %vm2542_vm3, %v2252_v21, -inf  ;;  %v4545_v61 = vsel %vm2542_vm3, %v2251_v7, -inf }
 0x3c7   : > { %v3536_v17 = vmax.f32 %v3534_v25, %v3535_v2  ;;  %v3543_v15 = vmax.f32 %v3541_v52, %v3542_v9  ;;  %v3549_v44 = vrot.slane %v3548_v12, 1  ;;  %v4627_v4 = vmax.f32 %v7801_v22, %v3529_v37 }
 0x3c8   : > { %v4533_v55 = vmax.f32 %v4531_v14, %v4532_v49  ;;  %v4539_v57 = vrot.slane %v4538_v32, 4  ;;  %v4546_v46 = vrot.slane %v4545_v61, 4  ;;  %v4552_v47 = vsel %vm2542_vm3, %v2253_v40, -inf }
 0x3c9   : > { %v3550_v62 = vmax.f32 %v3548_v12, %v3549_v44  ;;  %v4628_v20 = vmax.f32 %v7803_v28, %v3536_v17  ;;  %v4629_v63 = vmax.f32 %v7806_v60, %v3543_v15  ;;  %v5962_v18 = vpack.c.bf16 %v4627_v4, %v4627_v4 }
 0x3ca   : > { %v4534_v48 = vrot.slane %v4533_v55, 2  ;;  %v4540_v6 = vmax.f32 %v4538_v32, %v4539_v57  ;;  %v4547_v53 = vmax.f32 %v4545_v61, %v4546_v46  ;;  %v4553_v59 = vrot.slane %v4552_v47, 4 }
 0x3cb   : > { %v4630_v5 = vmax.f32 %v7823_v1, %v3550_v62  ;;  %v5963_v45 = vpack.c.bf16 %v4628_v20, %v4628_v20  ;;  %v5964_v35 = vpack.c.bf16 %v4629_v63, %v4629_v63  ;;  %v5347_v22 = vunpack.c.l.b16 %v5962_v18 }
 0x3cc   : > { %v4535_v29 = vmax.f32 %v4533_v55, %v4534_v48  ;;  %v4541_v34 = vrot.slane %v4540_v6, 2  ;;  %v4548_v42 = vrot.slane %v4547_v53, 2  ;;  %v4554_v16 = vmax.f32 %v4552_v47, %v4553_v59 }
 0x3cd   : > { %v5965_v25 = vpack.c.bf16 %v4630_v5, %v4630_v5  ;;  %v5348_v52 = vunpack.c.l.b16 %v5963_v45  ;;  %v5349_v41 = vunpack.c.l.b16 %v5964_v35  ;;  %v5489_v28 = vsel %vm5429_vm7, %v5347_v22, %v7812_v56 }
 0x3ce   : > { %v4536_v60 = vrot.slane %v4535_v29, 1  ;;  %v4542_v7 = vmax.f32 %v4540_v6, %v4541_v34  ;;  %v4549_v21 = vmax.f32 %v4547_v53, %v4548_v42  ;;  %v4555_v14 = vrot.slane %v4554_v16, 2 }
 0x3cf   : > { %v5350_v37 = vunpack.c.l.b16 %v5965_v25  ;;  %v5490_v1 = vsel %vm5431_vm8, %v5348_v52, %v5489_v28  ;;  %v1591_v2 = vcombine.high %v7830_v11, %v7830_v11  ;;  %v1598_v9 = vrot.slane %v7830_v11, %v6338_v50 }
 0x3d0   : > { %v5491_v12 = vsel %vm5433_vm9, %v5349_v41, %v5490_v1  ;;  %v4537_v40 = vmax.f32 %v4535_v29, %v4536_v60  ;;  %v4543_v49 = vrot.slane %v4542_v7, 1  ;;  %v4550_v32 = vrot.slane %v4549_v21, 1 }
 0x3d1   : > { %v5492_v56 = vsel %vm5435_vm10, %v5350_v37, %v5491_v12  ;;  %v4556_v61 = vmax.f32 %v4554_v16, %v4555_v14  ;;  %v1605_v17 = vrot.slane %v1591_v2, %v6338_v50  ;;  %v1606_v15 = vcombine.high %v1598_v9, %v1598_v9 }
 0x3d2   : > { %v5564_v44 = vpack.c.b16 %v5492_v56, %v5492_v56  ;;  %v4544_v4 = vmax.f32 %v4542_v7, %v4543_v49  ;;  %v4551_v55 = vmax.f32 %v4549_v21, %v4550_v32  ;;  %v4699_v57 = vmax.f32 %v7838_v8, %v4537_v40 }
 0x3d3   : > { %v4557_v46 = vrot.slane %v4556_v61, 1  ;;  %v1607_v47 = vcombine.high %v1605_v17, %v1605_v17  ;;  %v3467_v11 = vsel %vm2542_vm3, %v1598_v9, -inf  ;;  %v3474_v62 = vsel %vm2542_vm3, %v1606_v15, -inf }
 0x3d4   : > { %5600 = vst [vmem:[%s6637_s29 + $0x20] sm:$0xf] %v5564_v44  ;;  %v4700_v20 = vmax.f32 %v7840_v36, %v4544_v4  ;;  %v4701_v63 = vmax.f32 %v7842_v24, %v4551_v55  ;;  %v6034_v18 = vpack.c.bf16 %v4699_v57, %v4699_v57  ;;  %v3468_v48 = vrot.slane %v3467_v11, 4 }
 0x3d5   : > { %v4558_v6 = vmax.f32 %v4556_v61, %v4557_v46  ;;  %v3475_v53 = vrot.slane %v3474_v62, 4  ;;  %v3481_v59 = vsel %vm2542_vm3, %v1605_v17, -inf  ;;  %v3488_v5 = vsel %vm2542_vm3, %v1607_v47, -inf }
 0x3d6   : > { %v6035_v8 = vpack.c.bf16 %v4700_v20, %v4700_v20  ;;  %v6036_v45 = vpack.c.bf16 %v4701_v63, %v4701_v63  ;;  %v5419_v35 = vunpack.c.l.b16 %v6034_v18  ;;  %v3469_v22 = vmax.f32 %v3467_v11, %v3468_v48 }
 0x3d7   : > { %v4702_v29 = vmax.f32 %v7845_v0, %v4558_v6  ;;  %v3476_v34 = vmax.f32 %v3474_v62, %v3475_v53  ;;  %v3482_v42 = vrot.slane %v3481_v59, 4  ;;  %v3489_v16 = vrot.slane %v3488_v5, 4 }
 0x3d8   : > { %v5420_v36 = vunpack.c.l.b16 %v6035_v8  ;;  %v5421_v25 = vunpack.c.l.b16 %v6036_v45  ;;  %v5552_v24 = vsel %vm5429_vm7, %v5419_v35, %v7819_v13  ;;  %v3470_v52 = vrot.slane %v3469_v22, 2 }
 0x3d9   : > { %v6037_v41 = vpack.c.bf16 %v4702_v29, %v4702_v29  ;;  %v3477_v28 = vrot.slane %v3476_v34, 2  ;;  %v3483_v60 = vmax.f32 %v3481_v59, %v3482_v42  ;;  %v3490_v7 = vmax.f32 %v3488_v5, %v3489_v16 }
 0x3da   : > { %v5553_v21 = vsel %vm5431_vm8, %v5420_v36, %v5552_v24  ;;  %v3471_v14 = vmax.f32 %v3469_v22, %v3470_v52  ;;  %v5481_v0 = vsel %vm5427_vm6, %v7749_v27, %v7756_v19  ;;  %v875_v37 = vadd.f32 %v7700_v3, %v7637_v30 }
 0x3db   : > { %v5422_v1 = vunpack.c.l.b16 %v6037_v41  ;;  %v5554_v2 = vsel %vm5433_vm9, %v5421_v25, %v5553_v21  ;;  %v3478_v9 = vmax.f32 %v3476_v34, %v3477_v28  ;;  %v3484_v13 = vrot.slane %v3483_v60, 2 }
 0x3dc   : > { %v3472_v12 = vrot.slane %v3471_v14, 1  ;;  %v3491_v40 = vrot.slane %v3490_v7, 2  ;;  %v955_v49 = vmax.f32 %v875_v37, 0.0  ;;  %v7887_v32 = vsel %vm5427_vm6, %v7769_v31, %v7773_v39 }
 0x3dd   : > { %v7892_v27 = vmax.f32 %v7635_v10, %v4401_v38  ;;  %v5555_v30 = vsel %vm5435_vm10, %v5422_v1, %v5554_v2  ;;  %v3479_v3 = vrot.slane %v3478_v9, 1  ;;  %v3485_v19 = vmax.f32 %v3483_v60, %v3484_v13  ;;  %v7953_v38 = vld [vmem:[#allocation6_spill] sm:$0xff] }
 0x3de   : > { %v5573_v56 = vpack.c.b16 %v5555_v30, %v5555_v30  ;;  %v3473_v61 = vmax.f32 %v3471_v14, %v3472_v12  ;;  %v3492_v17 = vmax.f32 %v3490_v7, %v3491_v40  ;;  %v2203_v15 = vcombine.high %v955_v49, %v955_v49 }
 0x3df   : > { %v4415_v44 = vrot.slane %v7653_v26, 2  ;;  %v3480_v4 = vmax.f32 %v3478_v9, %v3479_v3  ;;  %v3486_v55 = vrot.slane %v3485_v19, 1  ;;  %v2210_v31 = vrot.slane %v955_v49, %v6338_v50 }
 0x3e0   : > { %v4409_v39 = vmax.f32 %v7644_v58, %v4408_v23  ;;  %5609 = vst [vmem:[%s6637_s29 + $0x44] sm:$0xf] %v5573_v56  ;;  %v3493_v10 = vrot.slane %v3492_v17, 1  ;;  %v4619_v57 = vmax.f32 %v7953_v38, %v3473_v61  ;;  %v2217_v46 = vrot.slane %v2203_v15, %v6338_v50 }
 0x3e1   : > { %v3487_v47 = vmax.f32 %v3485_v19, %v3486_v55  ;;  %v4620_v11 = vmax.f32 %v7640_v33, %v3480_v4  ;;  %v2218_v62 = vcombine.high %v2210_v31, %v2210_v31  ;;  %v4475_v20 = vsel %vm2542_vm3, %v2210_v31, -inf }
 0x3e2   : > { %v3494_v63 = vmax.f32 %v3492_v17, %v3493_v10  ;;  %v5954_v18 = vpack.c.bf16 %v4619_v57, %v4619_v57  ;;  %v2219_v48 = vcombine.high %v2217_v46, %v2217_v46  ;;  %v4476_v6 = vrot.slane %v4475_v20, 4 }
 0x3e3   : > { %v4621_v53 = vmax.f32 %v7642_v43, %v3487_v47  ;;  %v5955_v59 = vpack.c.bf16 %v4620_v11, %v4620_v11  ;;  %v4482_v58 = vsel %vm2542_vm3, %v2218_v62, -inf  ;;  %v4489_v23 = vsel %vm2542_vm3, %v2217_v46, -inf }
 0x3e4   : > { %v4622_v5 = vmax.f32 %v7646_v51, %v3494_v63  ;;  %v5339_v50 = vunpack.c.l.b16 %v5954_v18  ;;  %v4477_v8 = vmax.f32 %v4475_v20, %v4476_v6  ;;  %v4483_v45 = vrot.slane %v4482_v58, 4 }
 0x3e5   : > { %v5956_v33 = vpack.c.bf16 %v4621_v53, %v4621_v53  ;;  %v5340_v35 = vunpack.c.l.b16 %v5955_v59  ;;  %v4490_v22 = vrot.slane %v4489_v23, 4  ;;  %v4496_v29 = vsel %vm2542_vm3, %v2219_v48, -inf }
 0x3e6   : > { %v5957_v34 = vpack.c.bf16 %v4622_v5, %v4622_v5  ;;  %v5482_v42 = vsel %vm5429_vm7, %v5339_v50, %v5481_v0  ;;  %v4478_v16 = vrot.slane %v4477_v8, 2  ;;  %v4484_v43 = vmax.f32 %v4482_v58, %v4483_v45 }
 0x3e7   : > { %v5341_v36 = vunpack.c.l.b16 %v5956_v33  ;;  %v5483_v25 = vsel %vm5431_vm8, %v5340_v35, %v5482_v42  ;;  %v4491_v24 = vmax.f32 %v4489_v23, %v4490_v22  ;;  %v4497_v52 = vrot.slane %v4496_v29, 4 }
 0x3e8   : > { %v4396_v51 = vrot.slane %v7648_v54, 1  ;;  %v5342_v41 = vunpack.c.l.b16 %v5957_v34  ;;  %v4479_v28 = vmax.f32 %v4477_v8, %v4478_v16  ;;  %v4485_v60 = vrot.slane %v4484_v43, 2 }
 0x3e9   : > { %v4416_v7 = vmax.f32 %v7653_v26, %v4415_v44  ;;  %v5484_v21 = vsel %vm5433_vm9, %v5341_v36, %v5483_v25  ;;  %v4492_v14 = vrot.slane %v4491_v24, 2  ;;  %v4498_v37 = vmax.f32 %v4496_v29, %v4497_v52 }
 0x3ea   : > { %v4403_v0 = vrot.slane %v7892_v27, 1  ;;  %v5485_v1 = vsel %vm5435_vm10, %v5342_v41, %v5484_v21  ;;  %v4480_v2 = vrot.slane %v4479_v28, 1  ;;  %v4486_v9 = vmax.f32 %v4484_v43, %v4485_v60 }
 0x3eb   : > { %v4410_v13 = vrot.slane %v4409_v39, 1  ;;  %v5563_v12 = vpack.c.b16 %v5485_v1, %v5485_v1  ;;  %v4493_v40 = vmax.f32 %v4491_v24, %v4492_v14  ;;  %v4499_v49 = vrot.slane %v4498_v37, 2 }
 0x3ec   : > { %v4397_v30 = vmax.f32 %v7648_v54, %v4396_v51  ;;  %v4481_v3 = vmax.f32 %v4479_v28, %v4480_v2  ;;  %v4487_v19 = vrot.slane %v4486_v9, 1  ;;  %v4417_v26 = vrot.slane %v4416_v7, 1 }
 0x3ed   : > { %5599 = vst [vmem:[%s6637_s29 + $0x1c] sm:$0xf] %v5563_v12  ;;  %v4494_v56 = vrot.slane %v4493_v40, 1  ;;  %v4500_v61 = vmax.f32 %v4498_v37, %v4499_v49  ;;  %v4404_v17 = vmax.f32 %v7892_v27, %v4403_v0  ;;  %v4411_v4 = vmax.f32 %v4409_v39, %v4410_v13 }
 0x3ee   : > { %v4488_v15 = vmax.f32 %v4486_v9, %v4487_v19  ;;  %v4691_v44 = vmax.f32 %v4397_v30, %v4481_v3  ;;  %v4418_v57 = vmax.f32 %v4416_v7, %v4417_v26 }
 0x3ef   : > { %v4495_v55 = vmax.f32 %v4493_v40, %v4494_v56  ;;  %v4501_v31 = vrot.slane %v4500_v61, 1 }
 0x3f0   : > { %v4692_v10 = vmax.f32 %v4404_v17, %v4488_v15  ;;  %v6026_v38 = vpack.c.bf16 %v4691_v44, %v4691_v44 }
 0x3f1   : > { %v4502_v46 = vmax.f32 %v4500_v61, %v4501_v31  ;;  %v4693_v47 = vmax.f32 %v4411_v4, %v4495_v55 }
 0x3f2   : > { %v6027_v54 = vpack.c.bf16 %v4692_v10, %v4692_v10  ;;  %v5411_v11 = vunpack.c.l.b16 %v6026_v38 }
 0x3f3   : > { %v4694_v62 = vmax.f32 %v4418_v57, %v4502_v46  ;;  %v6028_v20 = vpack.c.bf16 %v4693_v47, %v4693_v47 }
 0x3f4   : > { %v5412_v63 = vunpack.c.l.b16 %v6027_v54  ;;  %v5545_v18 = vsel %vm5429_vm7, %v5411_v11, %v7887_v32 }
 0x3f5   : > { %v6029_v27 = vpack.c.bf16 %v4694_v62, %v4694_v62  ;;  %v5413_v48 = vunpack.c.l.b16 %v6028_v20 }
 0x3f6   : > { %v5546_v39 = vsel %vm5431_vm8, %v5412_v63, %v5545_v18 }
 0x3f7   : > { %v5414_v6 = vunpack.c.l.b16 %v6029_v27  ;;  %v5547_v53 = vsel %vm5433_vm9, %v5413_v48, %v5546_v39 }
 0x3f9   : > { %v5548_v59 = vsel %vm5435_vm10, %v5414_v6, %v5547_v53 }
 0x3fa   : > { %v5572_v58 = vpack.c.b16 %v5548_v59, %v5548_v59 }
 0x3fc   : > { %5608 = vst [vmem:[%s6637_s29 + $0x40] sm:$0xf] %v5572_v58 }
 0x3fd PF: > { %s13_s12 = sadd.s32 1, %s6215_s12  }
 0x3fe   : > { %p10_p5 = scmp.ge.s32.totalorder %s13_s12, 4  }
 0x400   :  { %12 = sbr.rel (!%p10_p5) target bundleno = 1 (0x1), region = 62 }

// kernel: toy_mnist_forward.5
= control target key start
LH: loop header
LB: loop body
LE: loop exit
PB: predicated region body
PF: predicated region fallthrough
CT: control target
= control target key end

     0   :  { %vm2095_vm0 = vmmov 0   ;;  %s2594_s1 = inlined_call_operand.vmem [shape: bf16[2048,128], index: 1, kind: input, shape index: {}]   ;;  %s2595_s0 = inlined_call_operand.vmem [shape: bf16[16,2048], index: 0, kind: input, shape index: {}]   ;;  %s2596_s3 = inlined_call_operand.vmem [shape: bf16[128,128], index: 3, kind: input, shape index: {}]   ;;  %s2597_s2 = inlined_call_operand.vmem [shape: f32[1,128], index: 2, kind: input, shape index: {}]   ;;  %s2598_s4 = inlined_call_operand.vmem [shape: f32[1,128], index: 4, kind: input, shape index: {}]   ;;  %s2599_s5 = inlined_call_operand.vmem [shape: f32[16,128], index: 5, kind: output, shape index: {}]  }
   0x1   :  { %v1958_v0 = vld [vmem:[%s2594_s1 + $0x40] sm:$0xff]   ;;  %v1962_v4 = vld [vmem:[%s2594_s1 + $0x48] sm:$0xff]   ;;  %v1966_v8 = vld [vmem:[%s2594_s1 + $0x50] sm:$0xff]  }
   0x2   :  { %v1959_v1 = vld [vmem:[%s2594_s1 + $0xc0] sm:$0xff]   ;;  %1751 = vmatprep.subr.bf16.mxu0 %v1958_v0  ;;  %v1963_v5 = vld [vmem:[%s2594_s1 + $0xc8] sm:$0xff]   ;;  %v1967_v9 = vld [vmem:[%s2594_s1 + $0xd0] sm:$0xff]  }
   0x3   :  { %v1960_v2 = vld [vmem:[%s2594_s1] sm:$0xff]   ;;  %1773 = vmatprep.subr.bf16.mxu1 %v1959_v1  ;;  %v1964_v6 = vld [vmem:[%s2594_s1 + $0x8] sm:$0xff]   ;;  %v1968_v10 = vld [vmem:[%s2594_s1 + $0x10] sm:$0xff]  }
   0x4   :  { %v1961_v3 = vld [vmem:[%s2594_s1 + $0x80] sm:$0xff]   ;;  %1752 = vmatpush3.bf16.msra.mxu0 %v1960_v2  ;;  %v1965_v7 = vld [vmem:[%s2594_s1 + $0x88] sm:$0xff]   ;;  %v1969_v11 = vld [vmem:[%s2594_s1 + $0x90] sm:$0xff]  }
   0x5   :  { %1774 = vmatpush3.bf16.msra.mxu1 %v1961_v3  ;;  %1753 = vmatprep.subr.bf16.mxu0 %v1962_v4  ;;  %v1970_v12 = vld [vmem:[%s2594_s1 + $0x58] sm:$0xff]   ;;  %v1974_v16 = vld [vmem:[%s2594_s1 + $0x60] sm:$0xff]   ;;  %v1978_v20 = vld [vmem:[%s2594_s1 + $0x68] sm:$0xff]  }
   0x6   :  { %1775 = vmatprep.subr.bf16.mxu1 %v1963_v5  ;;  %v1971_v13 = vld [vmem:[%s2594_s1 + $0xd8] sm:$0xff]   ;;  %v1975_v17 = vld [vmem:[%s2594_s1 + $0xe0] sm:$0xff]   ;;  %v1979_v21 = vld [vmem:[%s2594_s1 + $0xe8] sm:$0xff]  }
   0x7   :  { %v1972_v14 = vld [vmem:[%s2594_s1 + $0x18] sm:$0xff]   ;;  %v1976_v18 = vld [vmem:[%s2594_s1 + $0x20] sm:$0xff]   ;;  %v1980_v22 = vld [vmem:[%s2594_s1 + $0x28] sm:$0xff]  }
   0x8   :  { %1754 = vmatpush3.bf16.msra.mxu0 %v1964_v6  ;;  %v1973_v15 = vld [vmem:[%s2594_s1 + $0x98] sm:$0xff]   ;;  %v1977_v19 = vld [vmem:[%s2594_s1 + $0xa0] sm:$0xff]   ;;  %v1981_v23 = vld [vmem:[%s2594_s1 + $0xa8] sm:$0xff]  }
   0x9   :  { %1776 = vmatpush3.bf16.msra.mxu1 %v1965_v7  ;;  %1755 = vmatprep.subr.bf16.mxu0 %v1966_v8  ;;  %v1982_v24 = vld [vmem:[%s2594_s1 + $0x70] sm:$0xff]   ;;  %v1986_v28 = vld [vmem:[%s2594_s1 + $0x78] sm:$0xff]   ;;  %v21_v32 = vld [vmem:[%s2595_s0] sm:$0xff] }
   0xa   :  { %1777 = vmatprep.subr.bf16.mxu1 %v1967_v9  ;;  %v1983_v25 = vld [vmem:[%s2594_s1 + $0xf0] sm:$0xff]   ;;  %v1987_v29 = vld [vmem:[%s2594_s1 + $0xf8] sm:$0xff]   ;;  %v29_v33 = vld [vmem:[%s2595_s0 + $0x40] sm:$0xff] }
   0xb   :  { %v1984_v26 = vld [vmem:[%s2594_s1 + $0x30] sm:$0xff]   ;;  %v1988_v30 = vld [vmem:[%s2594_s1 + $0x38] sm:$0xff]   ;;  %v22_v34 = vld [vmem:[%s2595_s0 + $0x8] sm:$0xff]  ;;  %v1598_v35 = vcombine.low %v21_v32, %v29_v33  ;;  %v1599_v36 = vcombine.high %v21_v32, %v29_v33 }
   0xc   :  { %1756 = vmatpush3.bf16.msra.mxu0 %v1968_v10  ;;  %v1985_v27 = vld [vmem:[%s2594_s1 + $0xb0] sm:$0xff]   ;;  %v1989_v31 = vld [vmem:[%s2594_s1 + $0xb8] sm:$0xff]   ;;  %v30_v37 = vld [vmem:[%s2595_s0 + $0x48] sm:$0xff] }
   0xd   :  { %1778 = vmatpush3.bf16.msra.mxu1 %v1969_v11  ;;  %1757 = vmatprep.subr.bf16.mxu0 %v1970_v12  ;;  %v1600_v38 = vcombine.low %v22_v34, %v30_v37  ;;  %v1601_v39 = vcombine.high %v22_v34, %v30_v37  ;;  %v1990_v40 = vld [vmem:[%s2594_s1 + $0x140] sm:$0xff]   ;;  %v1994_v44 = vld [vmem:[%s2594_s1 + $0x148] sm:$0xff]   ;;  %v1998_v48 = vld [vmem:[%s2594_s1 + $0x150] sm:$0xff]  }
   0xe   :  { %1779 = vmatprep.subr.bf16.mxu1 %v1971_v13  ;;  %1180 = vmatprep.mubr.bf16.mxu0 %v1599_v36  ;;  %v1991_v41 = vld [vmem:[%s2594_s1 + $0x1c0] sm:$0xff]   ;;  %v1995_v45 = vld [vmem:[%s2594_s1 + $0x1c8] sm:$0xff]   ;;  %v1999_v49 = vld [vmem:[%s2594_s1 + $0x1d0] sm:$0xff]  }
   0xf   :  { %1221 = vmatprep.mubr.bf16.mxu1 %v1601_v39  ;;  %v1992_v42 = vld [vmem:[%s2594_s1 + $0x100] sm:$0xff]   ;;  %v1996_v46 = vld [vmem:[%s2594_s1 + $0x108] sm:$0xff]   ;;  %v2000_v50 = vld [vmem:[%s2594_s1 + $0x110] sm:$0xff]  }
  0x10   :  { %1758 = vmatpush3.bf16.msra.mxu0 %v1972_v14  ;;  %v1993_v43 = vld [vmem:[%s2594_s1 + $0x180] sm:$0xff]   ;;  %v1997_v47 = vld [vmem:[%s2594_s1 + $0x188] sm:$0xff]   ;;  %v2001_v51 = vld [vmem:[%s2594_s1 + $0x190] sm:$0xff]  }
  0x11   :  { %1780 = vmatpush3.bf16.msra.mxu1 %v1973_v15  ;;  %1759 = vmatprep.subr.bf16.mxu0 %v1974_v16  ;;  %v2002_v52 = vld [vmem:[%s2594_s1 + $0x158] sm:$0xff]   ;;  %v2006_v56 = vld [vmem:[%s2594_s1 + $0x160] sm:$0xff]   ;;  %v2010_v60 = vld [vmem:[%s2594_s1 + $0x168] sm:$0xff]  }
  0x12   :  { %1781 = vmatprep.subr.bf16.mxu1 %v1975_v17  ;;  %v2003_v53 = vld [vmem:[%s2594_s1 + $0x1d8] sm:$0xff]   ;;  %v2007_v57 = vld [vmem:[%s2594_s1 + $0x1e0] sm:$0xff]   ;;  %v2011_v61 = vld [vmem:[%s2594_s1 + $0x1e8] sm:$0xff]  }
  0x13   :  { %v2004_v54 = vld [vmem:[%s2594_s1 + $0x118] sm:$0xff]   ;;  %v2008_v58 = vld [vmem:[%s2594_s1 + $0x120] sm:$0xff]   ;;  %v2012_v62 = vld [vmem:[%s2594_s1 + $0x128] sm:$0xff]  }
  0x14   :  { %1760 = vmatpush3.bf16.msra.mxu0 %v1976_v18  ;;  %v2005_v55 = vld [vmem:[%s2594_s1 + $0x198] sm:$0xff]   ;;  %v2009_v59 = vld [vmem:[%s2594_s1 + $0x1a0] sm:$0xff]   ;;  %v2013_v63 = vld [vmem:[%s2594_s1 + $0x1a8] sm:$0xff]  }
  0x15   :  { %1782 = vmatpush3.bf16.msra.mxu1 %v1977_v19  ;;  %1761 = vmatprep.subr.bf16.mxu0 %v1978_v20  ;;  %v2014_v0 = vld [vmem:[%s2594_s1 + $0x170] sm:$0xff]   ;;  %v2018_v4 = vld [vmem:[%s2594_s1 + $0x178] sm:$0xff]   ;;  %v2022_v16 = vld [vmem:[%s2594_s1 + $0x240] sm:$0xff]  }
  0x16   :  { %1783 = vmatprep.subr.bf16.mxu1 %v1979_v21  ;;  %v2015_v1 = vld [vmem:[%s2594_s1 + $0x1f0] sm:$0xff]   ;;  %v2019_v5 = vld [vmem:[%s2594_s1 + $0x1f8] sm:$0xff]   ;;  %v2023_v17 = vld [vmem:[%s2594_s1 + $0x2c0] sm:$0xff]  }
  0x17   :  { %v2016_v2 = vld [vmem:[%s2594_s1 + $0x130] sm:$0xff]   ;;  %v2020_v6 = vld [vmem:[%s2594_s1 + $0x138] sm:$0xff]   ;;  %v2024_v18 = vld [vmem:[%s2594_s1 + $0x200] sm:$0xff]  }
  0x18   :  { %1762 = vmatpush3.bf16.msra.mxu0 %v1980_v22  ;;  %v2017_v3 = vld [vmem:[%s2594_s1 + $0x1b0] sm:$0xff]   ;;  %v2021_v7 = vld [vmem:[%s2594_s1 + $0x1b8] sm:$0xff]   ;;  %v2025_v19 = vld [vmem:[%s2594_s1 + $0x280] sm:$0xff]  }
  0x19   :  { %1784 = vmatpush3.bf16.msra.mxu1 %v1981_v23  ;;  %1763 = vmatprep.subr.bf16.mxu0 %v1982_v24  ;;  %v23_v8 = vld [vmem:[%s2595_s0 + $0x10] sm:$0xff]  ;;  %v24_v12 = vld [vmem:[%s2595_s0 + $0x18] sm:$0xff]  ;;  %v2026_v20 = vld [vmem:[%s2594_s1 + $0x248] sm:$0xff]  }
  0x1a   :  { %1785 = vmatprep.subr.bf16.mxu1 %v1983_v25  ;;  %v31_v9 = vld [vmem:[%s2595_s0 + $0x50] sm:$0xff]  ;;  %v32_v13 = vld [vmem:[%s2595_s0 + $0x58] sm:$0xff]  ;;  %v2027_v21 = vld [vmem:[%s2594_s1 + $0x2c8] sm:$0xff]  }
  0x1b   :  { %v1602_v10 = vcombine.low %v23_v8, %v31_v9  ;;  %v1603_v11 = vcombine.high %v23_v8, %v31_v9  ;;  %v1604_v14 = vcombine.low %v24_v12, %v32_v13  ;;  %v1605_v15 = vcombine.high %v24_v12, %v32_v13  ;;  %v2028_v22 = vld [vmem:[%s2594_s1 + $0x208] sm:$0xff]   ;;  %v2030_v24 = vld [vmem:[%s2594_s1 + $0x250] sm:$0xff]   ;;  %v2038_v32 = vld [vmem:[%s2594_s1 + $0x260] sm:$0xff]  }
  0x1c   :  { %1764 = vmatpush3.bf16.msra.mxu0 %v1984_v26  ;;  %v2029_v23 = vld [vmem:[%s2594_s1 + $0x288] sm:$0xff]   ;;  %v2031_v25 = vld [vmem:[%s2594_s1 + $0x2d0] sm:$0xff]   ;;  %v2039_v33 = vld [vmem:[%s2594_s1 + $0x2e0] sm:$0xff]  }
  0x1d   :  { %1786 = vmatpush3.bf16.msra.mxu1 %v1985_v27  ;;  %1765 = vmatprep.subr.bf16.mxu0 %v1986_v28  ;;  %v2032_v26 = vld [vmem:[%s2594_s1 + $0x210] sm:$0xff]   ;;  %v2034_v28 = vld [vmem:[%s2594_s1 + $0x258] sm:$0xff]   ;;  %v2040_v34 = vld [vmem:[%s2594_s1 + $0x220] sm:$0xff]  }
  0x1e   :  { %1787 = vmatprep.subr.bf16.mxu1 %v1987_v29  ;;  %v2033_v27 = vld [vmem:[%s2594_s1 + $0x290] sm:$0xff]   ;;  %v2035_v29 = vld [vmem:[%s2594_s1 + $0x2d8] sm:$0xff]   ;;  %v2042_v36 = vld [vmem:[%s2594_s1 + $0x268] sm:$0xff]  }
  0x1f   :  { %v2043_v37 = vld [vmem:[%s2594_s1 + $0x2e8] sm:$0xff]   ;;  %v2070_v8 = vld [vmem:[%s2594_s1 + $0x360] sm:$0xff]  }
  0x20   :  { %1766 = vmatpush3.bf16.msra.mxu0 %v1988_v30  ;;  %v2036_v30 = vld [vmem:[%s2594_s1 + $0x218] sm:$0xff]   ;;  %v2045_v39 = vld [vmem:[%s2594_s1 + $0x2a8] sm:$0xff]   ;;  %v2071_v9 = vld [vmem:[%s2594_s1 + $0x3e0] sm:$0xff]  }
  0x21   :  { %1788 = vmatpush3.bf16.msra.mxu1 %v1989_v31  ;;  %1795 = vmatprep.subr.bf16.mxu0 %v1990_v40  ;;  %v2037_v31 = vld [vmem:[%s2594_s1 + $0x298] sm:$0xff]   ;;  %v2046_v40 = vld [vmem:[%s2594_s1 + $0x270] sm:$0xff]   ;;  %v2074_v12 = vld [vmem:[%s2594_s1 + $0x368] sm:$0xff]  }
  0x22   :  { %1817 = vmatprep.subr.bf16.mxu1 %v1991_v41  ;;  %v2047_v41 = vld [vmem:[%s2594_s1 + $0x2f0] sm:$0xff]   ;;  %v2075_v13 = vld [vmem:[%s2594_s1 + $0x3e8] sm:$0xff]  }
  0x23   :  { %1181 = vmatmul.mubr.bf16.vlgmr.msra.gmra.mrb[0].mxu0 %v1598_v35  ;;  %v2041_v35 = vld [vmem:[%s2594_s1 + $0x2a0] sm:$0xff]  }
  0x24   :  { %1222 = vmatmul.mubr.bf16.vlgmr.msra.gmra.mrb[0].mxu1 %v1600_v38  ;;  %1796 = vmatpush3.bf16.msra.mxu0 %v1992_v42  ;;  %v2044_v38 = vld [vmem:[%s2594_s1 + $0x228] sm:$0xff]   ;;  %v2048_v42 = vld [vmem:[%s2594_s1 + $0x230] sm:$0xff]  }
  0x25   :  { %1818 = vmatpush3.bf16.msra.mxu1 %v1993_v43  ;;  %1797 = vmatprep.subr.bf16.mxu0 %v1994_v44  ;;  %v2049_v43 = vld [vmem:[%s2594_s1 + $0x2b0] sm:$0xff]   ;;  %v2050_v44 = vld [vmem:[%s2594_s1 + $0x278] sm:$0xff]  }
  0x26   :  { %1819 = vmatprep.subr.bf16.mxu1 %v1995_v45  ;;  %1262 = vmatprep.mubr.bf16.mxu0 %v1603_v11  ;;  %v2051_v45 = vld [vmem:[%s2594_s1 + $0x2f8] sm:$0xff]   ;;  %v2073_v11 = vld [vmem:[%s2594_s1 + $0x3a0] sm:$0xff]  }
  0x27   :  { %1303 = vmatprep.mubr.bf16.mxu1 %v1605_v15  ;;  %v2077_v15 = vld [vmem:[%s2594_s1 + $0x3a8] sm:$0xff]  }
  0x28   :  { %1798 = vmatpush3.bf16.msra.mxu0 %v1996_v46  ;;  %v2052_v46 = vld [vmem:[%s2594_s1 + $0x238] sm:$0xff]  }
  0x29   :  { %1820 = vmatpush3.bf16.msra.mxu1 %v1997_v47  ;;  %1799 = vmatprep.subr.bf16.mxu0 %v1998_v48  ;;  %v2053_v47 = vld [vmem:[%s2594_s1 + $0x2b8] sm:$0xff]   ;;  %v25_v48 = vld [vmem:[%s2595_s0 + $0x20] sm:$0xff] }
  0x2a   :  { %1821 = vmatprep.subr.bf16.mxu1 %v1999_v49  ;;  %v33_v49 = vld [vmem:[%s2595_s0 + $0x60] sm:$0xff] }
  0x2c   :  { %1800 = vmatpush3.bf16.msra.mxu0 %v2000_v50  ;;  %v26_v50 = vld [vmem:[%s2595_s0 + $0x28] sm:$0xff] }
  0x2d   :  { %1822 = vmatpush3.bf16.msra.mxu1 %v2001_v51  ;;  %1801 = vmatprep.subr.bf16.mxu0 %v2002_v52  ;;  %v34_v51 = vld [vmem:[%s2595_s0 + $0x68] sm:$0xff]  ;;  %v1606_v52 = vcombine.low %v25_v48, %v33_v49 }
  0x2e   :  { %1823 = vmatprep.subr.bf16.mxu1 %v2003_v53  ;;  %v1607_v53 = vcombine.high %v25_v48, %v33_v49 }
  0x30   :  { %1802 = vmatpush3.bf16.msra.mxu0 %v2004_v54  ;;  %v1608_v54 = vcombine.low %v26_v50, %v34_v51 }
  0x31   :  { %1824 = vmatpush3.bf16.msra.mxu1 %v2005_v55  ;;  %1803 = vmatprep.subr.bf16.mxu0 %v2006_v56  ;;  %v1609_v55 = vcombine.high %v26_v50, %v34_v51  ;;  %v2054_v56 = vld [vmem:[%s2594_s1 + $0x340] sm:$0xff]  }
  0x32   :  { %1825 = vmatprep.subr.bf16.mxu1 %v2007_v57  ;;  %v2055_v57 = vld [vmem:[%s2594_s1 + $0x3c0] sm:$0xff]  }
  0x34   :  { %1804 = vmatpush3.bf16.msra.mxu0 %v2008_v58  ;;  %v2056_v58 = vld [vmem:[%s2594_s1 + $0x300] sm:$0xff]  }
  0x35   :  { %1826 = vmatpush3.bf16.msra.mxu1 %v2009_v59  ;;  %1805 = vmatprep.subr.bf16.mxu0 %v2010_v60  ;;  %v2057_v59 = vld [vmem:[%s2594_s1 + $0x380] sm:$0xff]   ;;  %v2058_v60 = vld [vmem:[%s2594_s1 + $0x348] sm:$0xff]  }
  0x36   :  { %1827 = vmatprep.subr.bf16.mxu1 %v2011_v61  ;;  %v2059_v61 = vld [vmem:[%s2594_s1 + $0x3c8] sm:$0xff]  }
  0x38   :  { %1806 = vmatpush3.bf16.msra.mxu0 %v2012_v62  ;;  %v2060_v62 = vld [vmem:[%s2594_s1 + $0x308] sm:$0xff]  }
  0x39   :  { %1828 = vmatpush3.bf16.msra.mxu1 %v2013_v63  ;;  %1807 = vmatprep.subr.bf16.mxu0 %v2014_v0  ;;  %v2061_v63 = vld [vmem:[%s2594_s1 + $0x388] sm:$0xff]   ;;  %v2062_v0 = vld [vmem:[%s2594_s1 + $0x350] sm:$0xff]  }
  0x3a   :  { %1829 = vmatprep.subr.bf16.mxu1 %v2015_v1  ;;  %v2063_v1 = vld [vmem:[%s2594_s1 + $0x3d0] sm:$0xff]  }
  0x3c   :  { %1808 = vmatpush3.bf16.msra.mxu0 %v2016_v2  ;;  %v2064_v2 = vld [vmem:[%s2594_s1 + $0x310] sm:$0xff]  }
  0x3d   :  { %1830 = vmatpush3.bf16.msra.mxu1 %v2017_v3  ;;  %1809 = vmatprep.subr.bf16.mxu0 %v2018_v4  ;;  %v2065_v3 = vld [vmem:[%s2594_s1 + $0x390] sm:$0xff]   ;;  %v2066_v4 = vld [vmem:[%s2594_s1 + $0x358] sm:$0xff]  }
  0x3e   :  { %1831 = vmatprep.subr.bf16.mxu1 %v2019_v5  ;;  %v2067_v5 = vld [vmem:[%s2594_s1 + $0x3d8] sm:$0xff]  }
  0x40   :  { %1810 = vmatpush3.bf16.msra.mxu0 %v2020_v6  ;;  %v2068_v6 = vld [vmem:[%s2594_s1 + $0x318] sm:$0xff]  }
  0x41   :  { %1832 = vmatpush3.bf16.msra.mxu1 %v2021_v7  ;;  %1839 = vmatprep.subr.bf16.mxu0 %v2022_v16  ;;  %v2069_v7 = vld [vmem:[%s2594_s1 + $0x398] sm:$0xff]   ;;  %v2078_v16 = vld [vmem:[%s2594_s1 + $0x370] sm:$0xff]  }
  0x42   :  { %1861 = vmatprep.subr.bf16.mxu1 %v2023_v17  ;;  %v2079_v17 = vld [vmem:[%s2594_s1 + $0x3f0] sm:$0xff]  }
  0x43   :  { %1263 = vmatmul.mubr.bf16.vlgmr.msra.gmra.mrb[4].mxu0 %v1602_v10  ;;  %v2072_v10 = vld [vmem:[%s2594_s1 + $0x320] sm:$0xff]  }
  0x44   :  { %1304 = vmatmul.mubr.bf16.vlgmr.msra.gmra.mrb[4].mxu1 %v1604_v14  ;;  %1840 = vmatpush3.bf16.msra.mxu0 %v2024_v18  ;;  %v2076_v14 = vld [vmem:[%s2594_s1 + $0x328] sm:$0xff]   ;;  %v2080_v18 = vld [vmem:[%s2594_s1 + $0x330] sm:$0xff]  }
  0x45   :  { %1862 = vmatpush3.bf16.msra.mxu1 %v2025_v19  ;;  %1841 = vmatprep.subr.bf16.mxu0 %v2026_v20  ;;  %v2081_v19 = vld [vmem:[%s2594_s1 + $0x3b0] sm:$0xff]   ;;  %v2082_v20 = vld [vmem:[%s2594_s1 + $0x378] sm:$0xff]  }
  0x46   :  { %1863 = vmatprep.subr.bf16.mxu1 %v2027_v21  ;;  %1344 = vmatprep.mubr.bf16.mxu0 %v1607_v53  ;;  %v2083_v21 = vld [vmem:[%s2594_s1 + $0x3f8] sm:$0xff]  }
  0x47   :  { %1385 = vmatprep.mubr.bf16.mxu1 %v1609_v55 }
  0x48   :  { %1842 = vmatpush3.bf16.msra.mxu0 %v2028_v22  ;;  %v2084_v22 = vld [vmem:[%s2594_s1 + $0x338] sm:$0xff]  }
  0x49   :  { %1864 = vmatpush3.bf16.msra.mxu1 %v2029_v23  ;;  %1843 = vmatprep.subr.bf16.mxu0 %v2030_v24  ;;  %v2085_v23 = vld [vmem:[%s2594_s1 + $0x3b8] sm:$0xff]   ;;  %v27_v24 = vld [vmem:[%s2595_s0 + $0x30] sm:$0xff] }
  0x4a   :  { %1865 = vmatprep.subr.bf16.mxu1 %v2031_v25  ;;  %v35_v25 = vld [vmem:[%s2595_s0 + $0x70] sm:$0xff] }
  0x4c   :  { %1844 = vmatpush3.bf16.msra.mxu0 %v2032_v26  ;;  %v28_v26 = vld [vmem:[%s2595_s0 + $0x38] sm:$0xff] }
  0x4d   :  { %1866 = vmatpush3.bf16.msra.mxu1 %v2033_v27  ;;  %1845 = vmatprep.subr.bf16.mxu0 %v2034_v28  ;;  %v1610_v27 = vcombine.low %v27_v24, %v35_v25  ;;  %v1611_v28 = vcombine.high %v27_v24, %v35_v25 }
  0x4e   :  { %1867 = vmatprep.subr.bf16.mxu1 %v2035_v29  ;;  %v36_v29 = vld [vmem:[%s2595_s0 + $0x78] sm:$0xff] }
  0x50   :  { %1846 = vmatpush3.bf16.msra.mxu0 %v2036_v30  ;;  %v1612_v30 = vcombine.low %v28_v26, %v36_v29 }
  0x51   :  { %1868 = vmatpush3.bf16.msra.mxu1 %v2037_v31  ;;  %1847 = vmatprep.subr.bf16.mxu0 %v2038_v32  ;;  %v1613_v31 = vcombine.high %v28_v26, %v36_v29  ;;  %v2094_v32 = vmov 0.0  }
  0x52   :  { %1869 = vmatprep.subr.bf16.mxu1 %v2039_v33  ;;  %v2086_v33 = vld [vmem:[%s2596_s3] sm:$0xff]  }
  0x54   :  { %1848 = vmatpush3.bf16.msra.mxu0 %v2040_v34  ;;  %v2087_v34 = vld [vmem:[%s2596_s3 + $0x8] sm:$0xff]  }
  0x55   :  { %1870 = vmatpush3.bf16.msra.mxu1 %v2041_v35  ;;  %1849 = vmatprep.subr.bf16.mxu0 %v2042_v36  ;;  %v2088_v35 = vld [vmem:[%s2596_s3 + $0x10] sm:$0xff]   ;;  %v2089_v36 = vld [vmem:[%s2596_s3 + $0x18] sm:$0xff]  }
  0x56   :  { %1871 = vmatprep.subr.bf16.mxu1 %v2043_v37  ;;  %v2090_v37 = vld [vmem:[%s2596_s3 + $0x20] sm:$0xff]  }
  0x58   :  { %1850 = vmatpush3.bf16.msra.mxu0 %v2044_v38  ;;  %v2091_v38 = vld [vmem:[%s2596_s3 + $0x28] sm:$0xff]  }
  0x59   :  { %1872 = vmatpush3.bf16.msra.mxu1 %v2045_v39  ;;  %1851 = vmatprep.subr.bf16.mxu0 %v2046_v40  ;;  %v2092_v39 = vld [vmem:[%s2596_s3 + $0x30] sm:$0xff]   ;;  %v2093_v40 = vld [vmem:[%s2596_s3 + $0x38] sm:$0xff]  }
  0x5a   :  { %1873 = vmatprep.subr.bf16.mxu1 %v2047_v41 }
  0x5c   :  { %1852 = vmatpush3.bf16.msra.mxu0 %v2048_v42 }
  0x5d   :  { %1874 = vmatpush3.bf16.msra.mxu1 %v2049_v43  ;;  %1853 = vmatprep.subr.bf16.mxu0 %v2050_v44  ;;  %v1597_v43 = vld [vmem:[%s2597_s2] ss:$0 sm:$0xff] }
  0x5e   :  { %1875 = vmatprep.subr.bf16.mxu1 %v2051_v45 }
  0x60   :  { %1854 = vmatpush3.bf16.msra.mxu0 %v2052_v46 }
  0x61   :  { %1876 = vmatpush3.bf16.msra.mxu1 %v2053_v47  ;;  %1883 = vmatprep.subr.bf16.mxu0 %v2054_v56 }
  0x62   :  { %1905 = vmatprep.subr.bf16.mxu1 %v2055_v57 }
  0x63   :  { %1345 = vmatmul.mubr.bf16.vlgmr.msra.gmra.mrb[8].mxu0 %v1606_v52 }
  0x64   :  { %1386 = vmatmul.mubr.bf16.vlgmr.msra.gmra.mrb[8].mxu1 %v1608_v54  ;;  %1884 = vmatpush3.bf16.msra.mxu0 %v2056_v58 }
  0x65   :  { %1906 = vmatpush3.bf16.msra.mxu1 %v2057_v59  ;;  %1885 = vmatprep.subr.bf16.mxu0 %v2058_v60 }
  0x66   :  { %1907 = vmatprep.subr.bf16.mxu1 %v2059_v61  ;;  %1426 = vmatprep.mubr.bf16.mxu0 %v1611_v28 }
  0x67   :  { %1467 = vmatprep.mubr.bf16.mxu1 %v1613_v31 }
  0x68   :  { %1886 = vmatpush3.bf16.msra.mxu0 %v2060_v62 }
  0x69   :  { %1908 = vmatpush3.bf16.msra.mxu1 %v2061_v63  ;;  %1887 = vmatprep.subr.bf16.mxu0 %v2062_v0 }
  0x6a   :  { %1909 = vmatprep.subr.bf16.mxu1 %v2063_v1 }
  0x6c   :  { %1888 = vmatpush3.bf16.msra.mxu0 %v2064_v2 }
  0x6d   :  { %1910 = vmatpush3.bf16.msra.mxu1 %v2065_v3  ;;  %1889 = vmatprep.subr.bf16.mxu0 %v2066_v4 }
  0x6e   :  { %1911 = vmatprep.subr.bf16.mxu1 %v2067_v5 }
  0x70   :  { %1890 = vmatpush3.bf16.msra.mxu0 %v2068_v6 }
  0x71   :  { %1912 = vmatpush3.bf16.msra.mxu1 %v2069_v7  ;;  %1891 = vmatprep.subr.bf16.mxu0 %v2070_v8 }
  0x72   :  { %1913 = vmatprep.subr.bf16.mxu1 %v2071_v9 }
  0x74   :  { %1892 = vmatpush3.bf16.msra.mxu0 %v2072_v10 }
  0x75   :  { %1914 = vmatpush3.bf16.msra.mxu1 %v2073_v11  ;;  %1893 = vmatprep.subr.bf16.mxu0 %v2074_v12 }
  0x76   :  { %1915 = vmatprep.subr.bf16.mxu1 %v2075_v13 }
  0x78   :  { %1894 = vmatpush3.bf16.msra.mxu0 %v2076_v14 }
  0x79   :  { %1916 = vmatpush3.bf16.msra.mxu1 %v2077_v15  ;;  %1895 = vmatprep.subr.bf16.mxu0 %v2078_v16 }
  0x7a   :  { %1917 = vmatprep.subr.bf16.mxu1 %v2079_v17 }
  0x7c   :  { %1896 = vmatpush3.bf16.msra.mxu0 %v2080_v18 }
  0x7d   :  { %1918 = vmatpush3.bf16.msra.mxu1 %v2081_v19  ;;  %1897 = vmatprep.subr.bf16.mxu0 %v2082_v20 }
  0x7e   :  { %1919 = vmatprep.subr.bf16.mxu1 %v2083_v21 }
  0x80   :  { %1898 = vmatpush3.bf16.msra.mxu0 %v2084_v22 }
  0x81   :  { %1920 = vmatpush3.bf16.msra.mxu1 %v2085_v23  ;;  %1936 = vmatprep.subr.bf16.mxu0 %v2094_v32 }
  0x83   :  { %1427 = vmatmul.mubr.bf16.vlgmr.msra.gmra.mrb[12].mxu0 %v1610_v27 }
  0x84   :  { %1468 = vmatmul.mubr.bf16.vlgmr.msra.gmra.mrb[12].mxu1 %v1612_v30  ;;  %1937 = vmatpush3.bf16.msra.mxu0 %v2086_v33 }
  0x85   :  { %1938 = vmatprep.subr.bf16.mxu0 %v2094_v32  ;;  %1952 = vmatprep.mubr.msk.bf16.mxu0 %vm2095_vm0, %v2094_v32 }
  0x88   :  { %1939 = vmatpush3.bf16.msra.mxu0 %v2087_v34 }
  0x89   :  { %1940 = vmatprep.subr.bf16.mxu0 %v2094_v32 }
  0x8c   :  { %1941 = vmatpush3.bf16.msra.mxu0 %v2088_v35 }
  0x8d   :  { %1942 = vmatprep.subr.bf16.mxu0 %v2094_v32 }
  0x90   :  { %1943 = vmatpush3.bf16.msra.mxu0 %v2089_v36 }
  0x91   :  { %1944 = vmatprep.subr.bf16.mxu0 %v2094_v32 }
  0x94   :  { %1945 = vmatpush3.bf16.msra.mxu0 %v2090_v37 }
  0x95   :  { %1946 = vmatprep.subr.bf16.mxu0 %v2094_v32 }
  0x98   :  { %1947 = vmatpush3.bf16.msra.mxu0 %v2091_v38 }
  0x99   :  { %1948 = vmatprep.subr.bf16.mxu0 %v2094_v32 }
  0x9c   :  { %1949 = vmatpush3.bf16.msra.mxu0 %v2092_v39 }
  0x9d   :  { %1950 = vmatprep.subr.bf16.mxu0 %v2094_v32 }
  0xa0   :  { %1951 = vmatpush3.bf16.msra.mxu0 %v2093_v40 }
  0xf6   :  { %v1767_v41 = vpop.f32.mrb[0].mxu0 }
  0xf7   :  { %v1789_v42 = vpop.f32.mrb[0].mxu1  ;;  %v1768_v44 = vpop.f32.mrb[1].mxu0 }
  0xf8   :  { %v1769_v45 = vadd.f32 %v1768_v44, %v1767_v41  ;;  %v1790_v46 = vpop.f32.mrb[1].mxu1  ;;  %v1770_v47 = vpop.f32.mrb[2].mxu0 }
  0xf9   :  { %v1791_v48 = vadd.f32 %v1790_v46, %v1789_v42  ;;  %v1792_v49 = vpop.f32.mrb[2].mxu1  ;;  %v1771_v50 = vpop.f32.mrb[3].mxu0 }
  0xfa   :  { %v1183_v51 = vadd.f32 %v1769_v45, %v1597_v43  ;;  %v1772_v52 = vadd.f32 %v1771_v50, %v1770_v47  ;;  %v1793_v53 = vpop.f32.mrb[3].mxu1  ;;  %v1742_v45 = vld [vmem:[%s2598_s4] ss:$0 sm:$0xff] }
  0xfb   :  { %v1794_v54 = vadd.f32 %v1793_v53, %v1792_v49 }
  0xfc   :  { %v1224_v55 = vadd.f32 %v1791_v48, %v1183_v51  ;;  %v1186_v56 = vadd.f32 %v1772_v52, %v1597_v43 }
  0xfe   :  { %v1227_v57 = vadd.f32 %v1794_v54, %v1186_v56 }
 0x116   :  { %v1811_v58 = vpop.f32.mrb[4].mxu0 }
 0x117   :  { %v1833_v59 = vpop.f32.mrb[4].mxu1  ;;  %v1812_v60 = vpop.f32.mrb[5].mxu0 }
 0x118   :  { %v1813_v61 = vadd.f32 %v1812_v60, %v1811_v58  ;;  %v1834_v62 = vpop.f32.mrb[5].mxu1  ;;  %v1814_v63 = vpop.f32.mrb[6].mxu0 }
 0x119   :  { %v1835_v0 = vadd.f32 %v1834_v62, %v1833_v59  ;;  %v1836_v1 = vpop.f32.mrb[6].mxu1  ;;  %v1815_v2 = vpop.f32.mrb[7].mxu0 }
 0x11a   :  { %v1265_v3 = vadd.f32 %v1813_v61, %v1224_v55  ;;  %v1816_v4 = vadd.f32 %v1815_v2, %v1814_v63  ;;  %v1837_v5 = vpop.f32.mrb[7].mxu1 }
 0x11b   :  { %v1838_v6 = vadd.f32 %v1837_v5, %v1836_v1 }
 0x11c   :  { %v1306_v7 = vadd.f32 %v1835_v0, %v1265_v3  ;;  %v1268_v8 = vadd.f32 %v1816_v4, %v1227_v57 }
 0x11e   :  { %v1309_v9 = vadd.f32 %v1838_v6, %v1268_v8 }
 0x136   :  { %v1855_v10 = vpop.f32.mrb[8].mxu0 }
 0x137   :  { %v1877_v11 = vpop.f32.mrb[8].mxu1  ;;  %v1856_v12 = vpop.f32.mrb[9].mxu0 }
 0x138   :  { %v1878_v13 = vpop.f32.mrb[9].mxu1  ;;  %v1857_v14 = vadd.f32 %v1856_v12, %v1855_v10  ;;  %v1858_v16 = vpop.f32.mrb[10].mxu0 }
 0x139   :  { %v1879_v15 = vadd.f32 %v1878_v13, %v1877_v11  ;;  %v1880_v17 = vpop.f32.mrb[10].mxu1  ;;  %v1859_v18 = vpop.f32.mrb[11].mxu0 }
 0x13a   :  { %v1881_v19 = vpop.f32.mrb[11].mxu1  ;;  %v1347_v20 = vadd.f32 %v1857_v14, %v1306_v7  ;;  %v1860_v21 = vadd.f32 %v1859_v18, %v1858_v16 }
 0x13b   :  { %v1882_v22 = vadd.f32 %v1881_v19, %v1880_v17 }
 0x13c   :  { %v1388_v23 = vadd.f32 %v1879_v15, %v1347_v20  ;;  %v1350_v24 = vadd.f32 %v1860_v21, %v1309_v9 }
 0x13e   :  { %v1391_v25 = vadd.f32 %v1882_v22, %v1350_v24 }
 0x156   :  { %v1899_v26 = vpop.f32.mrb[12].mxu0 }
 0x157   :  { %v1921_v27 = vpop.f32.mrb[12].mxu1  ;;  %v1900_v28 = vpop.f32.mrb[13].mxu0 }
 0x158   :  { %v1901_v29 = vadd.f32 %v1900_v28, %v1899_v26  ;;  %v1922_v30 = vpop.f32.mrb[13].mxu1  ;;  %v1902_v31 = vpop.f32.mrb[14].mxu0 }
 0x159   :  { %v1923_v32 = vadd.f32 %v1922_v30, %v1921_v27  ;;  %v1924_v33 = vpop.f32.mrb[14].mxu1  ;;  %v1903_v34 = vpop.f32.mrb[15].mxu0 }
 0x15a   :  { %v1429_v35 = vadd.f32 %v1901_v29, %v1388_v23  ;;  %v1904_v36 = vadd.f32 %v1903_v34, %v1902_v31  ;;  %v1925_v37 = vpop.f32.mrb[15].mxu1 }
 0x15b   :  { %v1926_v38 = vadd.f32 %v1925_v37, %v1924_v33 }
 0x15c   :  { %v1470_v39 = vadd.f32 %v1923_v32, %v1429_v35  ;;  %v1432_v40 = vadd.f32 %v1904_v36, %v1391_v25 }
 0x15e   :  { %v1473_v41 = vadd.f32 %v1926_v38, %v1432_v40  ;;  %v1476_v42 = vmax.f32 %v1470_v39, 0.0 }
 0x160   :  { %v1477_v43 = vmax.f32 %v1473_v41, 0.0 }
 0x162   :  { %v1478_v44 = vpack.c.bf16 %v1477_v43, %v1476_v42 }
 0x164   :  { %1953 = vmatmul.mubr.bf16.vlgmr.msra.gmra.mrb[16].mxu0 %v1478_v44 }
 0x237   :  { %v1584_v46 = vpop.f32.mrb[16].mxu0 }
 0x238   :  { %v1585_v47 = vadd.f32 %v1742_v45, %v1584_v46  ;;  %v1954_v48 = vpop.f32.mrb[17].mxu0 }
 0x239   :  { %v1587_v49 = vpop.f32.mrb[18].mxu0 }
 0x23a   :  { %1591 = vst [vmem:[%s2599_s5] sm:$0xff] %v1585_v47  ;;  %v1588_v50 = vadd.f32 %v1742_v45, %v1587_v49  ;;  %v1955_v51 = vpop.f32.mrb[19].mxu0 }
 0x23c   :  { %1592 = vst [vmem:[%s2599_s5 + $0x8] sm:$0xff] %v1588_v50 }

</bundles_post_ra>
